<compile_context>
chip_gen: v6e
topology: v6e:2x2x1
jax: 0.10.0
libtpu: 0.0.40
codegen_flags: <defaults>
</compile_context>

<pallas_src>
import jax
import jax.numpy as jnp
from jax.experimental import pallas as pl
from jax.experimental.pallas import tpu as pltpu

K_IN = 28 * 28      # 784 (unpadded; last block dim == full array dim is legal)
HID = 512
N_OUT = 10
N_PAD = 128         # lane-dense padded logits width


def _round_up(x, m):
    return (x + m - 1) // m * m


def _preferred_tile():
    """Per-generation batch tile: 256 on v5e (MXU-bound), 512 on v6e/v7x."""
    try:
        kind = jax.devices()[0].device_kind.lower()
    except Exception:
        kind = ""
    return 256 if "v5" in kind else 512


def mlp_kernel(x_ref, w1_ref, b1_ref, w2_ref, b2_ref, w3_ref, b3_ref,
               o_ref, h1_ref, h2_ref):
    # Layer 1: Linear(784->512) + ReLU.  bf16 operands, f32 MXU accumulation;
    # bias + ReLU in f32 (VPU), cast to bf16 fused into the scratch store.
    h1 = jnp.dot(x_ref[...], w1_ref[...], preferred_element_type=jnp.float32)
    h1_ref[...] = jnp.maximum(h1 + b1_ref[...], 0.0).astype(jnp.bfloat16)

    # Layer 2: Linear(512->512) + ReLU (scratch already bf16 -> no extra cast).
    h2 = jnp.dot(h1_ref[...], w2_ref[...], preferred_element_type=jnp.float32)
    h2_ref[...] = jnp.maximum(h2 + b2_ref[...], 0.0).astype(jnp.bfloat16)

    # Layer 3: Linear(512->128-padded logits); lane-dense f32 output store.
    logits = jnp.dot(h2_ref[...], w3_ref[...], preferred_element_type=jnp.float32)
    o_ref[...] = (logits + b3_ref[...]).astype(o_ref.dtype)


def neura_network_forward(x_nchw, params, tm=None):
    """Forward pass matching NeuraNetwork.forward.  x_nchw: (B, 1, 28, 28) f32."""
    w1, b1, w2, b2, w3, b3 = params
    B = x_nchw.shape[0]

    if tm is None:
        tm = _preferred_tile()
    # For small batches, don't pad past one (or a few) 128-row MXU tiles.
    tm = min(tm, max(128, _round_up(B, 128)))
    B_pad = _round_up(B, tm)

    # nn.Flatten(): (B, 1, 28, 28) -> (B, 784).  Cast to bf16 *before* padding
    # (half the pre-pass bytes), then pad only the batch dim; padded rows are
    # inert and sliced off after the call.
    x_flat = x_nchw.reshape(B, -1).astype(jnp.bfloat16)
    x_p = jnp.pad(x_flat, ((0, B_pad - B), (0, 0)))

    # Weights (in, out) in bf16 for the MXU; final-layer columns zero-padded to
    # 128 lanes so the output store is unmasked.  Biases stay f32 for the
    # epilogue math.
    w1_p = w1.astype(jnp.bfloat16)
    w2_p = w2.astype(jnp.bfloat16)
    w3_p = jnp.pad(w3, ((0, 0), (0, N_PAD - N_OUT))).astype(jnp.bfloat16)
    b1_p = b1.astype(jnp.float32)
    b2_p = b2.astype(jnp.float32)
    b3_p = jnp.pad(b3.astype(jnp.float32), ((0, 0), (0, N_PAD - N_OUT)))

    grid = (B_pad // tm,)
    resident = lambda shape: pl.BlockSpec(shape, lambda i: (0, 0))

    flops = 2 * B_pad * (K_IN * HID + HID * HID + HID * N_PAD)
    bytes_accessed = (
        x_p.size * 2 + w1_p.size * 2 + w2_p.size * 2 + w3_p.size * 2
        + b1_p.size * 4 + b2_p.size * 4 + b3_p.size * 4
        + B_pad * N_PAD * 4)

    out_padded = pl.pallas_call(
        mlp_kernel,
        out_shape=jax.ShapeDtypeStruct((B_pad, N_PAD), jnp.float32),
        grid=grid,
        in_specs=[
            pl.BlockSpec((tm, K_IN), lambda i: (i, 0)),   # x tile (pipelined)
            resident((K_IN, HID)),                        # w1 (resident)
            resident((1, HID)),                           # b1
            resident((HID, HID)),                         # w2
            resident((1, HID)),                           # b2
            resident((HID, N_PAD)),                       # w3 (padded lanes)
            resident((1, N_PAD)),                         # b3 (padded lanes)
        ],
        out_specs=pl.BlockSpec((tm, N_PAD), lambda i: (i, 0)),
        scratch_shapes=[
            pltpu.VMEM((tm, HID), jnp.bfloat16),          # h1 (bf16 scratch)
            pltpu.VMEM((tm, HID), jnp.bfloat16),          # h2 (bf16 scratch)
        ],
        compiler_params=pltpu.CompilerParams(
            # Batch axis is embarrassingly parallel.  On v7x, if "parallel"
            # does not shard the batch axis across the 2 TensorCores, switch
            # this axis to pltpu.CORE_PARALLEL (keep grid length >= 2).
            dimension_semantics=("parallel",),
            vmem_limit_bytes=32 * 1024 * 1024,
        ),
        cost_estimate=pl.CostEstimate(
            flops=flops, transcendentals=0, bytes_accessed=bytes_accessed),
    )(x_p, w1_p, b1_p, w2_p, b2_p, w3_p, b3_p)

    # Strip batch padding and the lane padding of the final layer.
    return out_padded[:B, :N_OUT]


def init_params(key):
    """Deterministic init mimicking PyTorch nn.Linear default (uniform +-1/sqrt(fan_in))."""
    def linear(key, fan_in, fan_out):
        kw, kb = jax.random.split(key)
        bound = 1.0 / jnp.sqrt(float(fan_in))
        # stored as (in, out) so kernel computes x @ W
        w = jax.random.uniform(kw, (fan_in, fan_out), jnp.float32, -bound, bound)
        b = jax.random.uniform(kb, (1, fan_out), jnp.float32, -bound, bound)
        return w, b

    k1, k2, k3 = jax.random.split(key, 3)
    w1, b1 = linear(k1, K_IN, HID)
    w2, b2 = linear(k2, HID, HID)
    w3, b3 = linear(k3, HID, N_OUT)
    return (w1, b1, w2, b2, w3, b3)


if __name__ == "__main__":
    key = jax.random.PRNGKey(0)
    kp, kx = jax.random.split(key)
    params = init_params(kp)

    B = 8  # small batch (padded to one 128-row tile inside the wrapper)
    x = jax.random.normal(kx, (B, 1, 28, 28), jnp.float32)  # NCHW, FashionMNIST-shaped

    logits = neura_network_forward(x, params)
    jax.block_until_ready(logits)
    assert logits.shape == (B, N_OUT) and logits.dtype == jnp.float32

    # Sanity check vs pure-JAX f32 reference (loose tolerance: kernel uses bf16
    # matmul operands with f32 accumulation).
    w1, b1, w2, b2, w3, b3 = params
    xf = x.reshape(B, -1)
    ref = jnp.maximum(xf @ w1 + b1, 0.0)
    ref = jnp.maximum(ref @ w2 + b2, 0.0)
    ref = ref @ w3 + b3
    assert jnp.allclose(logits, ref, atol=5e-2, rtol=5e-2), (
        float(jnp.max(jnp.abs(logits - ref))))

    print("KERNEL_OK")
</pallas_src>

<mosaic_0001>
module attributes {stable_mosaic.version = 11 : i64} {
  func.func @mlp_kernel(%arg0: i32, %arg1: memref<128x784xbf16, #tpu.memory_space<vmem>>, %arg2: memref<784x512xbf16, #tpu.memory_space<vmem>>, %arg3: memref<1x512xf32, #tpu.memory_space<vmem>>, %arg4: memref<512x512xbf16, #tpu.memory_space<vmem>>, %arg5: memref<1x512xf32, #tpu.memory_space<vmem>>, %arg6: memref<512x128xbf16, #tpu.memory_space<vmem>>, %arg7: memref<1x128xf32, #tpu.memory_space<vmem>>, %arg8: memref<128x128xf32, #tpu.memory_space<vmem>>, %arg9: memref<128x512xbf16, #tpu.memory_space<vmem>>, %arg10: memref<128x512xbf16, #tpu.memory_space<vmem>>) attributes {dimension_semantics = [#tpu.dimension_semantics<parallel>], iteration_bounds = array<i64: 1>, scalar_prefetch = 0 : i64, scratch_operands = 2 : i64, tpu.core_type = #tpu.core_type<tc>, window_params = [{transform_indices = @transform_0, window_bounds = array<i64: 128, 784>}, {pipeline_mode = #tpu.pipeline_mode<synchronous>, transform_indices = @transform_1, window_bounds = array<i64: 784, 512>}, {pipeline_mode = #tpu.pipeline_mode<synchronous>, transform_indices = @transform_2, window_bounds = array<i64: 1, 512>}, {pipeline_mode = #tpu.pipeline_mode<synchronous>, transform_indices = @transform_3, window_bounds = array<i64: 512, 512>}, {pipeline_mode = #tpu.pipeline_mode<synchronous>, transform_indices = @transform_4, window_bounds = array<i64: 1, 512>}, {pipeline_mode = #tpu.pipeline_mode<synchronous>, transform_indices = @transform_5, window_bounds = array<i64: 512, 128>}, {pipeline_mode = #tpu.pipeline_mode<synchronous>, transform_indices = @transform_6, window_bounds = array<i64: 1, 128>}, {transform_indices = @transform_7, window_bounds = array<i64: 128, 128>}]} {
    %c0 = arith.constant 0 : index
    %c0_0 = arith.constant 0 : index
    %0 = vector.load %arg1[%c0, %c0_0] : memref<128x784xbf16, #tpu.memory_space<vmem>>, vector<128x784xbf16>
    %c0_1 = arith.constant 0 : index
    %c0_2 = arith.constant 0 : index
    %1 = vector.load %arg2[%c0_1, %c0_2] : memref<784x512xbf16, #tpu.memory_space<vmem>>, vector<784x512xbf16>
    %cst = arith.constant dense<0.000000e+00> : vector<128x512xf32>
    %2 = tpu.matmul %0, %1, %cst {dimension_numbers = #tpu.dot_dimension_numbers<[1], [0], [0], [1], [0, 0, 1, 1], [], []>} : vector<128x784xbf16>, vector<784x512xbf16>, vector<128x512xf32> -> vector<128x512xf32>
    %c0_3 = arith.constant 0 : index
    %c0_4 = arith.constant 0 : index
    %3 = vector.load %arg3[%c0_3, %c0_4] : memref<1x512xf32, #tpu.memory_space<vmem>>, vector<1x512xf32>
    %4 = vector.broadcast %3 : vector<1x512xf32> to vector<128x512xf32>
    %5 = arith.addf %2, %4 : vector<128x512xf32>
    %cst_5 = arith.constant 0.000000e+00 : f32
    %6 = vector.broadcast %cst_5 : f32 to vector<128x512xf32>
    %7 = arith.maximumf %5, %6 : vector<128x512xf32>
    %8 = arith.truncf %7 : vector<128x512xf32> to vector<128x512xbf16>
    %c0_6 = arith.constant 0 : index
    %c0_7 = arith.constant 0 : index
    %9 = vector.load %arg9[%c0_6, %c0_7] : memref<128x512xbf16, #tpu.memory_space<vmem>>, vector<128x512xbf16>
    tpu.vector_store %arg9[%c0_6, %c0_7], %8 {strides = array<i32>} : memref<128x512xbf16, #tpu.memory_space<vmem>>, vector<128x512xbf16>,
    %c0_8 = arith.constant 0 : index
    %c0_9 = arith.constant 0 : index
    %10 = vector.load %arg9[%c0_8, %c0_9] : memref<128x512xbf16, #tpu.memory_space<vmem>>, vector<128x512xbf16>
    %c0_10 = arith.constant 0 : index
    %c0_11 = arith.constant 0 : index
    %11 = vector.load %arg4[%c0_10, %c0_11] : memref<512x512xbf16, #tpu.memory_space<vmem>>, vector<512x512xbf16>
    %cst_12 = arith.constant dense<0.000000e+00> : vector<128x512xf32>
    %12 = tpu.matmul %10, %11, %cst_12 {dimension_numbers = #tpu.dot_dimension_numbers<[1], [0], [0], [1], [0, 0, 1, 1], [], []>} : vector<128x512xbf16>, vector<512x512xbf16>, vector<128x512xf32> -> vector<128x512xf32>
    %c0_13 = arith.constant 0 : index
    %c0_14 = arith.constant 0 : index
    %13 = vector.load %arg5[%c0_13, %c0_14] : memref<1x512xf32, #tpu.memory_space<vmem>>, vector<1x512xf32>
    %14 = vector.broadcast %13 : vector<1x512xf32> to vector<128x512xf32>
    %15 = arith.addf %12, %14 : vector<128x512xf32>
    %cst_15 = arith.constant 0.000000e+00 : f32
    %16 = vector.broadcast %cst_15 : f32 to vector<128x512xf32>
    %17 = arith.maximumf %15, %16 : vector<128x512xf32>
    %18 = arith.truncf %17 : vector<128x512xf32> to vector<128x512xbf16>
    %c0_16 = arith.constant 0 : index
    %c0_17 = arith.constant 0 : index
    %19 = vector.load %arg10[%c0_16, %c0_17] : memref<128x512xbf16, #tpu.memory_space<vmem>>, vector<128x512xbf16>
    tpu.vector_store %arg10[%c0_16, %c0_17], %18 {strides = array<i32>} : memref<128x512xbf16, #tpu.memory_space<vmem>>, vector<128x512xbf16>,
    %c0_18 = arith.constant 0 : index
    %c0_19 = arith.constant 0 : index
    %20 = vector.load %arg10[%c0_18, %c0_19] : memref<128x512xbf16, #tpu.memory_space<vmem>>, vector<128x512xbf16>
    %c0_20 = arith.constant 0 : index
    %c0_21 = arith.constant 0 : index
    %21 = vector.load %arg6[%c0_20, %c0_21] : memref<512x128xbf16, #tpu.memory_space<vmem>>, vector<512x128xbf16>
    %cst_22 = arith.constant dense<0.000000e+00> : vector<128x128xf32>
    %22 = tpu.matmul %20, %21, %cst_22 {dimension_numbers = #tpu.dot_dimension_numbers<[1], [0], [0], [1], [0, 0, 1, 1], [], []>} : vector<128x512xbf16>, vector<512x128xbf16>, vector<128x128xf32> -> vector<128x128xf32>
    %c0_23 = arith.constant 0 : index
    %c0_24 = arith.constant 0 : index
    %23 = vector.load %arg7[%c0_23, %c0_24] : memref<1x128xf32, #tpu.memory_space<vmem>>, vector<1x128xf32>
    %24 = vector.broadcast %23 : vector<1x128xf32> to vector<128x128xf32>
    %25 = arith.addf %22, %24 : vector<128x128xf32>
    %c0_25 = arith.constant 0 : index
    %c0_26 = arith.constant 0 : index
    %26 = vector.load %arg8[%c0_25, %c0_26] : memref<128x128xf32, #tpu.memory_space<vmem>>, vector<128x128xf32>
    tpu.vector_store %arg8[%c0_25, %c0_26], %25 {strides = array<i32>} : memref<128x128xf32, #tpu.memory_space<vmem>>, vector<128x128xf32>,
    return
  }
  func.func @transform_0(%arg0: i32) -> (i32, i32) {
    %c0_i32 = arith.constant 0 : i32
    %c0_i32_0 = arith.constant 0 : i32
    return %arg0, %c0_i32 : i32, i32
  }
  func.func @transform_1(%arg0: i32) -> (i32, i32) {
    %c0_i32 = arith.constant 0 : i32
    %c0_i32_0 = arith.constant 0 : i32
    %c0_i32_1 = arith.constant 0 : i32
    return %c0_i32, %c0_i32_0 : i32, i32
  }
  func.func @transform_2(%arg0: i32) -> (i32, i32) {
    %c0_i32 = arith.constant 0 : i32
    %c0_i32_0 = arith.constant 0 : i32
    %c0_i32_1 = arith.constant 0 : i32
    return %c0_i32, %c0_i32_0 : i32, i32
  }
  func.func @transform_3(%arg0: i32) -> (i32, i32) {
    %c0_i32 = arith.constant 0 : i32
    %c0_i32_0 = arith.constant 0 : i32
    %c0_i32_1 = arith.constant 0 : i32
    return %c0_i32, %c0_i32_0 : i32, i32
  }
  func.func @transform_4(%arg0: i32) -> (i32, i32) {
    %c0_i32 = arith.constant 0 : i32
    %c0_i32_0 = arith.constant 0 : i32
    %c0_i32_1 = arith.constant 0 : i32
    return %c0_i32, %c0_i32_0 : i32, i32
  }
  func.func @transform_5(%arg0: i32) -> (i32, i32) {
    %c0_i32 = arith.constant 0 : i32
    %c0_i32_0 = arith.constant 0 : i32
    %c0_i32_1 = arith.constant 0 : i32
    return %c0_i32, %c0_i32_0 : i32, i32
  }
  func.func @transform_6(%arg0: i32) -> (i32, i32) {
    %c0_i32 = arith.constant 0 : i32
    %c0_i32_0 = arith.constant 0 : i32
    %c0_i32_1 = arith.constant 0 : i32
    return %c0_i32, %c0_i32_0 : i32, i32
  }
  func.func @transform_7(%arg0: i32) -> (i32, i32) {
    %c0_i32 = arith.constant 0 : i32
    %c0_i32_0 = arith.constant 0 : i32
    return %arg0, %c0_i32 : i32, i32
  }
}

</mosaic_0001>

<bundles_post_ra>
// kernel: tpu_custom_call.1
= control target key start
LH: loop header
LB: loop body
LE: loop exit
PB: predicated region body
PF: predicated region fallthrough
CT: control target
= control target key end

     0   :  { %12 = vsyncpa [#allocation5], 0  ;;  %s8063_s0 = inlined_call_operand.vmem [shape: bf16[128,784], index: 0, kind: input, shape index: {}]   ;;  %s8064_s1 = inlined_call_operand.hbm [shape: bf16[784,512], index: 1, kind: input, shape index: {}]   ;;  %s8065_s2 = inlined_call_operand.vmem [shape: f32[1,512], index: 2, kind: input, shape index: {}]   ;;  %s8066_s3 = inlined_call_operand.hbm [shape: bf16[512,512], index: 3, kind: input, shape index: {}]   ;;  %s8067_s4 = inlined_call_operand.vmem [shape: f32[1,512], index: 4, kind: input, shape index: {}]   ;;  %s8068_s5 = inlined_call_operand.vmem [shape: bf16[512,128], index: 5, kind: input, shape index: {}]   ;;  %s8069_s6 = inlined_call_operand.vmem [shape: f32[1,128], index: 6, kind: input, shape index: {}]   ;;  %s8070_s7 = inlined_call_operand.hbm [shape: f32[128,128], index: 7, kind: output, shape index: {}]  }
   0x1   :  { %13 = vsyncpa [#allocation8], 0 }
   0x2   :  { %14 = vsyncpa [#allocation6], 0  ;;  %s6761_s24 = smov [#allocation4]  }
   0x3   :  { %s22_s25 = sshll.u32 %s6761_s24, 4  ;;  %s23_s25 = int_to_ptr.vmem [resolvable:$true] %s22_s25 }
   0x4   :  { %s6703_s26 = scalar_lea.vmem %s23_s25, 25088  ;;  %p6708_p1 = scmp.lt.s32.totalorder %s23_s25, %s23_s25 }
   0x5   :  { %p6704_p0 = scmp.ne.s32.totalorder %s23_s25, %s6703_s26  ;;  %p6709_p2 = scmp.lt.s32.totalorder %s6703_s26, %s6703_s26 }
   0x7   :  { %p6710_p3 = por %p6709_p2, %p6708_p1 }
   0x9   :  { %p6711_p4 = pnand %p6710_p3, %p6704_p0 }
   0xb   :  { %6714 = shalt.err (!%p6711_p4)
}
   0xc   :  { %s6762_s27 = smov 256   ;;  %s6763_s28 = smov 16  }
   0xd   :  { %28 = dma.hbm_to_vmem [thread:$0]  %s8064_s1, 25088, %s23_s25, [#allocation5], %s6762_s27, %s6762_s27, %s6763_s28  }
   0xe   :  { %s6764_s8 = smov [#allocation7]  }
   0xf   :  { %s36_s9 = sshll.u32 %s6764_s8, 4  ;;  %s37_s9 = int_to_ptr.vmem [resolvable:$true] %s36_s9 }
  0x10   :  { %s6723_s10 = scalar_lea.vmem %s37_s9, 16384  ;;  %p6728_p6 = scmp.lt.s32.totalorder %s37_s9, %s37_s9 }
  0x11   :  { %p6724_p5 = scmp.ne.s32.totalorder %s37_s9, %s6723_s10  ;;  %p6729_p7 = scmp.lt.s32.totalorder %s6723_s10, %s6723_s10 }
  0x13   :  { %p6730_p8 = por %p6729_p7, %p6728_p6 }
  0x15   :  { %p6731_p9 = pnand %p6730_p8, %p6724_p5 }
  0x17   :  { %6734 = shalt.err (!%p6731_p9)
}
  0x18   :  { %42 = dma.hbm_to_vmem [thread:$0]  %s8066_s3, 16384, %s37_s9, [#allocation8], %s6762_s27, %s6762_s27, %s6763_s28  }
  0x19   :  { %6755 = dma.done.wait [#allocation5], 25088  }
  0x1a   :  { %6756 = vsyncadd [#allocation5], 4294942208 }
  0x1b   :  { %6757 = dma.done.wait [#allocation8], 16384  }
  0x1c   :  { %6758 = vsyncadd [#allocation8], 4294950912  ;;  %v6041_v0 = vld [vmem:[#allocation4 + $0xe4] ss:$16 sps:$4 sm:$0xff]   ;;  %v6045_v2 = vld [vmem:[#allocation4 + $0xe0] ss:$16 sps:$4 sm:$0xff]  }
  0x1d   :  { %v6043_v1 = vld [vmem:[#allocation4 + $0x2e4] ss:$16 sps:$4 sm:$0xff]   ;;  %1623 = vmatprep.subr.bf16.mxu0 %v6041_v0  ;;  %v6046_v3 = vld [vmem:[#allocation4 + $0x2e0] ss:$16 sps:$4 sm:$0xff]   ;;  %v6142_v51 = vld [vmem:[%s8063_s0 + $0xc] ss:$28 sps:$4 sm:$0xff]  }
  0x1e   :  { %1736 = vmatprep.subr.bf16.mxu1 %v6043_v1  ;;  %v6047_v4 = vld [vmem:[#allocation4 + $0xc4] ss:$16 sps:$4 sm:$0xff]   ;;  %1624 = vmatpush1.bf16.msra.mxu0 %v6045_v2  ;;  %v6051_v6 = vld [vmem:[#allocation4 + $0xc0] ss:$16 sps:$4 sm:$0xff]   ;;  %vm1598_vm0 = vcmask 130048  }
  0x1f   :  { %1737 = vmatpush1.bf16.msra.mxu1 %v6046_v3  ;;  %v6049_v5 = vld [vmem:[#allocation4 + $0x2c4] ss:$16 sps:$4 sm:$0xff]   ;;  %1625 = vmatprep.subr.bf16.mxu0 %v6047_v4  ;;  %v6052_v7 = vld [vmem:[#allocation4 + $0x2c0] ss:$16 sps:$4 sm:$0xff]  }
  0x20   :  { %1738 = vmatprep.subr.bf16.mxu1 %v6049_v5  ;;  %v6053_v8 = vld [vmem:[#allocation4 + $0xa4] ss:$16 sps:$4 sm:$0xff]   ;;  %v6057_v10 = vld [vmem:[#allocation4 + $0xa0] ss:$16 sps:$4 sm:$0xff]   ;;  %1768 = vmatprep.mubr.bf16.mxu1 %v6142_v51  ;;  %v6214_v51 = vld [vmem:[%s8063_s0 + $0x15c] ss:$28 sps:$4 sm:$0xff]  }
  0x21   :  { %v6055_v9 = vld [vmem:[#allocation4 + $0x2a4] ss:$16 sps:$4 sm:$0xff]   ;;  %v6058_v11 = vld [vmem:[#allocation4 + $0x2a0] ss:$16 sps:$4 sm:$0xff]  }
  0x22   :  { %1626 = vmatpush1.bf16.msra.mxu0 %v6051_v6  ;;  %v6059_v12 = vld [vmem:[#allocation4 + $0x84] ss:$16 sps:$4 sm:$0xff]   ;;  %v6063_v14 = vld [vmem:[#allocation4 + $0x80] ss:$16 sps:$4 sm:$0xff]  }
  0x23   :  { %1739 = vmatpush1.bf16.msra.mxu1 %v6052_v7  ;;  %1627 = vmatprep.subr.bf16.mxu0 %v6053_v8  ;;  %v6061_v13 = vld [vmem:[#allocation4 + $0x284] ss:$16 sps:$4 sm:$0xff]   ;;  %v6064_v15 = vld [vmem:[#allocation4 + $0x280] ss:$16 sps:$4 sm:$0xff]  }
  0x24   :  { %1740 = vmatprep.subr.bf16.mxu1 %v6055_v9  ;;  %v6065_v16 = vld [vmem:[#allocation4 + $0x64] ss:$16 sps:$4 sm:$0xff]   ;;  %v6069_v18 = vld [vmem:[#allocation4 + $0x60] ss:$16 sps:$4 sm:$0xff]   ;;  %v6152_v9 = vld [vmem:[%s8063_s0 + $0x3c] ss:$28 sps:$4 sm:$0xff]  }
  0x25   :  { %v6067_v17 = vld [vmem:[#allocation4 + $0x264] ss:$16 sps:$4 sm:$0xff]   ;;  %v6070_v19 = vld [vmem:[#allocation4 + $0x260] ss:$16 sps:$4 sm:$0xff]  }
  0x26   :  { %1628 = vmatpush1.bf16.msra.mxu0 %v6057_v10  ;;  %v6071_v20 = vld [vmem:[#allocation4 + $0x44] ss:$16 sps:$4 sm:$0xff]   ;;  %v6075_v22 = vld [vmem:[#allocation4 + $0x40] ss:$16 sps:$4 sm:$0xff]  }
  0x27   :  { %1741 = vmatpush1.bf16.msra.mxu1 %v6058_v11  ;;  %1629 = vmatprep.subr.bf16.mxu0 %v6059_v12  ;;  %v6073_v21 = vld [vmem:[#allocation4 + $0x244] ss:$16 sps:$4 sm:$0xff]   ;;  %v6076_v23 = vld [vmem:[#allocation4 + $0x240] ss:$16 sps:$4 sm:$0xff]  }
  0x28   :  { %1742 = vmatprep.subr.bf16.mxu1 %v6061_v13  ;;  %v6077_v24 = vld [vmem:[#allocation4 + $0x24] ss:$16 sps:$4 sm:$0xff]   ;;  %v6081_v26 = vld [vmem:[#allocation4 + $0x20] ss:$16 sps:$4 sm:$0xff]  }
  0x29   :  { %v6079_v25 = vld [vmem:[#allocation4 + $0x224] ss:$16 sps:$4 sm:$0xff]   ;;  %v6082_v27 = vld [vmem:[#allocation4 + $0x220] ss:$16 sps:$4 sm:$0xff]  }
  0x2a   :  { %1630 = vmatpush1.bf16.msra.mxu0 %v6063_v14  ;;  %v6083_v28 = vld [vmem:[#allocation4 + $0x4] ss:$16 sps:$4 sm:$0xff]   ;;  %v6087_v30 = vld [vmem:[#allocation4] ss:$16 sps:$4 sm:$0xff]  }
  0x2b   :  { %1743 = vmatpush1.bf16.msra.mxu1 %v6064_v15  ;;  %1631 = vmatprep.subr.bf16.mxu0 %v6065_v16  ;;  %v6085_v29 = vld [vmem:[#allocation4 + $0x204] ss:$16 sps:$4 sm:$0xff]   ;;  %v6088_v31 = vld [vmem:[#allocation4 + $0x200] ss:$16 sps:$4 sm:$0xff]  }
  0x2c   :  { %1744 = vmatprep.subr.bf16.mxu1 %v6067_v17  ;;  %v6089_v32 = vld [vmem:[#allocation4 + $0x1e4] ss:$16 sps:$4 sm:$0xff]   ;;  %v6093_v34 = vld [vmem:[#allocation4 + $0x1e0] ss:$16 sps:$4 sm:$0xff]  }
  0x2d   :  { %v6091_v33 = vld [vmem:[#allocation4 + $0x3e4] ss:$16 sps:$4 sm:$0xff]   ;;  %v6094_v35 = vld [vmem:[#allocation4 + $0x3e0] ss:$16 sps:$4 sm:$0xff]  }
  0x2e   :  { %1632 = vmatpush1.bf16.msra.mxu0 %v6069_v18  ;;  %v6095_v36 = vld [vmem:[#allocation4 + $0x1c4] ss:$16 sps:$4 sm:$0xff]   ;;  %v6099_v38 = vld [vmem:[#allocation4 + $0x1c0] ss:$16 sps:$4 sm:$0xff]   ;;  %v6166_v18 = vld [vmem:[%s8063_s0 + $0x7c] ss:$28 sps:$4 sm:$0xff]  }
  0x2f   :  { %1745 = vmatpush1.bf16.msra.mxu1 %v6070_v19  ;;  %1633 = vmatprep.subr.bf16.mxu0 %v6071_v20  ;;  %v6097_v37 = vld [vmem:[#allocation4 + $0x3c4] ss:$16 sps:$4 sm:$0xff]   ;;  %v6100_v39 = vld [vmem:[#allocation4 + $0x3c0] ss:$16 sps:$4 sm:$0xff]  }
  0x30   :  { %1746 = vmatprep.subr.bf16.mxu1 %v6073_v21  ;;  %v6101_v40 = vld [vmem:[#allocation4 + $0x1a4] ss:$16 sps:$4 sm:$0xff]   ;;  %v6105_v42 = vld [vmem:[#allocation4 + $0x1a0] ss:$16 sps:$4 sm:$0xff]  }
  0x31   :  { %v6103_v41 = vld [vmem:[#allocation4 + $0x3a4] ss:$16 sps:$4 sm:$0xff]   ;;  %v6106_v43 = vld [vmem:[#allocation4 + $0x3a0] ss:$16 sps:$4 sm:$0xff]  }
  0x32   :  { %1634 = vmatpush1.bf16.msra.mxu0 %v6075_v22  ;;  %v6107_v44 = vld [vmem:[#allocation4 + $0x184] ss:$16 sps:$4 sm:$0xff]   ;;  %v6111_v46 = vld [vmem:[#allocation4 + $0x180] ss:$16 sps:$4 sm:$0xff]  }
  0x33   :  { %1747 = vmatpush1.bf16.msra.mxu1 %v6076_v23  ;;  %1635 = vmatprep.subr.bf16.mxu0 %v6077_v24  ;;  %v6109_v45 = vld [vmem:[#allocation4 + $0x384] ss:$16 sps:$4 sm:$0xff]   ;;  %v6112_v47 = vld [vmem:[#allocation4 + $0x380] ss:$16 sps:$4 sm:$0xff]  }
  0x34   :  { %1748 = vmatprep.subr.bf16.mxu1 %v6079_v25  ;;  %v6113_v48 = vld [vmem:[#allocation4 + $0x164] ss:$16 sps:$4 sm:$0xff]   ;;  %v6117_v52 = vld [vmem:[#allocation4 + $0x160] ss:$16 sps:$4 sm:$0xff]   ;;  %v6176_v25 = vld [vmem:[%s8063_s0 + $0xac] ss:$28 sps:$4 sm:$0xff]  }
  0x35   :  { %v6139_v49 = vld [vmem:[%s8063_s0 + $0x4] ss:$28 sps:$4 sm:$0xff]   ;;  %v6156_v13 = vld [vmem:[%s8063_s0 + $0x38] ss:$28 sps:$4 sm:$0xff]   ;;  %v6168_v21 = vld [vmem:[%s8063_s0 + $0x70] ss:$28 sps:$4 sm:$0xff]  }
  0x36   :  { %1636 = vmatpush1.bf16.msra.mxu0 %v6081_v26  ;;  %v6115_v50 = vld [vmem:[#allocation4 + $0x364] ss:$16 sps:$4 sm:$0xff]   ;;  %1655 = vmatprep.mubr.bf16.mxu0 %v6139_v49  ;;  %v6118_v53 = vld [vmem:[#allocation4 + $0x360] ss:$16 sps:$4 sm:$0xff]  }
  0x37   :  { %1749 = vmatpush1.bf16.msra.mxu1 %v6082_v27  ;;  %1637 = vmatprep.subr.bf16.mxu0 %v6083_v28  ;;  %v6119_v54 = vld [vmem:[#allocation4 + $0x144] ss:$16 sps:$4 sm:$0xff]   ;;  %v6123_v56 = vld [vmem:[#allocation4 + $0x140] ss:$16 sps:$4 sm:$0xff]  }
  0x38   :  { %1750 = vmatprep.subr.bf16.mxu1 %v6085_v29  ;;  %v6121_v55 = vld [vmem:[#allocation4 + $0x344] ss:$16 sps:$4 sm:$0xff]   ;;  %v6124_v57 = vld [vmem:[#allocation4 + $0x340] ss:$16 sps:$4 sm:$0xff]  }
  0x39   :  { %v6125_v58 = vld [vmem:[#allocation4 + $0x124] ss:$16 sps:$4 sm:$0xff]   ;;  %v6129_v60 = vld [vmem:[#allocation4 + $0x120] ss:$16 sps:$4 sm:$0xff]  }
  0x3a   :  { %1638 = vmatpush1.bf16.msra.mxu0 %v6087_v30  ;;  %v6127_v59 = vld [vmem:[#allocation4 + $0x324] ss:$16 sps:$4 sm:$0xff]   ;;  %v6130_v61 = vld [vmem:[#allocation4 + $0x320] ss:$16 sps:$4 sm:$0xff]  }
  0x3b   :  { %1751 = vmatpush1.bf16.msra.mxu1 %v6088_v31  ;;  %1639 = vmatprep.subr.bf16.mxu0 %v6089_v32  ;;  %v6131_v62 = vld [vmem:[#allocation4 + $0x104] ss:$16 sps:$4 sm:$0xff]   ;;  %v6135_v0 = vld [vmem:[#allocation4 + $0x100] ss:$16 sps:$4 sm:$0xff]  }
  0x3c   :  { %1752 = vmatprep.subr.bf16.mxu1 %v6091_v33  ;;  %v6133_v63 = vld [vmem:[#allocation4 + $0x304] ss:$16 sps:$4 sm:$0xff]   ;;  %v6136_v1 = vld [vmem:[#allocation4 + $0x300] ss:$16 sps:$4 sm:$0xff]  }
  0x3d   :  { %v6145_v2 = vld [vmem:[#allocation4 + $0x4e4] ss:$16 sps:$4 sm:$0xff]   ;;  %v6137_v4 = vld [vmem:[%s8063_s0] ss:$28 sps:$4 sm:$0xff]   ;;  %v6181_v30 = vld [vmem:[%s8063_s0 + $0xb0] ss:$28 sps:$4 sm:$0xff]  }
  0x3e   :  { %1640 = vmatpush2.bf16.msra.mxu0 %v6093_v34  ;;  %v6148_v3 = vld [vmem:[#allocation4 + $0x604] ss:$16 sps:$4 sm:$0xff]   ;;  %v6143_v6 = vld [vmem:[#allocation4 + $0x4e0] ss:$16 sps:$4 sm:$0xff]   ;;  %v6190_v34 = vld [vmem:[%s8063_s0 + $0xec] ss:$28 sps:$4 sm:$0xff]  }
  0x3f   :  { %1753 = vmatpush2.bf16.msra.mxu1 %v6094_v35  ;;  %1641 = vmatprep.subr.bf16.mxu0 %v6095_v36  ;;  %v6140_v5 = vld [vmem:[%s8063_s0 + $0x8] ss:$28 sps:$4 sm:$0xff]   ;;  %v6146_v7 = vld [vmem:[#allocation4 + $0x600] ss:$16 sps:$4 sm:$0xff]   ;;  %v6169_v22 = vld [vmem:[%s8063_s0 + $0x78] ss:$28 sps:$4 sm:$0xff]  }
  0x40   :  { %1754 = vmatprep.subr.bf16.mxu1 %v6097_v37  ;;  %v6151_v8 = vld [vmem:[#allocation4 + $0x4c4] ss:$16 sps:$4 sm:$0xff]   ;;  %v6149_v11 = vld [vmem:[#allocation4 + $0x4c0] ss:$16 sps:$4 sm:$0xff]   ;;  %v6245_v35 = vld [vmem:[#allocation4 + $0x2ec] ss:$16 sps:$4 sm:$0xff]  }
  0x41   :  { %v6154_v10 = vld [vmem:[%s8063_s0 + $0x44] ss:$28 sps:$4 sm:$0xff]   ;;  %v6164_v17 = vld [vmem:[%s8063_s0 + $0x74] ss:$28 sps:$4 sm:$0xff]  }
  0x42   :  { %1642 = vmatpush2.bf16.msra.mxu0 %v6099_v38  ;;  %v6160_v12 = vld [vmem:[#allocation4 + $0x4a4] ss:$16 sps:$4 sm:$0xff]   ;;  %v6157_v14 = vld [vmem:[%s8063_s0 + $0x40] ss:$28 sps:$4 sm:$0xff]  }
  0x43   :  { %1755 = vmatpush2.bf16.msra.mxu1 %v6100_v39  ;;  %1643 = vmatprep.subr.bf16.mxu0 %v6101_v40  ;;  %v6158_v15 = vld [vmem:[#allocation4 + $0x4a0] ss:$16 sps:$4 sm:$0xff]   ;;  %v6163_v16 = vld [vmem:[#allocation4 + $0x484] ss:$16 sps:$4 sm:$0xff]  }
  0x44   :  { %1756 = vmatprep.subr.bf16.mxu1 %v6103_v41  ;;  %v6161_v19 = vld [vmem:[#allocation4 + $0x480] ss:$16 sps:$4 sm:$0xff]   ;;  %v6172_v20 = vld [vmem:[#allocation4 + $0x464] ss:$16 sps:$4 sm:$0xff]   ;;  %v6200_v41 = vld [vmem:[%s8063_s0 + $0x11c] ss:$28 sps:$4 sm:$0xff]  }
  0x45   :  { %v6170_v23 = vld [vmem:[#allocation4 + $0x460] ss:$16 sps:$4 sm:$0xff]   ;;  %v6175_v24 = vld [vmem:[#allocation4 + $0x444] ss:$16 sps:$4 sm:$0xff]  }
  0x46   :  { %1644 = vmatpush2.bf16.msra.mxu0 %v6105_v42  ;;  %v6178_v26 = vld [vmem:[%s8063_s0 + $0xb4] ss:$28 sps:$4 sm:$0xff]   ;;  %v6180_v29 = vld [vmem:[%s8063_s0 + $0xa8] ss:$28 sps:$4 sm:$0xff]   ;;  %v6192_v38 = vld [vmem:[%s8063_s0 + $0xe0] ss:$28 sps:$4 sm:$0xff]  }
  0x47   :  { %1757 = vmatpush2.bf16.msra.mxu1 %v6106_v43  ;;  %1645 = vmatprep.subr.bf16.mxu0 %v6107_v44  ;;  %v6173_v27 = vld [vmem:[#allocation4 + $0x440] ss:$16 sps:$4 sm:$0xff]   ;;  %v6184_v28 = vld [vmem:[#allocation4 + $0x424] ss:$16 sps:$4 sm:$0xff]  }
  0x48   :  { %1758 = vmatprep.subr.bf16.mxu1 %v6109_v45  ;;  %v6182_v31 = vld [vmem:[#allocation4 + $0x420] ss:$16 sps:$4 sm:$0xff]   ;;  %v6187_v32 = vld [vmem:[#allocation4 + $0x404] ss:$16 sps:$4 sm:$0xff]  }
  0x49   :  { %v6188_v33 = vld [vmem:[%s8063_s0 + $0xe4] ss:$28 sps:$4 sm:$0xff]   ;;  %v6204_v45 = vld [vmem:[%s8063_s0 + $0x118] ss:$28 sps:$4 sm:$0xff]  }
  0x4a   :  { %1646 = vmatpush2.bf16.msra.mxu0 %v6111_v46  ;;  %v6185_v36 = vld [vmem:[#allocation4 + $0x400] ss:$16 sps:$4 sm:$0xff]   ;;  %v6196_v37 = vld [vmem:[#allocation4 + $0x5e4] ss:$16 sps:$4 sm:$0xff]  }
  0x4b   :  { %1759 = vmatpush2.bf16.msra.mxu1 %v6112_v47  ;;  %1647 = vmatprep.subr.bf16.mxu0 %v6113_v48  ;;  %v6193_v39 = vld [vmem:[%s8063_s0 + $0xe8] ss:$28 sps:$4 sm:$0xff]   ;;  %v6194_v40 = vld [vmem:[#allocation4 + $0x5e0] ss:$16 sps:$4 sm:$0xff]  }
  0x4c   :  { %1760 = vmatprep.subr.bf16.mxu1 %v6115_v50  ;;  %v6199_v42 = vld [vmem:[#allocation4 + $0x5c4] ss:$16 sps:$4 sm:$0xff]   ;;  %v6197_v44 = vld [vmem:[#allocation4 + $0x5c0] ss:$16 sps:$4 sm:$0xff]  }
  0x4d   :  { %v6202_v43 = vld [vmem:[%s8063_s0 + $0x124] ss:$28 sps:$4 sm:$0xff]   ;;  %v6212_v49 = vld [vmem:[%s8063_s0 + $0x154] ss:$28 sps:$4 sm:$0xff]  }
  0x4e   :  { %1648 = vmatpush2.bf16.msra.mxu0 %v6117_v52  ;;  %v6208_v46 = vld [vmem:[#allocation4 + $0x5a4] ss:$16 sps:$4 sm:$0xff]   ;;  %v6205_v47 = vld [vmem:[%s8063_s0 + $0x120] ss:$28 sps:$4 sm:$0xff]  }
  0x4f   :  { %1761 = vmatpush2.bf16.msra.mxu1 %v6118_v53  ;;  %1649 = vmatprep.subr.bf16.mxu0 %v6119_v54  ;;  %v6206_v48 = vld [vmem:[#allocation4 + $0x5a0] ss:$16 sps:$4 sm:$0xff]   ;;  %v6211_v50 = vld [vmem:[#allocation4 + $0x584] ss:$16 sps:$4 sm:$0xff]  }
  0x50   :  { %1762 = vmatprep.subr.bf16.mxu1 %v6121_v55  ;;  %v6209_v52 = vld [vmem:[#allocation4 + $0x580] ss:$16 sps:$4 sm:$0xff]   ;;  %v6220_v54 = vld [vmem:[#allocation4 + $0x564] ss:$16 sps:$4 sm:$0xff]  }
  0x51   :  { %v6216_v53 = vld [vmem:[%s8063_s0 + $0x150] ss:$28 sps:$4 sm:$0xff]   ;;  %v6217_v55 = vld [vmem:[%s8063_s0 + $0x158] ss:$28 sps:$4 sm:$0xff]  }
  0x52   :  { %1650 = vmatpush2.bf16.msra.mxu0 %v6123_v56  ;;  %v6218_v56 = vld [vmem:[#allocation4 + $0x560] ss:$16 sps:$4 sm:$0xff]  }
  0x53   :  { %1763 = vmatpush2.bf16.msra.mxu1 %v6124_v57  ;;  %1651 = vmatprep.subr.bf16.mxu0 %v6125_v58  ;;  %v6223_v57 = vld [vmem:[#allocation4 + $0x544] ss:$16 sps:$4 sm:$0xff]   ;;  %v6224_v58 = vld [vmem:[%s8063_s0 + $0x18c] ss:$28 sps:$4 sm:$0xff]  }
  0x54   :  { %1764 = vmatprep.subr.bf16.mxu1 %v6127_v59  ;;  %v6226_v59 = vld [vmem:[%s8063_s0 + $0x194] ss:$28 sps:$4 sm:$0xff]  }
  0x56   :  { %1652 = vmatpush2.bf16.msra.mxu0 %v6129_v60  ;;  %v6221_v60 = vld [vmem:[#allocation4 + $0x540] ss:$16 sps:$4 sm:$0xff]  }
  0x57   :  { %1765 = vmatpush2.bf16.msra.mxu1 %v6130_v61  ;;  %1653 = vmatprep.subr.bf16.mxu0 %v6131_v62  ;;  %v6232_v61 = vld [vmem:[#allocation4 + $0x524] ss:$16 sps:$4 sm:$0xff]  }
  0x58   :  { %1766 = vmatprep.subr.bf16.mxu1 %v6133_v63  ;;  %v6228_v62 = vld [vmem:[%s8063_s0 + $0x188] ss:$28 sps:$4 sm:$0xff]   ;;  %v6229_v63 = vld [vmem:[%s8063_s0 + $0x190] ss:$28 sps:$4 sm:$0xff]  }
  0x5a   :  { %1654 = vmatpush2.bf16.msra.mxu0 %v6135_v0  ;;  %v6230_v0 = vld [vmem:[#allocation4 + $0x520] ss:$16 sps:$4 sm:$0xff]  }
  0x5b   :  { %1767 = vmatpush2.bf16.msra.mxu1 %v6136_v1  ;;  %1849 = vmatprep.subr.bf16.mxu0 %v6145_v2  ;;  %v6238_v1 = vld [vmem:[%s8063_s0 + $0x14] ss:$28 sps:$4 sm:$0xff]  }
  0x5c   :  { %1976 = vmatprep.subr.bf16.mxu1 %v6148_v3  ;;  %v6235_v2 = vld [vmem:[#allocation4 + $0x504] ss:$16 sps:$4 sm:$0xff]   ;;  %v6233_v3 = vld [vmem:[#allocation4 + $0x500] ss:$16 sps:$4 sm:$0xff]  }
  0x5d   :  { %1656 = vmatmul.mubr.bf16.vlgmr.msra.gmra.mxu0 %v6137_v4  ;;  %v6765_v4 = vmov 0  }
  0x5e   :  { %1769 = vmatmul.mubr.bf16.vlgmr.msra.gmra.mxu1 %v6140_v5  ;;  %1850 = vmatpush1.bf16.msra.mxu0 %v6143_v6  ;;  %v6242_v5 = vld [vmem:[#allocation4 + $0xec] ss:$16 sps:$4 sm:$0xff]  }
  0x5f   :  { %1977 = vmatpush1.bf16.msra.mxu1 %v6146_v7  ;;  %1851 = vmatprep.subr.bf16.mxu0 %v6151_v8  ;;  %v6236_v6 = vld [vmem:[%s8063_s0 + $0x10] ss:$28 sps:$4 sm:$0xff]   ;;  %v6239_v7 = vld [vmem:[%s8063_s0 + $0x18] ss:$28 sps:$4 sm:$0xff]  }
  0x60   :  { %1665 = vmatprep.mubr.bf16.mxu0 %v6152_v9  ;;  %1778 = vmatprep.mubr.bf16.mxu1 %v6154_v10  ;;  %v6240_v8 = vld [vmem:[#allocation4 + $0xe8] ss:$16 sps:$4 sm:$0xff]   ;;  %v6248_v10 = vld [vmem:[#allocation4 + $0xcc] ss:$16 sps:$4 sm:$0xff]  }
  0x61   :  { %2188 = vmatprep.subr.bf16.mxu1 %v6245_v35  ;;  %v6243_v9 = vld [vmem:[#allocation4 + $0x2e8] ss:$16 sps:$4 sm:$0xff]  }
  0x62   :  { %1852 = vmatpush1.bf16.msra.mxu0 %v6149_v11  ;;  %v6251_v11 = vld [vmem:[#allocation4 + $0x2cc] ss:$16 sps:$4 sm:$0xff]   ;;  %v6278_v35 = vld [vmem:[#allocation4 + $0x48] ss:$16 sps:$4 sm:$0xff]  }
  0x63   :  { %1853 = vmatprep.subr.bf16.mxu0 %v6160_v12  ;;  %v6252_v12 = vld [vmem:[%s8063_s0 + $0x4c] ss:$28 sps:$4 sm:$0xff]  }
  0x65   :  { %1666 = vmatmul.mubr.bf16.gmra.mxu0 %v6156_v13  ;;  %v6246_v13 = vld [vmem:[#allocation4 + $0xc8] ss:$16 sps:$4 sm:$0xff]  }
  0x66   :  { %1779 = vmatmul.mubr.bf16.gmra.mxu1 %v6157_v14  ;;  %1854 = vmatpush1.bf16.msra.mxu0 %v6158_v15  ;;  %v6249_v14 = vld [vmem:[#allocation4 + $0x2c8] ss:$16 sps:$4 sm:$0xff]  }
  0x67   :  { %1675 = vmatprep.mubr.bf16.mxu0 %v6164_v17  ;;  %1855 = vmatprep.subr.bf16.mxu0 %v6163_v16  ;;  %v6254_v15 = vld [vmem:[%s8063_s0 + $0x48] ss:$28 sps:$4 sm:$0xff]   ;;  %v6258_v16 = vld [vmem:[#allocation4 + $0xac] ss:$16 sps:$4 sm:$0xff]  }
  0x68   :  { %1788 = vmatprep.mubr.bf16.mxu1 %v6166_v18  ;;  %v6261_v17 = vld [vmem:[#allocation4 + $0x2ac] ss:$16 sps:$4 sm:$0xff]  }
  0x69   :  { %v6255_v18 = vld [vmem:[%s8063_s0 + $0x50] ss:$28 sps:$4 sm:$0xff]  }
  0x6a   :  { %1856 = vmatpush1.bf16.msra.mxu0 %v6161_v19  ;;  %v6256_v19 = vld [vmem:[#allocation4 + $0xa8] ss:$16 sps:$4 sm:$0xff]  }
  0x6b   :  { %1857 = vmatprep.subr.bf16.mxu0 %v6172_v20  ;;  %v6259_v20 = vld [vmem:[#allocation4 + $0x2a8] ss:$16 sps:$4 sm:$0xff]  }
  0x6d   :  { %1676 = vmatmul.mubr.bf16.gmra.mxu0 %v6168_v21  ;;  %v6264_v21 = vld [vmem:[#allocation4 + $0x8c] ss:$16 sps:$4 sm:$0xff]  }
  0x6e   :  { %1789 = vmatmul.mubr.bf16.gmra.mxu1 %v6169_v22  ;;  %1858 = vmatpush1.bf16.msra.mxu0 %v6170_v23  ;;  %v6267_v22 = vld [vmem:[#allocation4 + $0x28c] ss:$16 sps:$4 sm:$0xff]   ;;  %v6268_v23 = vld [vmem:[%s8063_s0 + $0x84] ss:$28 sps:$4 sm:$0xff]  }
  0x6f   :  { %1685 = vmatprep.mubr.bf16.mxu0 %v6176_v25  ;;  %1859 = vmatprep.subr.bf16.mxu0 %v6175_v24  ;;  %v6262_v24 = vld [vmem:[#allocation4 + $0x88] ss:$16 sps:$4 sm:$0xff]  }
  0x70   :  { %1798 = vmatprep.mubr.bf16.mxu1 %v6178_v26  ;;  %v6265_v25 = vld [vmem:[#allocation4 + $0x288] ss:$16 sps:$4 sm:$0xff]   ;;  %v6270_v26 = vld [vmem:[%s8063_s0 + $0x80] ss:$28 sps:$4 sm:$0xff]  }
  0x72   :  { %1860 = vmatpush1.bf16.msra.mxu0 %v6173_v27  ;;  %v6274_v27 = vld [vmem:[#allocation4 + $0x6c] ss:$16 sps:$4 sm:$0xff]  }
  0x73   :  { %1861 = vmatprep.subr.bf16.mxu0 %v6184_v28  ;;  %v6277_v28 = vld [vmem:[#allocation4 + $0x26c] ss:$16 sps:$4 sm:$0xff]  }
  0x75   :  { %1686 = vmatmul.mubr.bf16.gmra.mxu0 %v6180_v29  ;;  %v6271_v29 = vld [vmem:[%s8063_s0 + $0x88] ss:$28 sps:$4 sm:$0xff]  }
  0x76   :  { %1799 = vmatmul.mubr.bf16.gmra.mxu1 %v6181_v30  ;;  %1862 = vmatpush1.bf16.msra.mxu0 %v6182_v31  ;;  %v6272_v30 = vld [vmem:[#allocation4 + $0x68] ss:$16 sps:$4 sm:$0xff]  }
  0x77   :  { %1695 = vmatprep.mubr.bf16.mxu0 %v6188_v33  ;;  %1863 = vmatprep.subr.bf16.mxu0 %v6187_v32  ;;  %v6275_v31 = vld [vmem:[#allocation4 + $0x268] ss:$16 sps:$4 sm:$0xff]   ;;  %v6280_v32 = vld [vmem:[#allocation4 + $0x4c] ss:$16 sps:$4 sm:$0xff]  }
  0x78   :  { %1808 = vmatprep.mubr.bf16.mxu1 %v6190_v34  ;;  %v6283_v33 = vld [vmem:[#allocation4 + $0x24c] ss:$16 sps:$4 sm:$0xff]  }
  0x79   :  { %v6284_v34 = vld [vmem:[%s8063_s0 + $0xbc] ss:$28 sps:$4 sm:$0xff]  }
  0x7a   :  { %1864 = vmatpush1.bf16.msra.mxu0 %v6185_v36  ;;  %v6281_v36 = vld [vmem:[#allocation4 + $0x248] ss:$16 sps:$4 sm:$0xff]  }
  0x7b   :  { %1865 = vmatprep.subr.bf16.mxu0 %v6196_v37  ;;  %v6290_v37 = vld [vmem:[#allocation4 + $0x2c] ss:$16 sps:$4 sm:$0xff]  }
  0x7d   :  { %1696 = vmatmul.mubr.bf16.gmra.mxu0 %v6192_v38  ;;  %v6293_v38 = vld [vmem:[#allocation4 + $0x22c] ss:$16 sps:$4 sm:$0xff]  }
  0x7e   :  { %1809 = vmatmul.mubr.bf16.gmra.mxu1 %v6193_v39  ;;  %1866 = vmatpush2.bf16.msra.mxu0 %v6194_v40  ;;  %v6286_v39 = vld [vmem:[%s8063_s0 + $0xb8] ss:$28 sps:$4 sm:$0xff]   ;;  %v6287_v40 = vld [vmem:[%s8063_s0 + $0xc0] ss:$28 sps:$4 sm:$0xff]  }
  0x7f   :  { %1705 = vmatprep.mubr.bf16.mxu0 %v6200_v41  ;;  %1867 = vmatprep.subr.bf16.mxu0 %v6199_v42  ;;  %v6288_v41 = vld [vmem:[#allocation4 + $0x28] ss:$16 sps:$4 sm:$0xff]  }
  0x80   :  { %1818 = vmatprep.mubr.bf16.mxu1 %v6202_v43  ;;  %v6291_v42 = vld [vmem:[#allocation4 + $0x228] ss:$16 sps:$4 sm:$0xff]   ;;  %v6296_v43 = vld [vmem:[#allocation4 + $0xc] ss:$16 sps:$4 sm:$0xff]  }
  0x82   :  { %1868 = vmatpush2.bf16.msra.mxu0 %v6197_v44  ;;  %v6299_v44 = vld [vmem:[#allocation4 + $0x20c] ss:$16 sps:$4 sm:$0xff]  }
  0x83   :  { %1869 = vmatprep.subr.bf16.mxu0 %v6208_v46  ;;  %v6294_v46 = vld [vmem:[#allocation4 + $0x8] ss:$16 sps:$4 sm:$0xff]  }
  0x85   :  { %1706 = vmatmul.mubr.bf16.gmra.mxu0 %v6204_v45  ;;  %v6300_v45 = vld [vmem:[%s8063_s0 + $0xf4] ss:$28 sps:$4 sm:$0xff]  }
  0x86   :  { %1819 = vmatmul.mubr.bf16.gmra.mxu1 %v6205_v47  ;;  %1870 = vmatpush2.bf16.msra.mxu0 %v6206_v48  ;;  %v6297_v47 = vld [vmem:[#allocation4 + $0x208] ss:$16 sps:$4 sm:$0xff]   ;;  %v6306_v48 = vld [vmem:[#allocation4 + $0x1ec] ss:$16 sps:$4 sm:$0xff]  }
  0x87   :  { %1715 = vmatprep.mubr.bf16.mxu0 %v6212_v49  ;;  %1871 = vmatprep.subr.bf16.mxu0 %v6211_v50  ;;  %v6309_v49 = vld [vmem:[#allocation4 + $0x3ec] ss:$16 sps:$4 sm:$0xff]  }
  0x88   :  { %1828 = vmatprep.mubr.bf16.mxu1 %v6214_v51  ;;  %v6302_v50 = vld [vmem:[%s8063_s0 + $0xf0] ss:$28 sps:$4 sm:$0xff]   ;;  %v6303_v51 = vld [vmem:[%s8063_s0 + $0xf8] ss:$28 sps:$4 sm:$0xff]  }
  0x8a   :  { %1872 = vmatpush2.bf16.msra.mxu0 %v6209_v52  ;;  %v6304_v52 = vld [vmem:[#allocation4 + $0x1e8] ss:$16 sps:$4 sm:$0xff]  }
  0x8b   :  { %1873 = vmatprep.subr.bf16.mxu0 %v6220_v54  ;;  %v6312_v54 = vld [vmem:[#allocation4 + $0x1cc] ss:$16 sps:$4 sm:$0xff]  }
  0x8d   :  { %1716 = vmatmul.mubr.bf16.gmra.mxu0 %v6216_v53  ;;  %v6307_v53 = vld [vmem:[#allocation4 + $0x3e8] ss:$16 sps:$4 sm:$0xff]  }
  0x8e   :  { %1829 = vmatmul.mubr.bf16.gmra.mxu1 %v6217_v55  ;;  %1874 = vmatpush2.bf16.msra.mxu0 %v6218_v56  ;;  %v6315_v55 = vld [vmem:[#allocation4 + $0x3cc] ss:$16 sps:$4 sm:$0xff]  }
  0x8f   :  { %1725 = vmatprep.mubr.bf16.mxu0 %v6224_v58  ;;  %1875 = vmatprep.subr.bf16.mxu0 %v6223_v57  ;;  %v6316_v56 = vld [vmem:[%s8063_s0 + $0x12c] ss:$28 sps:$4 sm:$0xff]  }
  0x90   :  { %1838 = vmatprep.mubr.bf16.mxu1 %v6226_v59  ;;  %v6310_v57 = vld [vmem:[#allocation4 + $0x1c8] ss:$16 sps:$4 sm:$0xff]   ;;  %v6322_v59 = vld [vmem:[#allocation4 + $0x1ac] ss:$16 sps:$4 sm:$0xff]  }
  0x91   :  { %v6313_v58 = vld [vmem:[#allocation4 + $0x3c8] ss:$16 sps:$4 sm:$0xff]  }
  0x92   :  { %1876 = vmatpush2.bf16.msra.mxu0 %v6221_v60  ;;  %v6325_v60 = vld [vmem:[#allocation4 + $0x3ac] ss:$16 sps:$4 sm:$0xff]  }
  0x93   :  { %1877 = vmatprep.subr.bf16.mxu0 %v6232_v61  ;;  %v6318_v61 = vld [vmem:[%s8063_s0 + $0x128] ss:$28 sps:$4 sm:$0xff]  }
  0x95   :  { %1726 = vmatmul.mubr.bf16.gmra.mxu0 %v6228_v62  ;;  %v6319_v62 = vld [vmem:[%s8063_s0 + $0x130] ss:$28 sps:$4 sm:$0xff]  }
  0x96   :  { %1839 = vmatmul.mubr.bf16.gmra.mxu1 %v6229_v63  ;;  %1878 = vmatpush2.bf16.msra.mxu0 %v6230_v0  ;;  %v6320_v63 = vld [vmem:[#allocation4 + $0x1a8] ss:$16 sps:$4 sm:$0xff]  }
  0x97   :  { %1881 = vmatprep.mubr.bf16.mxu0 %v6238_v1  ;;  %1879 = vmatprep.subr.bf16.mxu0 %v6235_v2  ;;  %v6323_v0 = vld [vmem:[#allocation4 + $0x3a8] ss:$16 sps:$4 sm:$0xff]   ;;  %v6328_v1 = vld [vmem:[#allocation4 + $0x18c] ss:$16 sps:$4 sm:$0xff]  }
  0x98   :  { %1994 = vmatprep.mubr.bf16.mxu1 %v6765_v4  ;;  %v6331_v2 = vld [vmem:[#allocation4 + $0x38c] ss:$16 sps:$4 sm:$0xff]  }
  0x9a   :  { %1880 = vmatpush2.bf16.msra.mxu0 %v6233_v3  ;;  %v6332_v3 = vld [vmem:[%s8063_s0 + $0x164] ss:$28 sps:$4 sm:$0xff]  }
  0x9b   :  { %2075 = vmatprep.subr.bf16.mxu0 %v6242_v5  ;;  %v6326_v5 = vld [vmem:[#allocation4 + $0x188] ss:$16 sps:$4 sm:$0xff]  }
  0x9d   :  { %1882 = vmatmul.mubr.bf16.vlgmr.msra.gmra.mxu0 %v6236_v6  ;;  %v6329_v6 = vld [vmem:[#allocation4 + $0x388] ss:$16 sps:$4 sm:$0xff]  }
  0x9e   :  { %5472 = vmatmul.mubr.msk.bf16.vlgmr.msra.gmra.mxu1 %vm1598_vm0, %v6239_v7  ;;  %2076 = vmatpush1.bf16.msra.mxu0 %v6240_v8  ;;  %v6338_v7 = vld [vmem:[#allocation4 + $0x16c] ss:$16 sps:$4 sm:$0xff]  }
  0x9f   :  { %2189 = vmatpush1.bf16.msra.mxu1 %v6243_v9  ;;  %2077 = vmatprep.subr.bf16.mxu0 %v6248_v10  ;;  %v6341_v8 = vld [vmem:[#allocation4 + $0x36c] ss:$16 sps:$4 sm:$0xff]   ;;  %v6335_v10 = vld [vmem:[%s8063_s0 + $0x168] ss:$28 sps:$4 sm:$0xff]  }
  0xa0   :  { %2190 = vmatprep.subr.bf16.mxu1 %v6251_v11  ;;  %1891 = vmatprep.mubr.bf16.mxu0 %v6252_v12  ;;  %v6334_v9 = vld [vmem:[%s8063_s0 + $0x160] ss:$28 sps:$4 sm:$0xff]   ;;  %v6336_v11 = vld [vmem:[#allocation4 + $0x168] ss:$16 sps:$4 sm:$0xff]  }
  0xa1   :  { %2004 = vmatprep.mubr.bf16.mxu1 %v6765_v4  ;;  %v6339_v12 = vld [vmem:[#allocation4 + $0x368] ss:$16 sps:$4 sm:$0xff]  }
  0xa2   :  { %2078 = vmatpush1.bf16.msra.mxu0 %v6246_v13  ;;  %v6344_v13 = vld [vmem:[#allocation4 + $0x14c] ss:$16 sps:$4 sm:$0xff]  }
  0xa3   :  { %2191 = vmatpush1.bf16.msra.mxu1 %v6249_v14  ;;  %2079 = vmatprep.subr.bf16.mxu0 %v6258_v16  ;;  %v6347_v14 = vld [vmem:[#allocation4 + $0x34c] ss:$16 sps:$4 sm:$0xff]   ;;  %v6342_v16 = vld [vmem:[#allocation4 + $0x148] ss:$16 sps:$4 sm:$0xff]  }
  0xa4   :  { %2192 = vmatprep.subr.bf16.mxu1 %v6261_v17  ;;  %v6345_v17 = vld [vmem:[#allocation4 + $0x348] ss:$16 sps:$4 sm:$0xff]  }
  0xa5   :  { %1892 = vmatmul.mubr.bf16.gmra.mxu0 %v6254_v15  ;;  %v6990_v15 = vld [vmem:[%s8063_s0 + $0x19c] ss:$28 sps:$4 sm:$0xff]  }
  0xa6   :  { %5473 = vmatmul.mubr.msk.bf16.gmra.mxu1 %vm1598_vm0, %v6255_v18  ;;  %2080 = vmatpush1.bf16.msra.mxu0 %v6256_v19  ;;  %v6350_v18 = vld [vmem:[%s8063_s0 + $0x198] ss:$28 sps:$4 sm:$0xff]   ;;  %v6354_v19 = vld [vmem:[#allocation4 + $0x12c] ss:$16 sps:$4 sm:$0xff]  }
  0xa7   :  { %2193 = vmatpush1.bf16.msra.mxu1 %v6259_v20  ;;  %2081 = vmatprep.subr.bf16.mxu0 %v6264_v21  ;;  %v6357_v20 = vld [vmem:[#allocation4 + $0x32c] ss:$16 sps:$4 sm:$0xff]  }
  0xa8   :  { %2194 = vmatprep.subr.bf16.mxu1 %v6267_v22  ;;  %1901 = vmatprep.mubr.bf16.mxu0 %v6268_v23  ;;  %v6351_v21 = vld [vmem:[%s8063_s0 + $0x1a0] ss:$28 sps:$4 sm:$0xff]   ;;  %v6352_v22 = vld [vmem:[#allocation4 + $0x128] ss:$16 sps:$4 sm:$0xff]  }
  0xa9   :  { %2014 = vmatprep.mubr.bf16.mxu1 %v6765_v4  ;;  %v6355_v23 = vld [vmem:[#allocation4 + $0x328] ss:$16 sps:$4 sm:$0xff]  }
  0xaa   :  { %2082 = vmatpush1.bf16.msra.mxu0 %v6262_v24  ;;  %v6360_v24 = vld [vmem:[#allocation4 + $0x10c] ss:$16 sps:$4 sm:$0xff]  }
  0xab   :  { %2195 = vmatpush1.bf16.msra.mxu1 %v6265_v25  ;;  %2083 = vmatprep.subr.bf16.mxu0 %v6274_v27  ;;  %v6363_v25 = vld [vmem:[#allocation4 + $0x30c] ss:$16 sps:$4 sm:$0xff]   ;;  %v6361_v27 = vld [vmem:[#allocation4 + $0x308] ss:$16 sps:$4 sm:$0xff]  }
  0xac   :  { %2196 = vmatprep.subr.bf16.mxu1 %v6277_v28  ;;  %v6366_v28 = vld [vmem:[#allocation4 + $0x4ec] ss:$16 sps:$4 sm:$0xff]  }
  0xad   :  { %1902 = vmatmul.mubr.bf16.gmra.mxu0 %v6270_v26  ;;  %v6358_v26 = vld [vmem:[#allocation4 + $0x108] ss:$16 sps:$4 sm:$0xff]  }
  0xae   :  { %5474 = vmatmul.mubr.msk.bf16.gmra.mxu1 %vm1598_vm0, %v6271_v29  ;;  %2084 = vmatpush1.bf16.msra.mxu0 %v6272_v30  ;;  %v6369_v29 = vld [vmem:[#allocation4 + $0x60c] ss:$16 sps:$4 sm:$0xff]   ;;  %v6639_v30 = vld [vmem:[%s8063_s0 + $0x4] ss:$28 sps:$4 sm:$0xff]  }
  0xaf   :  { %2197 = vmatpush1.bf16.msra.mxu1 %v6275_v31  ;;  %2085 = vmatprep.subr.bf16.mxu0 %v6280_v32  ;;  %v6640_v31 = vld [vmem:[%s8063_s0 + $0xc] ss:$28 sps:$4 sm:$0xff]  }
  0xb0   :  { %2198 = vmatprep.subr.bf16.mxu1 %v6283_v33  ;;  %1911 = vmatprep.mubr.bf16.mxu0 %v6284_v34  ;;  %v6364_v32 = vld [vmem:[#allocation4 + $0x4e8] ss:$16 sps:$4 sm:$0xff]   ;;  %v6372_v34 = vld [vmem:[#allocation4 + $0x4cc] ss:$16 sps:$4 sm:$0xff]  }
  0xb1   :  { %2024 = vmatprep.mubr.bf16.mxu1 %v6765_v4  ;;  %v6367_v33 = vld [vmem:[#allocation4 + $0x608] ss:$16 sps:$4 sm:$0xff]  }
  0xb2   :  { %2086 = vmatpush1.bf16.msra.mxu0 %v6278_v35  ;;  %v6370_v35 = vld [vmem:[#allocation4 + $0x4c8] ss:$16 sps:$4 sm:$0xff]  }
  0xb3   :  { %2199 = vmatpush1.bf16.msra.mxu1 %v6281_v36  ;;  %2087 = vmatprep.subr.bf16.mxu0 %v6290_v37  ;;  %v6641_v36 = vld [vmem:[%s8063_s0] ss:$28 sps:$4 sm:$0xff]   ;;  %v6642_v37 = vld [vmem:[%s8063_s0 + $0x8] ss:$28 sps:$4 sm:$0xff]  }
  0xb4   :  { %2200 = vmatprep.subr.bf16.mxu1 %v6293_v38  ;;  %v6643_v38 = vld [vmem:[%s8063_s0 + $0x3c] ss:$28 sps:$4 sm:$0xff]  }
  0xb5   :  { %1912 = vmatmul.mubr.bf16.gmra.mxu0 %v6286_v39  ;;  %v6375_v39 = vld [vmem:[#allocation4 + $0x4ac] ss:$16 sps:$4 sm:$0xff]  }
  0xb6   :  { %5475 = vmatmul.mubr.msk.bf16.gmra.mxu1 %vm1598_vm0, %v6287_v40  ;;  %2088 = vmatpush1.bf16.msra.mxu0 %v6288_v41  ;;  %v6644_v40 = vld [vmem:[%s8063_s0 + $0x44] ss:$28 sps:$4 sm:$0xff]   ;;  %v6373_v41 = vld [vmem:[#allocation4 + $0x4a8] ss:$16 sps:$4 sm:$0xff]  }
  0xb7   :  { %2201 = vmatpush1.bf16.msra.mxu1 %v6291_v42  ;;  %2089 = vmatprep.subr.bf16.mxu0 %v6296_v43  ;;  %v6378_v42 = vld [vmem:[#allocation4 + $0x48c] ss:$16 sps:$4 sm:$0xff]   ;;  %v6376_v43 = vld [vmem:[#allocation4 + $0x488] ss:$16 sps:$4 sm:$0xff]  }
  0xb8   :  { %2202 = vmatprep.subr.bf16.mxu1 %v6299_v44  ;;  %1921 = vmatprep.mubr.bf16.mxu0 %v6300_v45  ;;  %v6645_v44 = vld [vmem:[%s8063_s0 + $0x38] ss:$28 sps:$4 sm:$0xff]   ;;  %v6646_v45 = vld [vmem:[%s8063_s0 + $0x40] ss:$28 sps:$4 sm:$0xff]  }
  0xb9   :  { %2034 = vmatprep.mubr.bf16.mxu1 %v6765_v4 }
  0xba   :  { %2090 = vmatpush1.bf16.msra.mxu0 %v6294_v46  ;;  %v6647_v46 = vld [vmem:[%s8063_s0 + $0x74] ss:$28 sps:$4 sm:$0xff]  }
  0xbb   :  { %2203 = vmatpush1.bf16.msra.mxu1 %v6297_v47  ;;  %2091 = vmatprep.subr.bf16.mxu0 %v6306_v48  ;;  %v6648_v47 = vld [vmem:[%s8063_s0 + $0x7c] ss:$28 sps:$4 sm:$0xff]  }
  0xbc   :  { %2204 = vmatprep.subr.bf16.mxu1 %v6309_v49  ;;  %v6381_v48 = vld [vmem:[#allocation4 + $0x46c] ss:$16 sps:$4 sm:$0xff]   ;;  %v6379_v49 = vld [vmem:[#allocation4 + $0x468] ss:$16 sps:$4 sm:$0xff]  }
  0xbd   :  { %1922 = vmatmul.mubr.bf16.gmra.mxu0 %v6302_v50  ;;  %v6384_v50 = vld [vmem:[#allocation4 + $0x44c] ss:$16 sps:$4 sm:$0xff]  }
  0xbe   :  { %5476 = vmatmul.mubr.msk.bf16.gmra.mxu1 %vm1598_vm0, %v6303_v51  ;;  %2092 = vmatpush2.bf16.msra.mxu0 %v6304_v52  ;;  %v6382_v51 = vld [vmem:[#allocation4 + $0x448] ss:$16 sps:$4 sm:$0xff]   ;;  %v6649_v52 = vld [vmem:[%s8063_s0 + $0x70] ss:$28 sps:$4 sm:$0xff]  }
  0xbf   :  { %2205 = vmatpush2.bf16.msra.mxu1 %v6307_v53  ;;  %2093 = vmatprep.subr.bf16.mxu0 %v6312_v54  ;;  %v6650_v53 = vld [vmem:[%s8063_s0 + $0x78] ss:$28 sps:$4 sm:$0xff]   ;;  %v6651_v54 = vld [vmem:[%s8063_s0 + $0xac] ss:$28 sps:$4 sm:$0xff]  }
  0xc0   :  { %2206 = vmatprep.subr.bf16.mxu1 %v6315_v55  ;;  %1931 = vmatprep.mubr.bf16.mxu0 %v6316_v56  ;;  %v6652_v55 = vld [vmem:[%s8063_s0 + $0xb4] ss:$28 sps:$4 sm:$0xff]   ;;  %v6387_v56 = vld [vmem:[#allocation4 + $0x42c] ss:$16 sps:$4 sm:$0xff]  }
  0xc1   :  { %2044 = vmatprep.mubr.bf16.mxu1 %v6765_v4 }
  0xc2   :  { %2094 = vmatpush2.bf16.msra.mxu0 %v6310_v57  ;;  %v6385_v57 = vld [vmem:[#allocation4 + $0x428] ss:$16 sps:$4 sm:$0xff]  }
  0xc3   :  { %2207 = vmatpush2.bf16.msra.mxu1 %v6313_v58  ;;  %2095 = vmatprep.subr.bf16.mxu0 %v6322_v59  ;;  %v6390_v58 = vld [vmem:[#allocation4 + $0x40c] ss:$16 sps:$4 sm:$0xff]   ;;  %v6388_v59 = vld [vmem:[#allocation4 + $0x408] ss:$16 sps:$4 sm:$0xff]  }
  0xc4   :  { %2208 = vmatprep.subr.bf16.mxu1 %v6325_v60  ;;  %v6653_v60 = vld [vmem:[%s8063_s0 + $0xa8] ss:$28 sps:$4 sm:$0xff]  }
  0xc5   :  { %1932 = vmatmul.mubr.bf16.gmra.mxu0 %v6318_v61  ;;  %v6654_v61 = vld [vmem:[%s8063_s0 + $0xb0] ss:$28 sps:$4 sm:$0xff]  }
  0xc6   :  { %5477 = vmatmul.mubr.msk.bf16.gmra.mxu1 %vm1598_vm0, %v6319_v62  ;;  %2096 = vmatpush2.bf16.msra.mxu0 %v6320_v63  ;;  %v318_v62 = vlaneseq  ;;  %v6655_v63 = vld [vmem:[%s8063_s0 + $0xe4] ss:$28 sps:$4 sm:$0xff]  }
  0xc7   :  { %2209 = vmatpush2.bf16.msra.mxu1 %v6323_v0  ;;  %2097 = vmatprep.subr.bf16.mxu0 %v6328_v1  ;;  %v6656_v0 = vld [vmem:[%s8063_s0 + $0xec] ss:$28 sps:$4 sm:$0xff]  }
  0xc8   :  { %2210 = vmatprep.subr.bf16.mxu1 %v6331_v2  ;;  %1941 = vmatprep.mubr.bf16.mxu0 %v6332_v3  ;;  %v6393_v1 = vld [vmem:[#allocation4 + $0x5ec] ss:$16 sps:$4 sm:$0xff]   ;;  %v6391_v2 = vld [vmem:[#allocation4 + $0x5e8] ss:$16 sps:$4 sm:$0xff]   ;;  %v7056_v3 = vshrl.u32 %v318_v62, 7 }
  0xc9   :  { %2054 = vmatprep.mubr.bf16.mxu1 %v6765_v4 }
  0xca   :  { %2098 = vmatpush2.bf16.msra.mxu0 %v6326_v5  ;;  %8078 = vst [vmem:[#allocation13_spill] sm:$0xff] %v7056_v3  ;;  %v6396_v5 = vld [vmem:[#allocation4 + $0x5cc] ss:$16 sps:$4 sm:$0xff]  }
  0xcb   :  { %2211 = vmatpush2.bf16.msra.mxu1 %v6329_v6  ;;  %2099 = vmatprep.subr.bf16.mxu0 %v6338_v7  ;;  %v6394_v6 = vld [vmem:[#allocation4 + $0x5c8] ss:$16 sps:$4 sm:$0xff]   ;;  %v6657_v7 = vld [vmem:[%s8063_s0 + $0xe0] ss:$28 sps:$4 sm:$0xff]  }
  0xcc   :  { %2212 = vmatprep.subr.bf16.mxu1 %v6341_v8  ;;  %v6658_v8 = vld [vmem:[%s8063_s0 + $0xe8] ss:$28 sps:$4 sm:$0xff]  }
  0xcd   :  { %1942 = vmatmul.mubr.bf16.gmra.mxu0 %v6334_v9  ;;  %v8071_v9 = vsub.s32 0, %v7056_v3 }
  0xce   :  { %5478 = vmatmul.mubr.msk.bf16.gmra.mxu1 %vm1598_vm0, %v6335_v10  ;;  %2100 = vmatpush2.bf16.msra.mxu0 %v6336_v11  ;;  %v6659_v10 = vld [vmem:[%s8063_s0 + $0x11c] ss:$28 sps:$4 sm:$0xff]   ;;  %v6660_v11 = vld [vmem:[%s8063_s0 + $0x124] ss:$28 sps:$4 sm:$0xff]  }
  0xcf   :  { %2213 = vmatpush2.bf16.msra.mxu1 %v6339_v12  ;;  %2101 = vmatprep.subr.bf16.mxu0 %v6344_v13  ;;  %v6399_v12 = vld [vmem:[#allocation4 + $0x5ac] ss:$16 sps:$4 sm:$0xff]   ;;  %v6397_v13 = vld [vmem:[#allocation4 + $0x5a8] ss:$16 sps:$4 sm:$0xff]  }
  0xd0   :  { %2214 = vmatprep.subr.bf16.mxu1 %v6347_v14  ;;  %1951 = vmatprep.mubr.bf16.mxu0 %v6990_v15  ;;  %v6402_v14 = vld [vmem:[#allocation4 + $0x58c] ss:$16 sps:$4 sm:$0xff]  }
  0xd1   :  { %2064 = vmatprep.mubr.bf16.mxu1 %v6765_v4 }
  0xd2   :  { %2102 = vmatpush2.bf16.msra.mxu0 %v6342_v16  ;;  %v6400_v16 = vld [vmem:[#allocation4 + $0x588] ss:$16 sps:$4 sm:$0xff]  }
  0xd3   :  { %2215 = vmatpush2.bf16.msra.mxu1 %v6345_v17  ;;  %2103 = vmatprep.subr.bf16.mxu0 %v6354_v19  ;;  %v6661_v17 = vld [vmem:[%s8063_s0 + $0x118] ss:$28 sps:$4 sm:$0xff]  }
  0xd4   :  { %2216 = vmatprep.subr.bf16.mxu1 %v6357_v20  ;;  %v6663_v19 = vld [vmem:[%s8063_s0 + $0x154] ss:$28 sps:$4 sm:$0xff]   ;;  %v6664_v20 = vld [vmem:[%s8063_s0 + $0x15c] ss:$28 sps:$4 sm:$0xff]  }
  0xd5   :  { %1952 = vmatmul.mubr.bf16.gmra.mxu0 %v6350_v18  ;;  %v6662_v18 = vld [vmem:[%s8063_s0 + $0x120] ss:$28 sps:$4 sm:$0xff]  }
  0xd6   :  { %5479 = vmatmul.mubr.msk.bf16.gmra.mxu1 %vm1598_vm0, %v6351_v21  ;;  %2104 = vmatpush2.bf16.msra.mxu0 %v6352_v22  ;;  %v6405_v21 = vld [vmem:[#allocation4 + $0x56c] ss:$16 sps:$4 sm:$0xff]   ;;  %v6403_v22 = vld [vmem:[#allocation4 + $0x568] ss:$16 sps:$4 sm:$0xff]  }
  0xd7   :  { %2217 = vmatpush2.bf16.msra.mxu1 %v6355_v23  ;;  %2105 = vmatprep.subr.bf16.mxu0 %v6360_v24  ;;  %v6408_v23 = vld [vmem:[#allocation4 + $0x54c] ss:$16 sps:$4 sm:$0xff]   ;;  %v6406_v24 = vld [vmem:[#allocation4 + $0x548] ss:$16 sps:$4 sm:$0xff]  }
  0xd8   :  { %2218 = vmatprep.subr.bf16.mxu1 %v6363_v25  ;;  %2107 = vmatprep.mubr.bf16.mxu0 %v6639_v30  ;;  %v6665_v25 = vld [vmem:[%s8063_s0 + $0x150] ss:$28 sps:$4 sm:$0xff]   ;;  %v6409_v30 = vld [vmem:[#allocation4 + $0x528] ss:$16 sps:$4 sm:$0xff]  }
  0xd9   :  { %2220 = vmatprep.mubr.bf16.mxu1 %v6640_v31  ;;  %v6414_v31 = vld [vmem:[#allocation4 + $0x50c] ss:$16 sps:$4 sm:$0xff]  }
  0xda   :  { %2106 = vmatpush2.bf16.msra.mxu0 %v6358_v26  ;;  %v6666_v26 = vld [vmem:[%s8063_s0 + $0x158] ss:$28 sps:$4 sm:$0xff]  }
  0xdb   :  { %2219 = vmatpush2.bf16.msra.mxu1 %v6361_v27  ;;  %2301 = vmatprep.subr.bf16.mxu0 %v6366_v28  ;;  %v6667_v27 = vld [vmem:[%s8063_s0 + $0x18c] ss:$28 sps:$4 sm:$0xff]   ;;  %v6668_v28 = vld [vmem:[%s8063_s0 + $0x194] ss:$28 sps:$4 sm:$0xff]  }
  0xdc   :  { %2428 = vmatprep.subr.bf16.mxu1 %v6369_v29  ;;  %v6411_v29 = vld [vmem:[#allocation4 + $0x52c] ss:$16 sps:$4 sm:$0xff]  }
  0xdd   :  { %2108 = vmatmul.mubr.bf16.vlgmr.msra.gmra.mxu0 %v6641_v36  ;;  %v316_v36 = vld [vmem:[%s8065_s2] sm:$0xf] }
  0xde   :  { %2221 = vmatmul.mubr.bf16.vlgmr.msra.gmra.mxu1 %v6642_v37  ;;  %2302 = vmatpush1.bf16.msra.mxu0 %v6364_v32  ;;  %v6412_v32 = vld [vmem:[#allocation4 + $0x508] ss:$16 sps:$4 sm:$0xff]   ;;  %v6417_v37 = vld [vmem:[#allocation7 + $0xe4] ss:$16 sps:$4 sm:$0xff]  }
  0xdf   :  { %2429 = vmatpush1.bf16.msra.mxu1 %v6367_v33  ;;  %2303 = vmatprep.subr.bf16.mxu0 %v6372_v34  ;;  %v6669_v33 = vld [vmem:[%s8063_s0 + $0x188] ss:$28 sps:$4 sm:$0xff]   ;;  %v6670_v34 = vld [vmem:[%s8063_s0 + $0x190] ss:$28 sps:$4 sm:$0xff]  }
  0xe0   :  { %2117 = vmatprep.mubr.bf16.mxu0 %v6643_v38  ;;  %2230 = vmatprep.mubr.bf16.mxu1 %v6644_v40  ;;  %v8072_v38 = vsub.s32 1, %v7056_v3  ;;  %v6415_v40 = vld [vmem:[#allocation7 + $0xe0] ss:$16 sps:$4 sm:$0xff]  }
  0xe2   :  { %2304 = vmatpush1.bf16.msra.mxu0 %v6370_v35  ;;  %v6671_v35 = vld [vmem:[%s8063_s0 + $0x14] ss:$28 sps:$4 sm:$0xff]  }
  0xe3   :  { %2305 = vmatprep.subr.bf16.mxu0 %v6375_v39  ;;  %v7111_v39 = vrot.slane %v316_v36, %v8071_v9 }
  0xe5   :  { %2118 = vmatmul.mubr.bf16.gmra.mxu0 %v6645_v44 }
  0xe6   :  { %2231 = vmatmul.mubr.bf16.gmra.mxu1 %v6646_v45  ;;  %2306 = vmatpush1.bf16.msra.mxu0 %v6373_v41  ;;  %v7115_v41 = vrot.slane %v316_v36, %v8072_v38  ;;  %v6672_v45 = vld [vmem:[%s8063_s0 + $0x10] ss:$28 sps:$4 sm:$0xff]  }
  0xe7   :  { %2127 = vmatprep.mubr.bf16.mxu0 %v6647_v46  ;;  %2307 = vmatprep.subr.bf16.mxu0 %v6378_v42  ;;  %v6420_v42 = vld [vmem:[#allocation7 + $0xc4] ss:$16 sps:$4 sm:$0xff]   ;;  %v6514_v36 = vld [vmem:[#allocation7 + $0x2c0] ss:$16 sps:$4 sm:$0xff]  }
  0xe8   :  { %2240 = vmatprep.mubr.bf16.mxu1 %v6648_v47  ;;  %v6673_v46 = vld [vmem:[%s8063_s0 + $0x18] ss:$28 sps:$4 sm:$0xff]  }
  0xea   :  { %2308 = vmatpush1.bf16.msra.mxu0 %v6376_v43 }
  0xeb   :  { %2309 = vmatprep.subr.bf16.mxu0 %v6381_v48  ;;  %v6674_v48 = vld [vmem:[%s8063_s0 + $0x4c] ss:$28 sps:$4 sm:$0xff]  }
  0xed   :  { %2128 = vmatmul.mubr.bf16.gmra.mxu0 %v6649_v52 }
  0xee   :  { %2241 = vmatmul.mubr.bf16.gmra.mxu1 %v6650_v53  ;;  %2310 = vmatpush1.bf16.msra.mxu0 %v6379_v49 }
  0xef   :  { %2137 = vmatprep.mubr.bf16.mxu0 %v6651_v54  ;;  %2311 = vmatprep.subr.bf16.mxu0 %v6384_v50  ;;  %v6423_v54 = vld [vmem:[#allocation7 + $0xa4] ss:$16 sps:$4 sm:$0xff]  }
  0xf0   :  { %2250 = vmatprep.mubr.bf16.mxu1 %v6652_v55 }
  0xf2   :  { %2312 = vmatpush1.bf16.msra.mxu0 %v6382_v51  ;;  %v6418_v51 = vld [vmem:[#allocation7 + $0xc0] ss:$16 sps:$4 sm:$0xff]  }
  0xf3   :  { %2313 = vmatprep.subr.bf16.mxu0 %v6387_v56 }
  0xf5   :  { %2138 = vmatmul.mubr.bf16.gmra.mxu0 %v6653_v60  ;;  %v6421_v60 = vld [vmem:[#allocation7 + $0xa0] ss:$16 sps:$4 sm:$0xff]  }
  0xf6   :  { %2251 = vmatmul.mubr.bf16.gmra.mxu1 %v6654_v61  ;;  %2314 = vmatpush1.bf16.msra.mxu0 %v6385_v57  ;;  %v6426_v61 = vld [vmem:[#allocation7 + $0x84] ss:$16 sps:$4 sm:$0xff]  }
  0xf7   :  { %2147 = vmatprep.mubr.bf16.mxu0 %v6655_v63  ;;  %2315 = vmatprep.subr.bf16.mxu0 %v6390_v58 }
  0xf8   :  { %2260 = vmatprep.mubr.bf16.mxu1 %v6656_v0  ;;  %v6675_v0 = vld [vmem:[%s8063_s0 + $0x48] ss:$28 sps:$4 sm:$0xff]  }
  0xfa   :  { %2316 = vmatpush1.bf16.msra.mxu0 %v6388_v59 }
  0xfb   :  { %2317 = vmatprep.subr.bf16.mxu0 %v6393_v1  ;;  %v6676_v1 = vld [vmem:[%s8063_s0 + $0x50] ss:$28 sps:$4 sm:$0xff]  }
  0xfd   :  { %2148 = vmatmul.mubr.bf16.gmra.mxu0 %v6657_v7 }
  0xfe   :  { %2261 = vmatmul.mubr.bf16.gmra.mxu1 %v6658_v8  ;;  %2318 = vmatpush2.bf16.msra.mxu0 %v6391_v2  ;;  %v6424_v8 = vld [vmem:[#allocation7 + $0x80] ss:$16 sps:$4 sm:$0xff]  }
  0xff   :  { %2157 = vmatprep.mubr.bf16.mxu0 %v6659_v10  ;;  %2319 = vmatprep.subr.bf16.mxu0 %v6396_v5  ;;  %v6677_v5 = vld [vmem:[%s8063_s0 + $0x84] ss:$28 sps:$4 sm:$0xff]  }
 0x100   :  { %2270 = vmatprep.mubr.bf16.mxu1 %v6660_v11 }
 0x102   :  { %2320 = vmatpush2.bf16.msra.mxu0 %v6394_v6 }
 0x103   :  { %2321 = vmatprep.subr.bf16.mxu0 %v6399_v12  ;;  %v6429_v12 = vld [vmem:[#allocation7 + $0x64] ss:$16 sps:$4 sm:$0xff]  }
 0x105   :  { %2158 = vmatmul.mubr.bf16.gmra.mxu0 %v6661_v17 }
 0x106   :  { %2271 = vmatmul.mubr.bf16.gmra.mxu1 %v6662_v18  ;;  %2322 = vmatpush2.bf16.msra.mxu0 %v6397_v13 }
 0x107   :  { %2167 = vmatprep.mubr.bf16.mxu0 %v6663_v19  ;;  %2323 = vmatprep.subr.bf16.mxu0 %v6402_v14  ;;  %v6427_v19 = vld [vmem:[#allocation7 + $0x60] ss:$16 sps:$4 sm:$0xff]  }
 0x108   :  { %2280 = vmatprep.mubr.bf16.mxu1 %v6664_v20  ;;  %v6513_v20 = vld [vmem:[#allocation7 + $0x2e4] ss:$16 sps:$4 sm:$0xff]  }
 0x109   :  { %3910 = vmatprep.subr.bf16.mxu1 %v6513_v20  ;;  %v6439_v20 = vld [vmem:[#allocation7 + $0x1e0] ss:$16 sps:$4 sm:$0xff]  }
 0x10a   :  { %2324 = vmatpush2.bf16.msra.mxu0 %v6400_v16 }
 0x10b   :  { %2325 = vmatprep.subr.bf16.mxu0 %v6405_v21  ;;  %v6432_v21 = vld [vmem:[#allocation7 + $0x44] ss:$16 sps:$4 sm:$0xff]  }
 0x10d   :  { %2168 = vmatmul.mubr.bf16.gmra.mxu0 %v6665_v25  ;;  %v6678_v25 = vld [vmem:[%s8063_s0 + $0x80] ss:$28 sps:$4 sm:$0xff]  }
 0x10e   :  { %2281 = vmatmul.mubr.bf16.gmra.mxu1 %v6666_v26  ;;  %2326 = vmatpush2.bf16.msra.mxu0 %v6403_v22  ;;  %v6511_v22 = vld [vmem:[#allocation7 + $0x2e0] ss:$16 sps:$4 sm:$0xff]   ;;  %v6679_v26 = vld [vmem:[%s8063_s0 + $0x88] ss:$28 sps:$4 sm:$0xff]  }
 0x10f   :  { %2177 = vmatprep.mubr.bf16.mxu0 %v6667_v27  ;;  %2327 = vmatprep.subr.bf16.mxu0 %v6408_v23 }
 0x110   :  { %2290 = vmatprep.mubr.bf16.mxu1 %v6668_v28  ;;  %v6680_v28 = vld [vmem:[%s8063_s0 + $0xbc] ss:$28 sps:$4 sm:$0xff]  }
 0x112   :  { %2328 = vmatpush2.bf16.msra.mxu0 %v6406_v24 }
 0x113   :  { %2329 = vmatprep.subr.bf16.mxu0 %v6411_v29 }
 0x115   :  { %2178 = vmatmul.mubr.bf16.gmra.mxu0 %v6669_v33 }
 0x116   :  { %2291 = vmatmul.mubr.bf16.gmra.mxu1 %v6670_v34  ;;  %2330 = vmatpush2.bf16.msra.mxu0 %v6409_v30 }
 0x117   :  { %2333 = vmatprep.mubr.bf16.mxu0 %v6671_v35  ;;  %2331 = vmatprep.subr.bf16.mxu0 %v6414_v31  ;;  %v6430_v31 = vld [vmem:[#allocation7 + $0x40] ss:$16 sps:$4 sm:$0xff]   ;;  %v6435_v35 = vld [vmem:[#allocation7 + $0x24] ss:$16 sps:$4 sm:$0xff]  }
 0x118   :  { %2446 = vmatprep.mubr.bf16.mxu1 %v6765_v4 }
 0x11a   :  { %2332 = vmatpush2.bf16.msra.mxu0 %v6412_v32  ;;  %v6516_v32 = vld [vmem:[#allocation7 + $0x2c4] ss:$16 sps:$4 sm:$0xff]  }
 0x11b   :  { %3797 = vmatprep.subr.bf16.mxu0 %v6417_v37 }
 0x11d   :  { %v1657_v43 = vpop.f32.mrf.mxu0  ;;  %2334 = vmatmul.mubr.bf16.vlgmr.msra.gmra.mxu0 %v6672_v45  ;;  %v6433_v45 = vld [vmem:[#allocation7 + $0x20] ss:$16 sps:$4 sm:$0xff]  }
 0x11e   :  { %v1770_v44 = vpop.f32.mrf.mxu1  ;;  %5480 = vmatmul.mubr.msk.bf16.vlgmr.msra.gmra.mxu1 %vm1598_vm0, %v6673_v46  ;;  %v1658_v47 = vadd.f32 %v1657_v43, %v7111_v39  ;;  %2343 = vmatprep.mubr.bf16.mxu0 %v6674_v48  ;;  %v6519_v46 = vld [vmem:[#allocation7 + $0x2a4] ss:$16 sps:$4 sm:$0xff]   ;;  %v6517_v48 = vld [vmem:[#allocation7 + $0x2a0] ss:$16 sps:$4 sm:$0xff]  }
 0x11f   :  { %2456 = vmatprep.mubr.bf16.mxu1 %v6765_v4  ;;  %v1659_v49 = vpop.f32.mrf.mxu0  ;;  %3798 = vmatpush1.bf16.msra.mxu0 %v6415_v40 }
 0x120   :  { %v1772_v50 = vpop.f32.mrf.mxu1  ;;  %v7129_v52 = vadd.f32 %v1770_v44, %v1658_v47  ;;  %v1660_v53 = vadd.f32 %v1659_v49, %v7115_v41  ;;  %3799 = vmatprep.subr.bf16.mxu0 %v6420_v42  ;;  %3911 = vmatpush1.bf16.msra.mxu1 %v6511_v22  ;;  %v6438_v47 = vld [vmem:[#allocation7 + $0x4] ss:$16 sps:$4 sm:$0xff]  }
 0x121   :  { %v7132_v55 = vpop.f32.mrf.mxu0  ;;  %3912 = vmatprep.subr.bf16.mxu1 %v6516_v32  ;;  %v6444_v22 = vld [vmem:[#allocation7 + $0x1c4] ss:$16 sps:$4 sm:$0xff]   ;;  %v6442_v32 = vld [vmem:[#allocation7 + $0x1c0] ss:$16 sps:$4 sm:$0xff]  }
 0x122   :  { %v7134_v56 = vpop.f32.mrf.mxu1  ;;  %v7136_v57 = vadd.f32 %v1772_v50, %v1660_v53  ;;  %v6682_v53 = vld [vmem:[%s8063_s0 + $0xc0] ss:$28 sps:$4 sm:$0xff]  }
 0x123   :  { %v7138_v58 = vpop.f32.mrf.mxu0  ;;  %3800 = vmatpush1.bf16.msra.mxu0 %v6418_v51  ;;  %v6681_v51 = vld [vmem:[%s8063_s0 + $0xb8] ss:$28 sps:$4 sm:$0xff]  }
 0x124   :  { %v7140_v59 = vpop.f32.mrf.mxu1  ;;  %3801 = vmatprep.subr.bf16.mxu0 %v6423_v54  ;;  %3913 = vmatpush1.bf16.msra.mxu1 %v6514_v36 }
 0x125   :  { %v1667_v62 = vpop.f32.mrf.mxu0  ;;  %2344 = vmatmul.mubr.bf16.gmra.mxu0 %v6675_v0  ;;  %3914 = vmatprep.subr.bf16.mxu1 %v6519_v46  ;;  %v6522_v0 = vld [vmem:[#allocation7 + $0x284] ss:$16 sps:$4 sm:$0xff]   ;;  %v6526_v46 = vld [vmem:[#allocation7 + $0x240] ss:$16 sps:$4 sm:$0xff]  }
 0x126   :  { %v1780_v63 = vpop.f32.mrf.mxu1  ;;  %5481 = vmatmul.mubr.msk.bf16.gmra.mxu1 %vm1598_vm0, %v6676_v1  ;;  %v1668_v2 = vadd.f32 %v1667_v62, %v7111_v39  ;;  %2353 = vmatprep.mubr.bf16.mxu0 %v6677_v5  ;;  %v6441_v5 = vld [vmem:[#allocation7 + $0x1e4] ss:$16 sps:$4 sm:$0xff]  }
 0x127   :  { %2466 = vmatprep.mubr.bf16.mxu1 %v6765_v4  ;;  %v1669_v6 = vpop.f32.mrf.mxu0  ;;  %3802 = vmatpush1.bf16.msra.mxu0 %v6421_v60  ;;  %v6683_v60 = vld [vmem:[%s8063_s0 + $0xf4] ss:$28 sps:$4 sm:$0xff]  }
 0x128   :  { %v1782_v7 = vpop.f32.mrf.mxu1  ;;  %v7154_v10 = vadd.f32 %v1780_v63, %v1668_v2  ;;  %v1670_v11 = vadd.f32 %v1669_v6, %v7115_v41  ;;  %3803 = vmatprep.subr.bf16.mxu0 %v6426_v61  ;;  %v6436_v63 = vld [vmem:[#allocation7] ss:$16 sps:$4 sm:$0xff]   ;;  %3915 = vmatpush1.bf16.msra.mxu1 %v6517_v48 }
 0x129   :  { %v7157_v13 = vpop.f32.mrf.mxu0  ;;  %v6520_v6 = vld [vmem:[#allocation7 + $0x280] ss:$16 sps:$4 sm:$0xff]   ;;  %3916 = vmatprep.subr.bf16.mxu1 %v6522_v0  ;;  %v6687_v0 = vld [vmem:[%s8063_s0 + $0x128] ss:$28 sps:$4 sm:$0xff]  }
 0x12a   :  { %v7159_v14 = vpop.f32.mrf.mxu1  ;;  %v7161_v16 = vadd.f32 %v1782_v7, %v1670_v11  ;;  %v1672_v3 = vadd.f32 %v7157_v13, %v7111_v39 }
 0x12b   :  { %v7163_v17 = vpop.f32.mrf.mxu0  ;;  %3804 = vmatpush1.bf16.msra.mxu0 %v6424_v8 }
 0x12c   :  { %v7165_v18 = vpop.f32.mrf.mxu1  ;;  %3805 = vmatprep.subr.bf16.mxu0 %v6429_v12  ;;  %3917 = vmatpush1.bf16.msra.mxu1 %v6520_v6  ;;  %v6689_v6 = vld [vmem:[%s8063_s0 + $0x164] ss:$28 sps:$4 sm:$0xff]  }
 0x12d   :  { %v1677_v23 = vpop.f32.mrf.mxu0  ;;  %2354 = vmatmul.mubr.bf16.gmra.mxu0 %v6678_v25 }
 0x12e   :  { %v1790_v24 = vpop.f32.mrf.mxu1  ;;  %5482 = vmatmul.mubr.msk.bf16.gmra.mxu1 %vm1598_vm0, %v6679_v26  ;;  %v1678_v27 = vadd.f32 %v1677_v23, %v7111_v39  ;;  %2363 = vmatprep.mubr.bf16.mxu0 %v6680_v28  ;;  %v6523_v23 = vld [vmem:[#allocation7 + $0x260] ss:$16 sps:$4 sm:$0xff]  }
 0x12f   :  { %2476 = vmatprep.mubr.bf16.mxu1 %v6765_v4  ;;  %v1679_v29 = vpop.f32.mrf.mxu0  ;;  %3806 = vmatpush1.bf16.msra.mxu0 %v6427_v19  ;;  %v6684_v26 = vld [vmem:[%s8063_s0 + $0xf0] ss:$28 sps:$4 sm:$0xff]  }
 0x130   :  { %v1792_v30 = vpop.f32.mrf.mxu1  ;;  %v7179_v33 = vadd.f32 %v1790_v24, %v1678_v27  ;;  %v1680_v34 = vadd.f32 %v1679_v29, %v7115_v41  ;;  %3807 = vmatprep.subr.bf16.mxu0 %v6432_v21  ;;  %v6525_v21 = vld [vmem:[#allocation7 + $0x264] ss:$16 sps:$4 sm:$0xff]   ;;  %v6686_v29 = vld [vmem:[%s8063_s0 + $0x12c] ss:$28 sps:$4 sm:$0xff]  }
 0x131   :  { %v7182_v37 = vpop.f32.mrf.mxu0  ;;  %v6685_v27 = vld [vmem:[%s8063_s0 + $0xf8] ss:$28 sps:$4 sm:$0xff]   ;;  %3918 = vmatprep.subr.bf16.mxu1 %v6525_v21 }
 0x132   :  { %v7184_v40 = vpop.f32.mrf.mxu1  ;;  %v7186_v42 = vadd.f32 %v1792_v30, %v1680_v34  ;;  %v6528_v34 = vld [vmem:[#allocation7 + $0x244] ss:$16 sps:$4 sm:$0xff]   ;;  %3919 = vmatpush1.bf16.msra.mxu1 %v6523_v23 }
 0x133   :  { %v7188_v43 = vpop.f32.mrf.mxu0  ;;  %3808 = vmatpush1.bf16.msra.mxu0 %v6430_v31  ;;  %3920 = vmatprep.subr.bf16.mxu1 %v6528_v34  ;;  %v6534_v23 = vld [vmem:[#allocation7 + $0x204] ss:$16 sps:$4 sm:$0xff]   ;;  %v6451_v34 = vld [vmem:[#allocation7 + $0x160] ss:$16 sps:$4 sm:$0xff]  }
 0x134   :  { %v7190_v44 = vpop.f32.mrf.mxu1  ;;  %3809 = vmatprep.subr.bf16.mxu0 %v6435_v35 }
 0x135   :  { %v1687_v49 = vpop.f32.mrf.mxu0  ;;  %2364 = vmatmul.mubr.bf16.gmra.mxu0 %v6681_v51 }
 0x136   :  { %v1800_v50 = vpop.f32.mrf.mxu1  ;;  %5483 = vmatmul.mubr.msk.bf16.gmra.mxu1 %vm1598_vm0, %v6682_v53  ;;  %v1688_v54 = vadd.f32 %v1687_v49, %v7111_v39  ;;  %2373 = vmatprep.mubr.bf16.mxu0 %v6683_v60  ;;  %v6445_v53 = vld [vmem:[#allocation7 + $0x1a0] ss:$16 sps:$4 sm:$0xff]   ;;  %v6450_v60 = vld [vmem:[#allocation7 + $0x184] ss:$16 sps:$4 sm:$0xff]  }
 0x137   :  { %2486 = vmatprep.mubr.bf16.mxu1 %v6765_v4  ;;  %v1689_v61 = vpop.f32.mrf.mxu0  ;;  %3810 = vmatpush1.bf16.msra.mxu0 %v6433_v45  ;;  %v6447_v45 = vld [vmem:[#allocation7 + $0x1a4] ss:$16 sps:$4 sm:$0xff]  }
 0x138   :  { %v1802_v62 = vpop.f32.mrf.mxu1  ;;  %v7204_v1 = vadd.f32 %v1800_v50, %v1688_v54  ;;  %v1690_v2 = vadd.f32 %v1689_v61, %v7115_v41  ;;  %3811 = vmatprep.subr.bf16.mxu0 %v6438_v47  ;;  %v6531_v54 = vld [vmem:[#allocation7 + $0x224] ss:$16 sps:$4 sm:$0xff]   ;;  %3921 = vmatpush1.bf16.msra.mxu1 %v6526_v46  ;;  %v6529_v61 = vld [vmem:[#allocation7 + $0x220] ss:$16 sps:$4 sm:$0xff]  }
 0x139   :  { %v7207_v7 = vpop.f32.mrf.mxu0  ;;  %3922 = vmatprep.subr.bf16.mxu1 %v6531_v54  ;;  %v6535_v46 = vld [vmem:[#allocation7 + $0x3e0] ss:$16 sps:$4 sm:$0xff]  }
 0x13a   :  { %v7209_v8 = vpop.f32.mrf.mxu1  ;;  %v7211_v11 = vadd.f32 %v1802_v62, %v1690_v2  ;;  %v6688_v2 = vld [vmem:[%s8063_s0 + $0x130] ss:$28 sps:$4 sm:$0xff]  }
 0x13b   :  { %v7213_v12 = vpop.f32.mrf.mxu0  ;;  %3812 = vmatpush1.bf16.msra.mxu0 %v6436_v63 }
 0x13c   :  { %v7215_v19 = vpop.f32.mrf.mxu1  ;;  %3813 = vmatprep.subr.bf16.mxu0 %v6441_v5  ;;  %3923 = vmatpush1.bf16.msra.mxu1 %v6529_v61  ;;  %v6691_v61 = vld [vmem:[%s8063_s0 + $0x168] ss:$28 sps:$4 sm:$0xff]  }
 0x13d   :  { %v1697_v24 = vpop.f32.mrf.mxu0  ;;  %2374 = vmatmul.mubr.bf16.gmra.mxu0 %v6684_v26  ;;  %v6453_v26 = vld [vmem:[#allocation7 + $0x164] ss:$16 sps:$4 sm:$0xff]   ;;  %3924 = vmatprep.subr.bf16.mxu1 %v6534_v23 }
 0x13e   :  { %v1810_v25 = vpop.f32.mrf.mxu1  ;;  %5484 = vmatmul.mubr.msk.bf16.gmra.mxu1 %vm1598_vm0, %v6685_v27  ;;  %v1698_v28 = vadd.f32 %v1697_v24, %v7111_v39  ;;  %2383 = vmatprep.mubr.bf16.mxu0 %v6686_v29  ;;  %v6532_v27 = vld [vmem:[#allocation7 + $0x200] ss:$16 sps:$4 sm:$0xff]  }
 0x13f   :  { %2496 = vmatprep.mubr.bf16.mxu1 %v6765_v4  ;;  %v1699_v30 = vpop.f32.mrf.mxu0  ;;  %3814 = vmatpush2.bf16.msra.mxu0 %v6439_v20 }
 0x140   :  { %v1812_v31 = vpop.f32.mrf.mxu1  ;;  %v7229_v35 = vadd.f32 %v1810_v25, %v1698_v28  ;;  %v1700_v36 = vadd.f32 %v1699_v30, %v7115_v41  ;;  %3815 = vmatprep.subr.bf16.mxu0 %v6444_v22  ;;  %v6448_v22 = vld [vmem:[#allocation7 + $0x180] ss:$16 sps:$4 sm:$0xff]   ;;  %3925 = vmatpush1.bf16.msra.mxu1 %v6532_v27 }
 0x141   :  { %v7232_v47 = vpop.f32.mrf.mxu0  ;;  %v6457_v27 = vld [vmem:[#allocation7 + $0x120] ss:$16 sps:$4 sm:$0xff]  }
 0x142   :  { %v7234_v48 = vpop.f32.mrf.mxu1  ;;  %v7236_v49 = vadd.f32 %v1812_v31, %v1700_v36  ;;  %v6537_v36 = vld [vmem:[#allocation7 + $0x3e4] ss:$16 sps:$4 sm:$0xff]  }
 0x143   :  { %v7238_v50 = vpop.f32.mrf.mxu0  ;;  %3816 = vmatpush2.bf16.msra.mxu0 %v6442_v32  ;;  %3926 = vmatprep.subr.bf16.mxu1 %v6537_v36  ;;  %v6462_v36 = vld [vmem:[#allocation7 + $0x104] ss:$16 sps:$4 sm:$0xff]  }
 0x144   :  { %v7240_v51 = vpop.f32.mrf.mxu1  ;;  %3817 = vmatprep.subr.bf16.mxu0 %v6447_v45  ;;  %v6456_v45 = vld [vmem:[#allocation7 + $0x144] ss:$16 sps:$4 sm:$0xff]   ;;  %3927 = vmatpush2.bf16.msra.mxu1 %v6535_v46 }
 0x145   :  { %v1707_v62 = vpop.f32.mrf.mxu0  ;;  %2384 = vmatmul.mubr.bf16.gmra.mxu0 %v6687_v0 }
 0x146   :  { %v1820_v63 = vpop.f32.mrf.mxu1  ;;  %5485 = vmatmul.mubr.msk.bf16.gmra.mxu1 %vm1598_vm0, %v6688_v2  ;;  %v1708_v5 = vadd.f32 %v1707_v62, %v7111_v39  ;;  %2393 = vmatprep.mubr.bf16.mxu0 %v6689_v6  ;;  %v6454_v2 = vld [vmem:[#allocation7 + $0x140] ss:$16 sps:$4 sm:$0xff]  }
 0x147   :  { %2506 = vmatprep.mubr.bf16.mxu1 %v6765_v4  ;;  %v1709_v20 = vpop.f32.mrf.mxu0  ;;  %3818 = vmatpush2.bf16.msra.mxu0 %v6445_v53 }
 0x148   :  { %v1822_v21 = vpop.f32.mrf.mxu1  ;;  %v7254_v24 = vadd.f32 %v1820_v63, %v1708_v5  ;;  %v1710_v25 = vadd.f32 %v1709_v20, %v7115_v41  ;;  %3819 = vmatprep.subr.bf16.mxu0 %v6450_v60  ;;  %v6690_v60 = vld [vmem:[%s8063_s0 + $0x160] ss:$28 sps:$4 sm:$0xff]   ;;  %v6540_v5 = vld [vmem:[#allocation7 + $0x3c4] ss:$16 sps:$4 sm:$0xff]  }
 0x149   :  { %v7257_v28 = vpop.f32.mrf.mxu0  ;;  %3928 = vmatprep.subr.bf16.mxu1 %v6540_v5 }
 0x14a   :  { %v7259_v29 = vpop.f32.mrf.mxu1  ;;  %v7261_v30 = vadd.f32 %v1822_v21, %v1710_v25  ;;  %v6459_v21 = vld [vmem:[#allocation7 + $0x124] ss:$16 sps:$4 sm:$0xff]  }
 0x14b   :  { %v7263_v31 = vpop.f32.mrf.mxu0  ;;  %3820 = vmatpush2.bf16.msra.mxu0 %v6448_v22  ;;  %v6538_v22 = vld [vmem:[#allocation7 + $0x3c0] ss:$16 sps:$4 sm:$0xff]  }
 0x14c   :  { %v7265_v32 = vpop.f32.mrf.mxu1  ;;  %3821 = vmatprep.subr.bf16.mxu0 %v6453_v26  ;;  %3929 = vmatpush2.bf16.msra.mxu1 %v6538_v22  ;;  %v6544_v22 = vld [vmem:[#allocation7 + $0x380] ss:$16 sps:$4 sm:$0xff]  }
 0x14d   :  { %v1717_v53 = vpop.f32.mrf.mxu0  ;;  %2394 = vmatmul.mubr.bf16.gmra.mxu0 %v6690_v60  ;;  %v6693_v60 = vld [vmem:[%s8063_s0 + $0x1a0] ss:$28 sps:$4 sm:$0xff]  }
 0x14e   :  { %v1830_v54 = vpop.f32.mrf.mxu1  ;;  %5486 = vmatmul.mubr.msk.bf16.gmra.mxu1 %vm1598_vm0, %v6691_v61  ;;  %v1718_v62 = vadd.f32 %v1717_v53, %v7111_v39  ;;  %2403 = vmatprep.mubr.bf16.mxu0 %v6990_v15 }
 0x14f   :  { %2516 = vmatprep.mubr.bf16.mxu1 %v6765_v4  ;;  %v1719_v63 = vpop.f32.mrf.mxu0  ;;  %3822 = vmatpush2.bf16.msra.mxu0 %v6451_v34  ;;  %v6543_v34 = vld [vmem:[#allocation7 + $0x3a4] ss:$16 sps:$4 sm:$0xff]  }
 0x150   :  { %v1832_v0 = vpop.f32.mrf.mxu1  ;;  %v7277_v6 = vadd.f32 %v1830_v54, %v1718_v62  ;;  %v1720_v20 = vadd.f32 %v1719_v63, %v7115_v41  ;;  %3823 = vmatprep.subr.bf16.mxu0 %v6456_v45  ;;  %v6541_v45 = vld [vmem:[#allocation7 + $0x3a0] ss:$16 sps:$4 sm:$0xff]   ;;  %v6692_v54 = vld [vmem:[%s8063_s0 + $0x198] ss:$28 sps:$4 sm:$0xff]   ;;  %3930 = vmatprep.subr.bf16.mxu1 %v6543_v34 }
 0x151   :  { %v7280_v23 = vpop.f32.mrf.mxu0  ;;  %3931 = vmatpush2.bf16.msra.mxu1 %v6541_v45 }
 0x152   :  { %v7282_v25 = vpop.f32.mrf.mxu1  ;;  %v7284_v4 = vadd.f32 %v1832_v0, %v1720_v20  ;;  %v6460_v0 = vld [vmem:[#allocation7 + $0x100] ss:$16 sps:$4 sm:$0xff]  }
 0x153   :  { %v7286_v15 = vpop.f32.mrf.mxu0  ;;  %3824 = vmatpush2.bf16.msra.mxu0 %v6454_v2  ;;  %v6546_v2 = vld [vmem:[#allocation7 + $0x384] ss:$16 sps:$4 sm:$0xff]  }
 0x154   :  { %v7288_v26 = vpop.f32.mrf.mxu1  ;;  %3825 = vmatprep.subr.bf16.mxu0 %v6459_v21  ;;  %v6465_v21 = vld [vmem:[#allocation7 + $0xec] ss:$16 sps:$4 sm:$0xff]   ;;  %3932 = vmatprep.subr.bf16.mxu1 %v6546_v2 }
 0x155   :  { %v1727_v46 = vpop.f32.mrf.mxu0  ;;  %2404 = vmatmul.mubr.bf16.gmra.mxu0 %v6692_v54  ;;  %3933 = vmatpush2.bf16.msra.mxu1 %v6544_v22 }
 0x156   :  { %v1840_v53 = vpop.f32.mrf.mxu1  ;;  %5487 = vmatmul.mubr.msk.bf16.gmra.mxu1 %vm1598_vm0, %v6693_v60  ;;  %v1728_v61 = vadd.f32 %v1727_v46, %v7111_v39  ;;  %v1662_v60 = vadd.f32 %v7132_v55, %v7111_v39 }
 0x157   :  { %v1729_v62 = vpop.f32.mrf.mxu0  ;;  %3826 = vmatpush2.bf16.msra.mxu0 %v6457_v27 }
 0x158   :  { %v1842_v63 = vpop.f32.mrf.mxu1  ;;  %v7298_v5 = vadd.f32 %v1840_v53, %v1728_v61  ;;  %v1730_v20 = vadd.f32 %v1729_v62, %v7115_v41  ;;  %3827 = vmatprep.subr.bf16.mxu0 %v6462_v36  ;;  %v6549_v53 = vld [vmem:[#allocation7 + $0x364] ss:$16 sps:$4 sm:$0xff]   ;;  %v6547_v36 = vld [vmem:[#allocation7 + $0x360] ss:$16 sps:$4 sm:$0xff]   ;;  %v1664_v62 = vadd.f32 %v7138_v58, %v7115_v41  ;;  %v1775_v38 = vadd.f32 %v7134_v56, %v1662_v60 }
 0x159   :  { %v7301_v54 = vpop.f32.mrf.mxu0  ;;  %3934 = vmatprep.subr.bf16.mxu1 %v6549_v53  ;;  %v6555_v58 = vld [vmem:[#allocation7 + $0x324] ss:$16 sps:$4 sm:$0xff]  }
 0x15a   :  { %8079 = vst [vmem:[#allocation14_spill] sm:$0xff] %v7298_v5  ;;  %8080 = vst [vmem:[#allocation15_spill] sm:$0xff] %v7301_v54  ;;  %v7303_v9 = vpop.f32.mrf.mxu1  ;;  %v7305_v46 = vadd.f32 %v1842_v63, %v1730_v20  ;;  %v6552_v20 = vld [vmem:[#allocation7 + $0x344] ss:$16 sps:$4 sm:$0xff]   ;;  %3935 = vmatpush2.bf16.msra.mxu1 %v6547_v36  ;;  %v1777_v5 = vadd.f32 %v7140_v59, %v1664_v62  ;;  %v1785_v54 = vadd.f32 %v7159_v14, %v1672_v3 }
 0x15b   :  { %8081 = vst [vmem:[#allocation16_spill] sm:$0xff] %v7303_v9  ;;  %v7307_v34 = vpop.f32.mrf.mxu0  ;;  %3828 = vmatpush2.bf16.msra.mxu0 %v6460_v0  ;;  %3936 = vmatprep.subr.bf16.mxu1 %v6552_v20  ;;  %v1682_v3 = vadd.f32 %v7182_v37, %v7111_v39  ;;  %v1684_v37 = vadd.f32 %v7188_v43, %v7115_v41 }
 0x15c   :  { %8082 = vst [vmem:[#allocation17_spill] sm:$0xff] %v7305_v46  ;;  %8083 = vst [vmem:[#allocation18_spill] sm:$0xff] %v7307_v34  ;;  %v7309_v27 = vpop.f32.mrf.mxu1  ;;  %4023 = vmatprep.subr.bf16.mxu0 %v6465_v21 }
 0x15d   :  { %8084 = vst [vmem:[#allocation19_spill] sm:$0xff] %v7309_v27  ;;  %v1883_v45 = vpop.f32.mrf.mxu0  ;;  %v6550_v27 = vld [vmem:[#allocation7 + $0x340] ss:$16 sps:$4 sm:$0xff]   ;;  %v1797_v43 = vadd.f32 %v7190_v44, %v1684_v37 }
 0x15e   :  { %v1996_v61 = vpop.f32.mrf.mxu1  ;;  %v1884_v55 = vadd.f32 %v1883_v45, %v7129_v52  ;;  %3937 = vmatpush2.bf16.msra.mxu1 %v6550_v27  ;;  %v1674_v45 = vadd.f32 %v7163_v17, %v7115_v41 }
 0x15f   :  { %v1885_v63 = vpop.f32.mrf.mxu0  ;;  %3938 = vmatprep.subr.bf16.mxu1 %v6555_v58  ;;  %v6468_v58 = vld [vmem:[#allocation7 + $0xcc] ss:$16 sps:$4 sm:$0xff]  }
 0x160   :  { %v1998_v2 = vpop.f32.mrf.mxu1  ;;  %v1886_v0 = vadd.f32 %v1885_v63, %v7136_v57  ;;  %v6553_v57 = vld [vmem:[#allocation7 + $0x320] ss:$16 sps:$4 sm:$0xff]   ;;  %v1997_v36 = vadd.f32 %v1996_v61, %v1884_v55 }
 0x161   :  { %v1887_v21 = vpop.f32.mrf.mxu0 }
 0x162   :  { %v2000_v22 = vpop.f32.mrf.mxu1  ;;  %v1888_v53 = vadd.f32 %v1887_v21, %v1775_v38  ;;  %v1999_v34 = vadd.f32 %v1998_v2, %v1886_v0  ;;  %v6558_v21 = vld [vmem:[#allocation7 + $0x304] ss:$16 sps:$4 sm:$0xff]   ;;  %3939 = vmatpush2.bf16.msra.mxu1 %v6553_v57  ;;  %v2527_v27 = vmax.f32 %v1997_v36, 0.0 }
 0x163   :  { %v1889_v46 = vpop.f32.mrf.mxu0  ;;  %3940 = vmatprep.subr.bf16.mxu1 %v6558_v21  ;;  %v1795_v21 = vadd.f32 %v7184_v40, %v1682_v3  ;;  %v6474_v3 = vld [vmem:[#allocation7 + $0x8c] ss:$16 sps:$4 sm:$0xff]  }
 0x164   :  { %v2002_v9 = vpop.f32.mrf.mxu1  ;;  %v2001_v56 = vadd.f32 %v2000_v22, %v1888_v53  ;;  %v1890_v60 = vadd.f32 %v1889_v46, %v1777_v5  ;;  %v2528_v13 = vmax.f32 %v1999_v34, 0.0  ;;  %v6556_v46 = vld [vmem:[#allocation7 + $0x300] ss:$16 sps:$4 sm:$0xff]   ;;  %v6463_v53 = vld [vmem:[#allocation7 + $0xe8] ss:$16 sps:$4 sm:$0xff]  }
 0x165   :  { %v1893_v63 = vpop.f32.mrf.mxu0 }
 0x166   :  { %v2006_v52 = vpop.f32.mrf.mxu1  ;;  %v2003_v59 = vadd.f32 %v2002_v9, %v1890_v60  ;;  %v2531_v38 = vmax.f32 %v2001_v56, 0.0  ;;  %v1894_v61 = vadd.f32 %v1893_v63, %v7154_v10  ;;  %v1787_v9 = vadd.f32 %v7165_v18, %v1674_v45  ;;  %v6561_v56 = vld [vmem:[#allocation7 + $0x2ec] ss:$16 sps:$4 sm:$0xff]   ;;  %3941 = vmatpush2.bf16.msra.mxu1 %v6556_v46  ;;  %v6466_v45 = vld [vmem:[#allocation7 + $0xc8] ss:$16 sps:$4 sm:$0xff]  }
 0x167   :  { %v1895_v62 = vpop.f32.mrf.mxu0  ;;  %4136 = vmatprep.subr.bf16.mxu1 %v6561_v56 }
 0x168   :  { %v2008_v20 = vpop.f32.mrf.mxu1  ;;  %v2532_v2 = vmax.f32 %v2003_v59, 0.0  ;;  %v1896_v5 = vadd.f32 %v1895_v62, %v7161_v16  ;;  %v7331_v14 = vpack.c.bf16 %v2531_v38, %v2527_v27  ;;  %v2007_v18 = vadd.f32 %v2006_v52, %v1894_v61 }
 0x169   :  { %v1897_v0 = vpop.f32.mrf.mxu0 }
 0x16a   :  { %v2010_v55 = vpop.f32.mrf.mxu1  ;;  %v1898_v17 = vadd.f32 %v1897_v0, %v1785_v54  ;;  %v7327_v22 = vpack.c.bf16 %v2532_v2, %v2528_v13  ;;  %v2009_v60 = vadd.f32 %v2008_v20, %v1896_v5  ;;  %v6471_v20 = vld [vmem:[#allocation7 + $0xac] ss:$16 sps:$4 sm:$0xff]   ;;  %v2535_v5 = vmax.f32 %v2007_v18, 0.0 }
 0x16b   :  { %v1899_v16 = vpop.f32.mrf.mxu0 }
 0x16c   :  { %v2012_v34 = vpop.f32.mrf.mxu1  ;;  %v2011_v10 = vadd.f32 %v2010_v55, %v1898_v17  ;;  %v1900_v57 = vadd.f32 %v1899_v16, %v1787_v9  ;;  %3829 = vmatprep.mubr.bf16.mxu0 %v7327_v22  ;;  %v2536_v13 = vmax.f32 %v2009_v60, 0.0  ;;  %v6469_v9 = vld [vmem:[#allocation7 + $0xa8] ss:$16 sps:$4 sm:$0xff]   ;;  %v1694_v60 = vadd.f32 %v7213_v12, %v7115_v41 }
 0x16d   :  { %v1903_v54 = vpop.f32.mrf.mxu0  ;;  %3830 = vmatmul.mubr.bf16.vlgmr.msra.gmra.mxu0 %v7331_v14 }
 0x16e   :  { %v2016_v36 = vpop.f32.mrf.mxu1  ;;  %v2013_v63 = vadd.f32 %v2012_v34, %v1900_v57  ;;  %4024 = vmatpush1.bf16.msra.mxu0 %v6463_v53  ;;  %v2539_v59 = vmax.f32 %v2011_v10, 0.0  ;;  %v1904_v46 = vadd.f32 %v1903_v54, %v7179_v33  ;;  %v6472_v57 = vld [vmem:[#allocation7 + $0x88] ss:$16 sps:$4 sm:$0xff]   ;;  %v1807_v12 = vadd.f32 %v7215_v19, %v1694_v60 }
 0x16f   :  { %v1905_v38 = vpop.f32.mrf.mxu0  ;;  %4025 = vmatprep.subr.bf16.mxu0 %v6468_v58 }
 0x170   :  { %v2018_v62 = vpop.f32.mrf.mxu1  ;;  %v2540_v52 = vmax.f32 %v2013_v63, 0.0  ;;  %v1906_v2 = vadd.f32 %v1905_v38, %v7186_v42  ;;  %v7343_v17 = vpack.c.bf16 %v2539_v59, %v2535_v5  ;;  %v1692_v42 = vadd.f32 %v7207_v7, %v7111_v39  ;;  %v6477_v7 = vld [vmem:[#allocation7 + $0x6c] ss:$16 sps:$4 sm:$0xff]  }
 0x171   :  { %v1907_v27 = vpop.f32.mrf.mxu0  ;;  %v2017_v44 = vadd.f32 %v2016_v36, %v1904_v46 }
 0x172   :  { %v2020_v61 = vpop.f32.mrf.mxu1  ;;  %v1908_v0 = vadd.f32 %v1907_v27, %v1795_v21  ;;  %4026 = vmatpush1.bf16.msra.mxu0 %v6466_v45  ;;  %v7341_v55 = vpack.c.bf16 %v2540_v52, %v2536_v13  ;;  %v2019_v16 = vadd.f32 %v2018_v62, %v1906_v2  ;;  %v1805_v63 = vadd.f32 %v7209_v8, %v1692_v42  ;;  %v6475_v2 = vld [vmem:[#allocation7 + $0x68] ss:$16 sps:$4 sm:$0xff]   ;;  %v6480_v27 = vld [vmem:[#allocation7 + $0x4c] ss:$16 sps:$4 sm:$0xff]  }
 0x173   :  { %v1909_v53 = vpop.f32.mrf.mxu0  ;;  %4027 = vmatprep.subr.bf16.mxu0 %v6471_v20  ;;  %v2543_v38 = vmax.f32 %v2017_v44, 0.0 }
 0x174   :  { %v2022_v40 = vpop.f32.mrf.mxu1  ;;  %v2021_v33 = vadd.f32 %v2020_v61, %v1908_v0  ;;  %v1910_v34 = vadd.f32 %v1909_v53, %v1797_v43  ;;  %3839 = vmatprep.mubr.bf16.mxu0 %v7341_v55  ;;  %v2544_v45 = vmax.f32 %v2019_v16, 0.0  ;;  %v1704_v53 = vadd.f32 %v7238_v50, %v7115_v41 }
 0x175   :  { %v1913_v58 = vpop.f32.mrf.mxu0  ;;  %3840 = vmatmul.mubr.bf16.gmra.mxu0 %v7343_v17 }
 0x176   :  { %v2026_v56 = vpop.f32.mrf.mxu1  ;;  %v2023_v10 = vadd.f32 %v2022_v40, %v1910_v34  ;;  %4028 = vmatpush1.bf16.msra.mxu0 %v6469_v9  ;;  %v2547_v18 = vmax.f32 %v2021_v33, 0.0  ;;  %v1914_v62 = vadd.f32 %v1913_v58, %v7204_v1  ;;  %v1817_v50 = vadd.f32 %v7240_v51, %v1704_v53 }
 0x177   :  { %v1915_v54 = vpop.f32.mrf.mxu0  ;;  %4029 = vmatprep.subr.bf16.mxu0 %v6474_v3  ;;  %v6478_v3 = vld [vmem:[#allocation7 + $0x48] ss:$16 sps:$4 sm:$0xff]  }
 0x178   :  { %v2028_v37 = vpop.f32.mrf.mxu1  ;;  %v2548_v59 = vmax.f32 %v2023_v10, 0.0  ;;  %v1916_v36 = vadd.f32 %v1915_v54, %v7211_v11  ;;  %v7357_v5 = vpack.c.bf16 %v2547_v18, %v2543_v38  ;;  %v1702_v11 = vadd.f32 %v7232_v47, %v7111_v39  ;;  %v6483_v47 = vld [vmem:[#allocation7 + $0x2c] ss:$16 sps:$4 sm:$0xff]  }
 0x179   :  { %v1917_v20 = vpop.f32.mrf.mxu0  ;;  %v2027_v19 = vadd.f32 %v2026_v56, %v1914_v62 }
 0x17a   :  { %v2030_v21 = vpop.f32.mrf.mxu1  ;;  %v1918_v13 = vadd.f32 %v1917_v20, %v1805_v63  ;;  %4030 = vmatpush1.bf16.msra.mxu0 %v6472_v57  ;;  %v7355_v52 = vpack.c.bf16 %v2548_v59, %v2544_v45  ;;  %v2029_v61 = vadd.f32 %v2028_v37, %v1916_v36  ;;  %v1815_v34 = vadd.f32 %v7234_v48, %v1702_v11  ;;  %v6486_v59 = vld [vmem:[#allocation7 + $0xc] ss:$16 sps:$4 sm:$0xff]  }
 0x17b   :  { %v1919_v46 = vpop.f32.mrf.mxu0  ;;  %4031 = vmatprep.subr.bf16.mxu0 %v6477_v7  ;;  %v2551_v60 = vmax.f32 %v2027_v19, 0.0  ;;  %v6481_v7 = vld [vmem:[#allocation7 + $0x28] ss:$16 sps:$4 sm:$0xff]  }
 0x17c   :  { %v2032_v8 = vpop.f32.mrf.mxu1  ;;  %v2031_v1 = vadd.f32 %v2030_v21, %v1918_v13  ;;  %v1920_v43 = vadd.f32 %v1919_v46, %v1807_v12  ;;  %3849 = vmatprep.mubr.bf16.mxu0 %v7355_v52  ;;  %v2552_v44 = vmax.f32 %v2029_v61, 0.0  ;;  %v1714_v21 = vadd.f32 %v7263_v31, %v7115_v41  ;;  %v6484_v13 = vld [vmem:[#allocation7 + $0x8] ss:$16 sps:$4 sm:$0xff]  }
 0x17d   :  { %v1923_v0 = vpop.f32.mrf.mxu0  ;;  %3850 = vmatmul.mubr.bf16.gmra.mxu0 %v7357_v5 }
 0x17e   :  { %v2036_v9 = vpop.f32.mrf.mxu1  ;;  %v2033_v40 = vadd.f32 %v2032_v8, %v1920_v43  ;;  %4032 = vmatpush1.bf16.msra.mxu0 %v6475_v2  ;;  %v2555_v42 = vmax.f32 %v2031_v1, 0.0  ;;  %v1924_v10 = vadd.f32 %v1923_v0, %v7229_v35  ;;  %v1827_v31 = vadd.f32 %v7265_v32, %v1714_v21 }
 0x17f   :  { %v1925_v16 = vpop.f32.mrf.mxu0  ;;  %4033 = vmatprep.subr.bf16.mxu0 %v6480_v27 }
 0x180   :  { %v2038_v33 = vpop.f32.mrf.mxu1  ;;  %v2556_v58 = vmax.f32 %v2033_v40, 0.0  ;;  %v1926_v56 = vadd.f32 %v1925_v16, %v7236_v49  ;;  %v7371_v63 = vpack.c.bf16 %v2555_v42, %v2551_v60  ;;  %v1712_v49 = vadd.f32 %v7257_v28, %v7111_v39  ;;  %v6489_v28 = vld [vmem:[#allocation7 + $0x1ec] ss:$16 sps:$4 sm:$0xff]  }
 0x181   :  { %v1927_v57 = vpop.f32.mrf.mxu0  ;;  %v2037_v51 = vadd.f32 %v2036_v9, %v1924_v10  ;;  %v6490_v10 = vld [vmem:[#allocation7 + $0x1c8] ss:$16 sps:$4 sm:$0xff]  }
 0x182   :  { %v2040_v18 = vpop.f32.mrf.mxu1  ;;  %v1928_v54 = vadd.f32 %v1927_v57, %v1815_v34  ;;  %4034 = vmatpush1.bf16.msra.mxu0 %v6478_v3  ;;  %v7369_v37 = vpack.c.bf16 %v2556_v58, %v2552_v44  ;;  %v2039_v36 = vadd.f32 %v2038_v33, %v1926_v56  ;;  %v1825_v27 = vadd.f32 %v7259_v29, %v1712_v49  ;;  %v6487_v3 = vld [vmem:[#allocation7 + $0x1e8] ss:$16 sps:$4 sm:$0xff]   ;;  %v6492_v33 = vld [vmem:[#allocation7 + $0x1cc] ss:$16 sps:$4 sm:$0xff]  }
 0x183   :  { %v1929_v45 = vpop.f32.mrf.mxu0  ;;  %4035 = vmatprep.subr.bf16.mxu0 %v6483_v47  ;;  %v2559_v43 = vmax.f32 %v2037_v51, 0.0  ;;  %v1724_v56 = vadd.f32 %v7286_v15, %v7115_v41 }
 0x184   :  { %v2042_v48 = vpop.f32.mrf.mxu1  ;;  %v2041_v35 = vadd.f32 %v2040_v18, %v1928_v54  ;;  %v1930_v38 = vadd.f32 %v1929_v45, %v1817_v50  ;;  %3859 = vmatprep.mubr.bf16.mxu0 %v7369_v37  ;;  %v2560_v11 = vmax.f32 %v2039_v36, 0.0 }
 0x185   :  { %v1933_v62 = vpop.f32.mrf.mxu0  ;;  %3860 = vmatmul.mubr.bf16.gmra.mxu0 %v7371_v63  ;;  %v1837_v15 = vadd.f32 %v7288_v26, %v1724_v56 }
 0x186   :  { %v2046_v20 = vpop.f32.mrf.mxu1  ;;  %v2043_v12 = vadd.f32 %v2042_v48, %v1930_v38  ;;  %4036 = vmatpush1.bf16.msra.mxu0 %v6481_v7  ;;  %v2563_v2 = vmax.f32 %v2041_v35, 0.0  ;;  %v1934_v19 = vadd.f32 %v1933_v62, %v7254_v24  ;;  %v6493_v62 = vld [vmem:[#allocation7 + $0x1a8] ss:$16 sps:$4 sm:$0xff]  }
 0x187   :  { %v1935_v46 = vpop.f32.mrf.mxu0  ;;  %4037 = vmatprep.subr.bf16.mxu0 %v6486_v59 }
 0x188   :  { %v2048_v8 = vpop.f32.mrf.mxu1  ;;  %v2564_v61 = vmax.f32 %v2043_v12, 0.0  ;;  %v1936_v1 = vadd.f32 %v1935_v46, %v7261_v30  ;;  %v7385_v42 = vpack.c.bf16 %v2563_v2, %v2559_v43  ;;  %v1722_v30 = vadd.f32 %v7280_v23, %v7111_v39  ;;  %v6495_v23 = vld [vmem:[#allocation7 + $0x1ac] ss:$16 sps:$4 sm:$0xff]   ;;  %v8087_v43 = vld [vmem:[#allocation13_spill] sm:$0xff] }
 0x189   :  { %v1937_v0 = vpop.f32.mrf.mxu0  ;;  %v2047_v32 = vadd.f32 %v2046_v20, %v1934_v19  ;;  %v6498_v12 = vld [vmem:[#allocation7 + $0x18c] ss:$16 sps:$4 sm:$0xff]   ;;  %v8075_v19 = vsub.s32 2, %v8087_v43 }
 0x18a   :  { %v2050_v9 = vpop.f32.mrf.mxu1  ;;  %v1938_v53 = vadd.f32 %v1937_v0, %v1825_v27  ;;  %4038 = vmatpush1.bf16.msra.mxu0 %v6484_v13  ;;  %v7383_v40 = vpack.c.bf16 %v2564_v61, %v2560_v11  ;;  %v2049_v47 = vadd.f32 %v2048_v8, %v1936_v1  ;;  %v1835_v54 = vadd.f32 %v7282_v25, %v1722_v30  ;;  %v8086_v27 = vld [vmem:[#allocation18_spill] sm:$0xff]  ;;  %v8089_v30 = vld [vmem:[#allocation17_spill] sm:$0xff] }
 0x18b   :  { %v1939_v16 = vpop.f32.mrf.mxu0  ;;  %4039 = vmatprep.subr.bf16.mxu0 %v6489_v28  ;;  %v2567_v59 = vmax.f32 %v2047_v32, 0.0  ;;  %v1734_v11 = vadd.f32 %v8086_v27, %v7115_v41  ;;  %v6496_v1 = vld [vmem:[#allocation7 + $0x188] ss:$16 sps:$4 sm:$0xff]  }
 0x18c   :  { %v2052_v29 = vpop.f32.mrf.mxu1  ;;  %v2051_v24 = vadd.f32 %v2050_v9, %v1938_v53  ;;  %v1940_v34 = vadd.f32 %v1939_v16, %v1827_v31  ;;  %3869 = vmatprep.mubr.bf16.mxu0 %v7383_v40  ;;  %v2568_v7 = vmax.f32 %v2049_v47, 0.0  ;;  %v6501_v31 = vld [vmem:[#allocation7 + $0x16c] ss:$16 sps:$4 sm:$0xff]   ;;  %v8076_v53 = vsub.s32 3, %v8087_v43 }
 0x18d   :  { %v1943_v44 = vpop.f32.mrf.mxu0  ;;  %3870 = vmatmul.mubr.bf16.gmra.mxu0 %v7385_v42  ;;  %v8090_v41 = vld [vmem:[#allocation14_spill] sm:$0xff] }
 0x18e   :  { %v2056_v58 = vpop.f32.mrf.mxu1  ;;  %v2053_v60 = vadd.f32 %v2052_v29, %v1940_v34  ;;  %4040 = vmatpush2.bf16.msra.mxu0 %v6487_v3  ;;  %v2571_v57 = vmax.f32 %v2051_v24, 0.0  ;;  %v1944_v49 = vadd.f32 %v1943_v44, %v7277_v6  ;;  %v8088_v3 = vld [vmem:[#allocation16_spill] sm:$0xff] }
 0x18f   :  { %v1945_v18 = vpop.f32.mrf.mxu0  ;;  %4041 = vmatprep.subr.bf16.mxu0 %v6492_v33 }
 0x190   :  { %v2058_v50 = vpop.f32.mrf.mxu1  ;;  %v2572_v45 = vmax.f32 %v2053_v60, 0.0  ;;  %v1946_v48 = vadd.f32 %v1945_v18, %v7284_v4  ;;  %v7399_v20 = vpack.c.bf16 %v2571_v57, %v2567_v59  ;;  %v8085_v4 = vld [vmem:[#allocation15_spill] sm:$0xff]  ;;  %v2057_v26 = vadd.f32 %v2056_v58, %v1944_v49  ;;  %v6694_v57 = vld [vmem:[%s8065_s2] sm:$0xf] }
 0x191   :  { %v1947_v36 = vpop.f32.mrf.mxu0  ;;  %v1732_v13 = vadd.f32 %v8085_v4, %v7111_v39  ;;  %v8091_v58 = vld [vmem:[#allocation19_spill] sm:$0xff]  ;;  %v7420_v18 = vrot.slane %v6694_v57, %v8075_v19 }
 0x192   :  { %v2060_v35 = vpop.f32.mrf.mxu1  ;;  %v1948_v38 = vadd.f32 %v1947_v36, %v1835_v54  ;;  %4042 = vmatpush2.bf16.msra.mxu0 %v6490_v10  ;;  %v7397_v51 = vpack.c.bf16 %v2572_v45, %v2568_v7  ;;  %v2059_v2 = vadd.f32 %v2058_v50, %v1946_v48  ;;  %v2575_v24 = vmax.f32 %v2057_v26, 0.0  ;;  %v6499_v50 = vld [vmem:[#allocation7 + $0x168] ss:$16 sps:$4 sm:$0xff]   ;;  %v6504_v45 = vld [vmem:[#allocation7 + $0x14c] ss:$16 sps:$4 sm:$0xff]  }
 0x193   :  { %v1949_v21 = vpop.f32.mrf.mxu0  ;;  %4043 = vmatprep.subr.bf16.mxu0 %v6495_v23  ;;  %v1845_v16 = vadd.f32 %v8088_v3, %v1732_v13  ;;  %v1847_v56 = vadd.f32 %v8091_v58, %v1734_v11  ;;  %v7427_v36 = vrot.slane %v6694_v57, %v8076_v53  ;;  %v6510_v3 = vld [vmem:[#allocation7 + $0x10c] ss:$16 sps:$4 sm:$0xff]  }
 0x194   :  { %v2062_v25 = vpop.f32.mrf.mxu1  ;;  %v2061_v6 = vadd.f32 %v2060_v35, %v1948_v38  ;;  %v1950_v46 = vadd.f32 %v1949_v21, %v1837_v15  ;;  %3879 = vmatprep.mubr.bf16.mxu0 %v7397_v51  ;;  %v2576_v29 = vmax.f32 %v2059_v2, 0.0  ;;  %v6507_v2 = vld [vmem:[#allocation7 + $0x12c] ss:$16 sps:$4 sm:$0xff]  }
 0x195   :  { %v1953_v8 = vpop.f32.mrf.mxu0  ;;  %3880 = vmatmul.mubr.bf16.gmra.mxu0 %v7399_v20 }
 0x196   :  { %v2066_v28 = vpop.f32.mrf.mxu1  ;;  %v2063_v61 = vadd.f32 %v2062_v25, %v1950_v46  ;;  %4044 = vmatpush2.bf16.msra.mxu0 %v6493_v62  ;;  %v2579_v0 = vmax.f32 %v2061_v6, 0.0  ;;  %v1954_v34 = vadd.f32 %v1953_v8, %v8090_v41  ;;  %v6502_v25 = vld [vmem:[#allocation7 + $0x148] ss:$16 sps:$4 sm:$0xff]  }
 0x197   :  { %v1955_v39 = vpop.f32.mrf.mxu0  ;;  %4045 = vmatprep.subr.bf16.mxu0 %v6498_v12 }
 0x198   :  { %v2068_v9 = vpop.f32.mrf.mxu1  ;;  %v2580_v33 = vmax.f32 %v2063_v61, 0.0  ;;  %v1956_v47 = vadd.f32 %v1955_v39, %v8089_v30  ;;  %v7422_v23 = vpack.c.bf16 %v2579_v0, %v2575_v24  ;;  %v2067_v35 = vadd.f32 %v2066_v28, %v1954_v34  ;;  %v6505_v0 = vld [vmem:[#allocation7 + $0x128] ss:$16 sps:$4 sm:$0xff]  }
 0x199   :  { %v1957_v32 = vpop.f32.mrf.mxu0  ;;  %v6508_v30 = vld [vmem:[#allocation7 + $0x108] ss:$16 sps:$4 sm:$0xff]  }
 0x19a   :  { %v2070_v44 = vpop.f32.mrf.mxu1  ;;  %v1958_v60 = vadd.f32 %v1957_v32, %v1845_v16  ;;  %4046 = vmatpush2.bf16.msra.mxu0 %v6496_v1  ;;  %v7413_v10 = vpack.c.bf16 %v2580_v33, %v2576_v29  ;;  %v2069_v48 = vadd.f32 %v2068_v9, %v1956_v47  ;;  %v2583_v28 = vmax.f32 %v2067_v35, 0.0 }
 0x19b   :  { %v1959_v54 = vpop.f32.mrf.mxu0  ;;  %4047 = vmatprep.subr.bf16.mxu0 %v6501_v31 }
 0x19c   :  { %v2072_v7 = vpop.f32.mrf.mxu1  ;;  %v2071_v59 = vadd.f32 %v2070_v44, %v1958_v60  ;;  %v1960_v49 = vadd.f32 %v1959_v54, %v1847_v56  ;;  %3889 = vmatprep.mubr.bf16.mxu0 %v7413_v10  ;;  %v2584_v6 = vmax.f32 %v2069_v48, 0.0 }
 0x19d   :  { %v2109_v15 = vpop.f32.mrf.mxu0  ;;  %3890 = vmatmul.mubr.bf16.gmra.mxu0 %v7422_v23 }
 0x19e   :  { %v2222_v38 = vpop.f32.mrf.mxu1  ;;  %v2073_v62 = vadd.f32 %v2072_v7, %v1960_v49  ;;  %v2110_v21 = vadd.f32 %v2109_v15, %v7420_v18  ;;  %4048 = vmatpush2.bf16.msra.mxu0 %v6499_v50  ;;  %v2587_v12 = vmax.f32 %v2071_v59, 0.0 }
 0x19f   :  { %v2111_v4 = vpop.f32.mrf.mxu0  ;;  %4049 = vmatprep.subr.bf16.mxu0 %v6504_v45 }
 0x1a0   :  { %v2224_v13 = vpop.f32.mrf.mxu1  ;;  %v2588_v46 = vmax.f32 %v2073_v62, 0.0  ;;  %v7431_v26 = vadd.f32 %v2222_v38, %v2110_v21  ;;  %v2112_v8 = vadd.f32 %v2111_v4, %v7427_v36  ;;  %v7442_v39 = vpack.c.bf16 %v2587_v12, %v2583_v28 }
 0x1a1   :  { %v7434_v27 = vpop.f32.mrf.mxu0 }
 0x1a2   :  { %v7436_v11 = vpop.f32.mrf.mxu1  ;;  %v7438_v61 = vadd.f32 %v2224_v13, %v2112_v8  ;;  %4050 = vmatpush2.bf16.msra.mxu0 %v6502_v25  ;;  %v7440_v1 = vpack.c.bf16 %v2588_v46, %v2584_v6 }
 0x1a3   :  { %v7444_v9 = vpop.f32.mrf.mxu0  ;;  %4051 = vmatprep.subr.bf16.mxu0 %v6507_v2 }
 0x1a4   :  { %v7446_v31 = vpop.f32.mrf.mxu1  ;;  %3899 = vmatprep.mubr.bf16.mxu0 %v7440_v1 }
 0x1a5   :  { %v2119_v16 = vpop.f32.mrf.mxu0  ;;  %3900 = vmatmul.mubr.bf16.gmra.mxu0 %v7442_v39 }
 0x1a6   :  { %v2232_v29 = vpop.f32.mrf.mxu1  ;;  %v2120_v33 = vadd.f32 %v2119_v16, %v7420_v18  ;;  %4052 = vmatpush2.bf16.msra.mxu0 %v6505_v0  ;;  %4055 = vmatprep.mubr.bf16.mxu0 %v7327_v22 }
 0x1a7   :  { %v2121_v47 = vpop.f32.mrf.mxu0  ;;  %4053 = vmatprep.subr.bf16.mxu0 %v6510_v3 }
 0x1a8   :  { %v2234_v24 = vpop.f32.mrf.mxu1  ;;  %v7452_v41 = vadd.f32 %v2232_v29, %v2120_v33  ;;  %v2122_v34 = vadd.f32 %v2121_v47, %v7427_v36 }
 0x1a9   :  { %v7455_v32 = vpop.f32.mrf.mxu0 }
 0x1aa   :  { %v7457_v44 = vpop.f32.mrf.mxu1  ;;  %v7459_v58 = vadd.f32 %v2234_v24, %v2122_v34  ;;  %4054 = vmatpush2.bf16.msra.mxu0 %v6508_v30 }
 0x1ab   :  { %v7461_v56 = vpop.f32.mrf.mxu0 }
 0x1ac   :  { %v7463_v60 = vpop.f32.mrf.mxu1 }
 0x1ad   :  { %v2129_v22 = vpop.f32.mrf.mxu0  ;;  %4056 = vmatmul.mubr.bf16.vlgmr.msra.gmra.mxu0 %v7331_v14 }
 0x1ae   :  { %v2242_v57 = vpop.f32.mrf.mxu1  ;;  %v2130_v50 = vadd.f32 %v2129_v22, %v7420_v18  ;;  %4065 = vmatprep.mubr.bf16.mxu0 %v7341_v55 }
 0x1af   :  { %v2131_v54 = vpop.f32.mrf.mxu0 }
 0x1b0   :  { %v2244_v7 = vpop.f32.mrf.mxu1  ;;  %v7468_v45 = vadd.f32 %v2242_v57, %v2130_v50  ;;  %v2132_v48 = vadd.f32 %v2131_v54, %v7427_v36 }
 0x1b1   :  { %v7471_v59 = vpop.f32.mrf.mxu0 }
 0x1b2   :  { %v7473_v49 = vpop.f32.mrf.mxu1  ;;  %v7475_v35 = vadd.f32 %v2244_v7, %v2132_v48 }
 0x1b3   :  { %v7477_v15 = vpop.f32.mrf.mxu0 }
 0x1b4   :  { %v7479_v38 = vpop.f32.mrf.mxu1 }
 0x1b5   :  { %v2139_v14 = vpop.f32.mrf.mxu0  ;;  %4066 = vmatmul.mubr.bf16.gmra.mxu0 %v7343_v17 }
 0x1b6   :  { %v2252_v62 = vpop.f32.mrf.mxu1  ;;  %v2140_v55 = vadd.f32 %v2139_v14, %v7420_v18  ;;  %4075 = vmatprep.mubr.bf16.mxu0 %v7355_v52 }
 0x1b7   :  { %v2141_v21 = vpop.f32.mrf.mxu0 }
 0x1b8   :  { %v2254_v25 = vpop.f32.mrf.mxu1  ;;  %v7484_v12 = vadd.f32 %v2252_v62, %v2140_v55  ;;  %v2142_v4 = vadd.f32 %v2141_v21, %v7427_v36 }
 0x1b9   :  { %v7487_v13 = vpop.f32.mrf.mxu0 }
 0x1ba   :  { %v7489_v2 = vpop.f32.mrf.mxu1  ;;  %v7491_v6 = vadd.f32 %v2254_v25, %v2142_v4 }
 0x1bb   :  { %v7493_v46 = vpop.f32.mrf.mxu0 }
 0x1bc   :  { %v7495_v8 = vpop.f32.mrf.mxu1 }
 0x1bd   :  { %v2149_v17 = vpop.f32.mrf.mxu0  ;;  %4076 = vmatmul.mubr.bf16.gmra.mxu0 %v7357_v5 }
 0x1be   :  { %v2262_v28 = vpop.f32.mrf.mxu1  ;;  %v2150_v52 = vadd.f32 %v2149_v17, %v7420_v18  ;;  %4085 = vmatprep.mubr.bf16.mxu0 %v7369_v37 }
 0x1bf   :  { %v2151_v0 = vpop.f32.mrf.mxu0 }
 0x1c0   :  { %v2264_v3 = vpop.f32.mrf.mxu1  ;;  %v7500_v16 = vadd.f32 %v2262_v28, %v2150_v52  ;;  %v2152_v29 = vadd.f32 %v2151_v0, %v7427_v36 }
 0x1c1   :  { %v7503_v33 = vpop.f32.mrf.mxu0 }
 0x1c2   :  { %v7505_v30 = vpop.f32.mrf.mxu1  ;;  %v7507_v47 = vadd.f32 %v2264_v3, %v2152_v29 }
 0x1c3   :  { %v7509_v24 = vpop.f32.mrf.mxu0 }
 0x1c4   :  { %v7511_v34 = vpop.f32.mrf.mxu1 }
 0x1c5   :  { %v2159_v5 = vpop.f32.mrf.mxu0  ;;  %4086 = vmatmul.mubr.bf16.gmra.mxu0 %v7371_v63 }
 0x1c6   :  { %v2272_v22 = vpop.f32.mrf.mxu1  ;;  %v2160_v37 = vadd.f32 %v2159_v5, %v7420_v18  ;;  %4095 = vmatprep.mubr.bf16.mxu0 %v7383_v40 }
 0x1c7   :  { %v2161_v57 = vpop.f32.mrf.mxu0 }
 0x1c8   :  { %v2274_v50 = vpop.f32.mrf.mxu1  ;;  %v7516_v54 = vadd.f32 %v2272_v22, %v2160_v37  ;;  %v2162_v7 = vadd.f32 %v2161_v57, %v7427_v36 }
 0x1c9   :  { %v7519_v48 = vpop.f32.mrf.mxu0 }
 0x1ca   :  { %v7521_v14 = vpop.f32.mrf.mxu1  ;;  %v7523_v62 = vadd.f32 %v2274_v50, %v2162_v7 }
 0x1cb   :  { %v7525_v55 = vpop.f32.mrf.mxu0 }
 0x1cc   :  { %v7527_v21 = vpop.f32.mrf.mxu1 }
 0x1cd   :  { %v2169_v63 = vpop.f32.mrf.mxu0  ;;  %4096 = vmatmul.mubr.bf16.gmra.mxu0 %v7385_v42 }
 0x1ce   :  { %v2282_v25 = vpop.f32.mrf.mxu1  ;;  %v2170_v40 = vadd.f32 %v2169_v63, %v7420_v18  ;;  %4105 = vmatprep.mubr.bf16.mxu0 %v7397_v51 }
 0x1cf   :  { %v2171_v4 = vpop.f32.mrf.mxu0 }
 0x1d0   :  { %v2284_v17 = vpop.f32.mrf.mxu1  ;;  %v7532_v28 = vadd.f32 %v2282_v25, %v2170_v40  ;;  %v2172_v52 = vadd.f32 %v2171_v4, %v7427_v36 }
 0x1d1   :  { %v7535_v0 = vpop.f32.mrf.mxu0 }
 0x1d2   :  { %v7537_v3 = vpop.f32.mrf.mxu1  ;;  %v7539_v29 = vadd.f32 %v2284_v17, %v2172_v52 }
 0x1d3   :  { %v7541_v5 = vpop.f32.mrf.mxu0 }
 0x1d4   :  { %v7543_v22 = vpop.f32.mrf.mxu1 }
 0x1d5   :  { %v2179_v42 = vpop.f32.mrf.mxu0  ;;  %4106 = vmatmul.mubr.bf16.gmra.mxu0 %v7399_v20  ;;  %v2114_v20 = vadd.f32 %v7434_v27, %v7420_v18 }
 0x1d6   :  { %v2292_v37 = vpop.f32.mrf.mxu1  ;;  %v2180_v51 = vadd.f32 %v2179_v42, %v7420_v18  ;;  %4115 = vmatprep.mubr.bf16.mxu0 %v7413_v10 }
 0x1d7   :  { %v2181_v57 = vpop.f32.mrf.mxu0 }
 0x1d8   :  { %v2294_v50 = vpop.f32.mrf.mxu1  ;;  %v7548_v7 = vadd.f32 %v2292_v37, %v2180_v51  ;;  %v2182_v63 = vadd.f32 %v2181_v57, %v7427_v36  ;;  %v2116_v37 = vadd.f32 %v7444_v9, %v7427_v36  ;;  %v2124_v9 = vadd.f32 %v7455_v32, %v7420_v18 }
 0x1d9   :  { %v7551_v25 = vpop.f32.mrf.mxu0 }
 0x1da   :  { %8092 = vst [vmem:[#allocation15_spill] sm:$0xff] %v7548_v7  ;;  %8093 = vst [vmem:[#allocation18_spill] sm:$0xff] %v7551_v25  ;;  %v7553_v40 = vpop.f32.mrf.mxu1  ;;  %v7555_v4 = vadd.f32 %v2294_v50, %v2182_v63  ;;  %v2227_v50 = vadd.f32 %v7436_v11, %v2114_v20  ;;  %v2229_v27 = vadd.f32 %v7446_v31, %v2116_v37 }
 0x1db   :  { %8094 = vst [vmem:[#allocation16_spill] sm:$0xff] %v7553_v40  ;;  %v7557_v17 = vpop.f32.mrf.mxu0 }
 0x1dc   :  { %8095 = vst [vmem:[#allocation17_spill] sm:$0xff] %v7555_v4  ;;  %8096 = vst [vmem:[#allocation14_spill] sm:$0xff] %v7557_v17  ;;  %v7559_v52 = vpop.f32.mrf.mxu1 }
 0x1dd   :  { %8097 = vst [vmem:[#allocation19_spill] sm:$0xff] %v7559_v52  ;;  %v2335_v10 = vpop.f32.mrf.mxu0  ;;  %4116 = vmatmul.mubr.bf16.gmra.mxu0 %v7422_v23 }
 0x1de   :  { %v2448_v42 = vpop.f32.mrf.mxu1  ;;  %4125 = vmatprep.mubr.bf16.mxu0 %v7440_v1  ;;  %v2336_v19 = vadd.f32 %v2335_v10, %v7431_v26  ;;  %v2126_v26 = vadd.f32 %v7461_v56, %v7427_v36  ;;  %v2237_v10 = vadd.f32 %v7457_v44, %v2124_v9  ;;  %v6559_v56 = vld [vmem:[#allocation7 + $0x2e8] ss:$16 sps:$4 sm:$0xff]   ;;  %v6564_v44 = vld [vmem:[#allocation7 + $0x2cc] ss:$16 sps:$4 sm:$0xff]  }
 0x1df   :  { %v2337_v51 = vpop.f32.mrf.mxu0 }
 0x1e0   :  { %v2450_v57 = vpop.f32.mrf.mxu1  ;;  %v2338_v63 = vadd.f32 %v2337_v51, %v7438_v61  ;;  %v2449_v17 = vadd.f32 %v2448_v42, %v2336_v19 }
 0x1e1   :  { %v2339_v53 = vpop.f32.mrf.mxu0 }
 0x1e2   :  { %v2452_v43 = vpop.f32.mrf.mxu1  ;;  %v2340_v52 = vadd.f32 %v2339_v53, %v2227_v50  ;;  %v2451_v4 = vadd.f32 %v2450_v57, %v2338_v63 }
 0x1e3   :  { %v2341_v7 = vpop.f32.mrf.mxu0 }
 0x1e4   :  { %v2454_v23 = vpop.f32.mrf.mxu1  ;;  %v2453_v1 = vadd.f32 %v2452_v43, %v2340_v52  ;;  %v2342_v40 = vadd.f32 %v2341_v7, %v2229_v27  ;;  %v2530_v37 = vmax.f32 %v2451_v4, 0.0  ;;  %v2529_v43 = vmax.f32 %v2449_v17, 0.0 }
 0x1e5   :  { %v2345_v25 = vpop.f32.mrf.mxu0  ;;  %4126 = vmatmul.mubr.bf16.gmra.mxu0 %v7442_v39  ;;  %v2239_v39 = vadd.f32 %v7463_v60, %v2126_v26  ;;  %v2134_v4 = vadd.f32 %v7471_v59, %v7420_v18  ;;  %v6567_v59 = vld [vmem:[#allocation7 + $0x2ac] ss:$16 sps:$4 sm:$0xff]  }
 0x1e6   :  { %v2458_v11 = vpop.f32.mrf.mxu1  ;;  %v2455_v61 = vadd.f32 %v2454_v23, %v2342_v40  ;;  %v2533_v20 = vmax.f32 %v2453_v1, 0.0  ;;  %v2346_v19 = vadd.f32 %v2345_v25, %v7452_v41  ;;  %v2136_v23 = vadd.f32 %v7477_v15, %v7427_v36  ;;  %v6562_v1 = vld [vmem:[#allocation7 + $0x2c8] ss:$16 sps:$4 sm:$0xff]  }
 0x1e7   :  { %v2347_v31 = vpop.f32.mrf.mxu0 }
 0x1e8   :  { %v2460_v53 = vpop.f32.mrf.mxu1  ;;  %v2534_v51 = vmax.f32 %v2455_v61, 0.0  ;;  %v2348_v32 = vadd.f32 %v2347_v31, %v7459_v58  ;;  %v7582_v40 = vpack.c.bf16 %v2533_v20, %v2529_v43  ;;  %v2459_v41 = vadd.f32 %v2458_v11, %v2346_v19 }
 0x1e9   :  { %v2349_v7 = vpop.f32.mrf.mxu0  ;;  %v2247_v31 = vadd.f32 %v7473_v49, %v2134_v4  ;;  %v2249_v15 = vadd.f32 %v7479_v38, %v2136_v23 }
 0x1ea   :  { %v2462_v52 = vpop.f32.mrf.mxu1  ;;  %v2350_v42 = vadd.f32 %v2349_v7, %v2237_v10  ;;  %v7580_v57 = vpack.c.bf16 %v2534_v51, %v2530_v37  ;;  %v2461_v58 = vadd.f32 %v2460_v53, %v2348_v32  ;;  %v2537_v37 = vmax.f32 %v2459_v41, 0.0 }
 0x1eb   :  { %v2351_v50 = vpop.f32.mrf.mxu0 }
 0x1ec   :  { %v2464_v63 = vpop.f32.mrf.mxu1  ;;  %v2463_v17 = vadd.f32 %v2462_v52, %v2350_v42  ;;  %v2352_v27 = vadd.f32 %v2351_v50, %v2239_v39  ;;  %3942 = vmatprep.mubr.bf16.mxu1 %v7580_v57  ;;  %v2538_v53 = vmax.f32 %v2461_v58, 0.0  ;;  %v6565_v52 = vld [vmem:[#allocation7 + $0x2a8] ss:$16 sps:$4 sm:$0xff]   ;;  %v2146_v58 = vadd.f32 %v7493_v46, %v7427_v36 }
 0x1ed   :  { %v2355_v25 = vpop.f32.mrf.mxu0  ;;  %3943 = vmatmul.mubr.bf16.vlgmr.msra.gmra.mxu1 %v7582_v40 }
 0x1ee   :  { %v2468_v60 = vpop.f32.mrf.mxu1  ;;  %v2465_v9 = vadd.f32 %v2464_v63, %v2352_v27  ;;  %4137 = vmatpush1.bf16.msra.mxu1 %v6559_v56  ;;  %v2541_v26 = vmax.f32 %v2463_v17, 0.0  ;;  %v2356_v51 = vadd.f32 %v2355_v25, %v7468_v45  ;;  %v6570_v56 = vld [vmem:[#allocation7 + $0x28c] ss:$16 sps:$4 sm:$0xff]   ;;  %v6568_v27 = vld [vmem:[#allocation7 + $0x288] ss:$16 sps:$4 sm:$0xff]   ;;  %v2259_v46 = vadd.f32 %v7495_v8, %v2146_v58 }
 0x1ef   :  { %v2357_v61 = vpop.f32.mrf.mxu0  ;;  %4138 = vmatprep.subr.bf16.mxu1 %v6564_v44 }
 0x1f0   :  { %v2470_v20 = vpop.f32.mrf.mxu1  ;;  %v2542_v10 = vmax.f32 %v2465_v9, 0.0  ;;  %v2358_v11 = vadd.f32 %v2357_v61, %v7475_v35  ;;  %v7596_v39 = vpack.c.bf16 %v2541_v26, %v2537_v37  ;;  %v2144_v35 = vadd.f32 %v7487_v13, %v7420_v18  ;;  %v6573_v13 = vld [vmem:[#allocation7 + $0x26c] ss:$16 sps:$4 sm:$0xff]  }
 0x1f1   :  { %v2359_v32 = vpop.f32.mrf.mxu0  ;;  %v2469_v38 = vadd.f32 %v2468_v60, %v2356_v51 }
 0x1f2   :  { %v2472_v43 = vpop.f32.mrf.mxu1  ;;  %v2360_v19 = vadd.f32 %v2359_v32, %v2247_v31  ;;  %4139 = vmatpush1.bf16.msra.mxu1 %v6562_v1  ;;  %v7594_v7 = vpack.c.bf16 %v2542_v10, %v2538_v53  ;;  %v2471_v50 = vadd.f32 %v2470_v20, %v2358_v11  ;;  %v2257_v9 = vadd.f32 %v7489_v2, %v2144_v35  ;;  %v6571_v11 = vld [vmem:[#allocation7 + $0x268] ss:$16 sps:$4 sm:$0xff]   ;;  %v6576_v32 = vld [vmem:[#allocation7 + $0x24c] ss:$16 sps:$4 sm:$0xff]  }
 0x1f3   :  { %v2361_v42 = vpop.f32.mrf.mxu0  ;;  %4140 = vmatprep.subr.bf16.mxu1 %v6567_v59  ;;  %v2545_v61 = vmax.f32 %v2469_v38, 0.0 }
 0x1f4   :  { %v2474_v49 = vpop.f32.mrf.mxu1  ;;  %v2473_v45 = vadd.f32 %v2472_v43, %v2360_v19  ;;  %v2362_v63 = vadd.f32 %v2361_v42, %v2249_v15  ;;  %3952 = vmatprep.mubr.bf16.mxu1 %v7594_v7  ;;  %v2546_v1 = vmax.f32 %v2471_v50, 0.0  ;;  %v2156_v42 = vadd.f32 %v7509_v24, %v7427_v36 }
 0x1f5   :  { %v2365_v44 = vpop.f32.mrf.mxu0  ;;  %3953 = vmatmul.mubr.bf16.gmra.mxu1 %v7596_v39 }
 0x1f6   :  { %v2478_v4 = vpop.f32.mrf.mxu1  ;;  %v2475_v17 = vadd.f32 %v2474_v49, %v2362_v63  ;;  %4141 = vmatpush1.bf16.msra.mxu1 %v6565_v52  ;;  %v2549_v41 = vmax.f32 %v2473_v45, 0.0  ;;  %v2366_v20 = vadd.f32 %v2365_v44, %v7484_v12  ;;  %v2269_v24 = vadd.f32 %v7511_v34, %v2156_v42 }
 0x1f7   :  { %v2367_v25 = vpop.f32.mrf.mxu0  ;;  %4142 = vmatprep.subr.bf16.mxu1 %v6570_v56  ;;  %v6574_v56 = vld [vmem:[#allocation7 + $0x248] ss:$16 sps:$4 sm:$0xff]  }
 0x1f8   :  { %v2480_v23 = vpop.f32.mrf.mxu1  ;;  %v2550_v26 = vmax.f32 %v2475_v17, 0.0  ;;  %v2368_v60 = vadd.f32 %v2367_v25, %v7491_v6  ;;  %v7610_v37 = vpack.c.bf16 %v2549_v41, %v2545_v61  ;;  %v2154_v6 = vadd.f32 %v7503_v33, %v7420_v18  ;;  %v6579_v33 = vld [vmem:[#allocation7 + $0x22c] ss:$16 sps:$4 sm:$0xff]  }
 0x1f9   :  { %v2369_v59 = vpop.f32.mrf.mxu0  ;;  %v2479_v8 = vadd.f32 %v2478_v4, %v2366_v20 }
 0x1fa   :  { %v2482_v31 = vpop.f32.mrf.mxu1  ;;  %v2370_v53 = vadd.f32 %v2369_v59, %v2257_v9  ;;  %4143 = vmatpush1.bf16.msra.mxu1 %v6568_v27  ;;  %v7608_v10 = vpack.c.bf16 %v2550_v26, %v2546_v1  ;;  %v2481_v43 = vadd.f32 %v2480_v23, %v2368_v60  ;;  %v2267_v63 = vadd.f32 %v7505_v30, %v2154_v6  ;;  %v6582_v26 = vld [vmem:[#allocation7 + $0x20c] ss:$16 sps:$4 sm:$0xff]  }
 0x1fb   :  { %v2371_v51 = vpop.f32.mrf.mxu0  ;;  %4144 = vmatprep.subr.bf16.mxu1 %v6573_v13  ;;  %v2553_v58 = vmax.f32 %v2479_v8, 0.0  ;;  %v6577_v13 = vld [vmem:[#allocation7 + $0x228] ss:$16 sps:$4 sm:$0xff]  }
 0x1fc   :  { %v2484_v2 = vpop.f32.mrf.mxu1  ;;  %v2483_v12 = vadd.f32 %v2482_v31, %v2370_v53  ;;  %v2372_v15 = vadd.f32 %v2371_v51, %v2259_v46  ;;  %3962 = vmatprep.mubr.bf16.mxu1 %v7608_v10  ;;  %v2554_v38 = vmax.f32 %v2481_v43, 0.0  ;;  %v2166_v31 = vadd.f32 %v7525_v55, %v7427_v36  ;;  %v6580_v53 = vld [vmem:[#allocation7 + $0x208] ss:$16 sps:$4 sm:$0xff]  }
 0x1fd   :  { %v2375_v19 = vpop.f32.mrf.mxu0  ;;  %3963 = vmatmul.mubr.bf16.gmra.mxu1 %v7610_v37 }
 0x1fe   :  { %v2488_v52 = vpop.f32.mrf.mxu1  ;;  %v2485_v49 = vadd.f32 %v2484_v2, %v2372_v15  ;;  %4145 = vmatpush1.bf16.msra.mxu1 %v6571_v11  ;;  %v2557_v35 = vmax.f32 %v2483_v12, 0.0  ;;  %v2376_v17 = vadd.f32 %v2375_v19, %v7500_v16  ;;  %v2279_v55 = vadd.f32 %v7527_v21, %v2166_v31 }
 0x1ff   :  { %v2377_v50 = vpop.f32.mrf.mxu0  ;;  %4146 = vmatprep.subr.bf16.mxu1 %v6576_v32 }
 0x200   :  { %v2490_v45 = vpop.f32.mrf.mxu1  ;;  %v2558_v44 = vmax.f32 %v2485_v49, 0.0  ;;  %v2378_v4 = vadd.f32 %v2377_v50, %v7507_v47  ;;  %v7624_v9 = vpack.c.bf16 %v2557_v35, %v2553_v58  ;;  %v2164_v47 = vadd.f32 %v7519_v48, %v7420_v18  ;;  %v6585_v48 = vld [vmem:[#allocation7 + $0x3ec] ss:$16 sps:$4 sm:$0xff]  }
 0x201   :  { %v2379_v27 = vpop.f32.mrf.mxu0  ;;  %v2489_v34 = vadd.f32 %v2488_v52, %v2376_v17  ;;  %v6586_v17 = vld [vmem:[#allocation7 + $0x3c8] ss:$16 sps:$4 sm:$0xff]  }
 0x202   :  { %v2492_v41 = vpop.f32.mrf.mxu1  ;;  %v2380_v25 = vadd.f32 %v2379_v27, %v2267_v63  ;;  %4147 = vmatpush1.bf16.msra.mxu1 %v6574_v56  ;;  %v7622_v23 = vpack.c.bf16 %v2558_v44, %v2554_v38  ;;  %v2491_v60 = vadd.f32 %v2490_v45, %v2378_v4  ;;  %v2277_v32 = vadd.f32 %v7521_v14, %v2164_v47  ;;  %v6583_v56 = vld [vmem:[#allocation7 + $0x3e8] ss:$16 sps:$4 sm:$0xff]   ;;  %v6588_v45 = vld [vmem:[#allocation7 + $0x3cc] ss:$16 sps:$4 sm:$0xff]  }
 0x203   :  { %v2381_v1 = vpop.f32.mrf.mxu0  ;;  %4148 = vmatprep.subr.bf16.mxu1 %v6579_v33  ;;  %v2561_v15 = vmax.f32 %v2489_v34, 0.0  ;;  %v2176_v4 = vadd.f32 %v7541_v5, %v7427_v36 }
 0x204   :  { %v2494_v30 = vpop.f32.mrf.mxu1  ;;  %v2493_v16 = vadd.f32 %v2492_v41, %v2380_v25  ;;  %v2382_v61 = vadd.f32 %v2381_v1, %v2269_v24  ;;  %3972 = vmatprep.mubr.bf16.mxu1 %v7622_v23  ;;  %v2562_v6 = vmax.f32 %v2491_v60, 0.0 }
 0x205   :  { %v2385_v20 = vpop.f32.mrf.mxu0  ;;  %3973 = vmatmul.mubr.bf16.gmra.mxu1 %v7624_v9  ;;  %v2289_v5 = vadd.f32 %v7543_v22, %v2176_v4 }
 0x206   :  { %v2498_v59 = vpop.f32.mrf.mxu1  ;;  %v2495_v46 = vadd.f32 %v2494_v30, %v2382_v61  ;;  %4149 = vmatpush1.bf16.msra.mxu1 %v6577_v13  ;;  %v2565_v11 = vmax.f32 %v2493_v16, 0.0  ;;  %v2386_v8 = vadd.f32 %v2385_v20, %v7516_v54  ;;  %v6589_v20 = vld [vmem:[#allocation7 + $0x3a8] ss:$16 sps:$4 sm:$0xff]  }
 0x207   :  { %v2387_v51 = vpop.f32.mrf.mxu0  ;;  %4150 = vmatprep.subr.bf16.mxu1 %v6582_v26 }
 0x208   :  { %v2500_v2 = vpop.f32.mrf.mxu1  ;;  %v2566_v43 = vmax.f32 %v2495_v46, 0.0  ;;  %v2388_v12 = vadd.f32 %v2387_v51, %v7523_v62  ;;  %v7638_v35 = vpack.c.bf16 %v2565_v11, %v2561_v15  ;;  %v2174_v62 = vadd.f32 %v7535_v0, %v7420_v18  ;;  %v6591_v0 = vld [vmem:[#allocation7 + $0x3ac] ss:$16 sps:$4 sm:$0xff]  }
 0x209   :  { %v2389_v19 = vpop.f32.mrf.mxu0  ;;  %v2499_v21 = vadd.f32 %v2498_v59, %v2386_v8  ;;  %v6594_v46 = vld [vmem:[#allocation7 + $0x38c] ss:$16 sps:$4 sm:$0xff]  }
 0x20a   :  { %v2502_v52 = vpop.f32.mrf.mxu1  ;;  %v7636_v42 = vpack.c.bf16 %v2566_v43, %v2562_v6  ;;  %v2390_v49 = vadd.f32 %v2389_v19, %v2277_v32  ;;  %4151 = vmatpush1.bf16.msra.mxu1 %v6580_v53  ;;  %v2501_v33 = vadd.f32 %v2500_v2, %v2388_v12  ;;  %v2287_v25 = vadd.f32 %v7537_v3, %v2174_v62  ;;  %v8099_v32 = vld [vmem:[#allocation14_spill] sm:$0xff]  ;;  %v8102_v62 = vld [vmem:[#allocation15_spill] sm:$0xff] }
 0x20b   :  { %v2391_v50 = vpop.f32.mrf.mxu0  ;;  %4152 = vmatprep.subr.bf16.mxu1 %v6585_v48  ;;  %v2569_v26 = vmax.f32 %v2499_v21, 0.0  ;;  %v2186_v6 = vadd.f32 %v8099_v32, %v7427_v36  ;;  %v6592_v12 = vld [vmem:[#allocation7 + $0x388] ss:$16 sps:$4 sm:$0xff]   ;;  %v8103_v21 = vld [vmem:[#allocation19_spill] sm:$0xff] }
 0x20c   :  { %v2504_v14 = vpop.f32.mrf.mxu1  ;;  %v2503_v54 = vadd.f32 %v2502_v52, %v2390_v49  ;;  %v2392_v63 = vadd.f32 %v2391_v50, %v2279_v55  ;;  %3982 = vmatprep.mubr.bf16.mxu1 %v7636_v42  ;;  %v2570_v13 = vmax.f32 %v2501_v33, 0.0  ;;  %v8100_v52 = vld [vmem:[#allocation16_spill] sm:$0xff]  ;;  %v8101_v50 = vld [vmem:[#allocation17_spill] sm:$0xff] }
 0x20d   :  { %v2395_v38 = vpop.f32.mrf.mxu0  ;;  %3983 = vmatmul.mubr.bf16.gmra.mxu1 %v7638_v35  ;;  %v6607_v36 = vld [vmem:[%s8068_s5 + $0x78] sm:$0xff]  }
 0x20e   :  { %v2508_v44 = vpop.f32.mrf.mxu1  ;;  %v2505_v58 = vadd.f32 %v2504_v14, %v2392_v63  ;;  %4153 = vmatpush2.bf16.msra.mxu1 %v6583_v56  ;;  %v2573_v27 = vmax.f32 %v2503_v54, 0.0  ;;  %v2396_v47 = vadd.f32 %v2395_v38, %v7532_v28  ;;  %v2299_v38 = vadd.f32 %v8103_v21, %v2186_v6  ;;  %5905 = vmatprep.subr.bf16.mxu0 %v6607_v36  ;;  %v6615_v32 = vld [vmem:[%s8068_s5 + $0x58] sm:$0xff]  }
 0x20f   :  { %v2397_v41 = vpop.f32.mrf.mxu0  ;;  %4154 = vmatprep.subr.bf16.mxu1 %v6588_v45  ;;  %v6616_v6 = vld [vmem:[%s8068_s5 + $0x18] sm:$0xff]  }
 0x210   :  { %v2510_v24 = vpop.f32.mrf.mxu1  ;;  %v2574_v1 = vmax.f32 %v2505_v58, 0.0  ;;  %v2398_v30 = vadd.f32 %v2397_v41, %v7539_v29  ;;  %v7652_v59 = vpack.c.bf16 %v2573_v27, %v2569_v26  ;;  %v8098_v29 = vld [vmem:[#allocation18_spill] sm:$0xff]  ;;  %v2509_v22 = vadd.f32 %v2508_v44, %v2396_v47  ;;  %v6609_v26 = vld [vmem:[%s8068_s5 + $0x70] sm:$0xff]   ;;  %v6632_v36 = vld [vmem:[%s8068_s5 + $0x98] sm:$0xff]  }
 0x211   :  { %v2399_v60 = vpop.f32.mrf.mxu0  ;;  %v2184_v53 = vadd.f32 %v8098_v29, %v7420_v18  ;;  %v6597_v18 = vld [vmem:[#allocation7 + $0x36c] ss:$16 sps:$4 sm:$0xff]   ;;  %v6595_v58 = vld [vmem:[#allocation7 + $0x368] ss:$16 sps:$4 sm:$0xff]  }
 0x212   :  { %v2512_v16 = vpop.f32.mrf.mxu1  ;;  %v7650_v61 = vpack.c.bf16 %v2574_v1, %v2570_v13  ;;  %v2400_v34 = vadd.f32 %v2399_v60, %v2287_v25  ;;  %4155 = vmatpush2.bf16.msra.mxu1 %v6586_v17  ;;  %v2511_v11 = vadd.f32 %v2510_v24, %v2398_v30  ;;  %v2577_v45 = vmax.f32 %v2509_v22, 0.0  ;;  %v6608_v17 = vld [vmem:[%s8068_s5 + $0x38] sm:$0xff]   ;;  %v6613_v22 = vld [vmem:[%s8068_s5 + $0x60] sm:$0xff]  }
 0x213   :  { %v2401_v31 = vpop.f32.mrf.mxu0  ;;  %4156 = vmatprep.subr.bf16.mxu1 %v6591_v0  ;;  %v2297_v55 = vadd.f32 %v8100_v52, %v2184_v53  ;;  %v6600_v24 = vld [vmem:[#allocation7 + $0x34c] ss:$16 sps:$4 sm:$0xff]   ;;  %5906 = vmatpush3.bf16.msra.mxu0 %v6608_v17  ;;  %v6598_v60 = vld [vmem:[#allocation7 + $0x348] ss:$16 sps:$4 sm:$0xff]  }
 0x214   :  { %v2514_v3 = vpop.f32.mrf.mxu1  ;;  %v2513_v28 = vadd.f32 %v2512_v16, %v2400_v34  ;;  %v2402_v51 = vadd.f32 %v2401_v31, %v2289_v5  ;;  %3992 = vmatprep.mubr.bf16.mxu1 %v7650_v61  ;;  %v2578_v49 = vmax.f32 %v2511_v11, 0.0  ;;  %v6610_v16 = vld [vmem:[%s8068_s5 + $0x30] sm:$0xff]   ;;  %v6603_v34 = vld [vmem:[#allocation7 + $0x32c] ss:$16 sps:$4 sm:$0xff]   ;;  %5907 = vmatprep.subr.bf16.mxu0 %v6609_v26  ;;  %v6601_v53 = vld [vmem:[#allocation7 + $0x328] ss:$16 sps:$4 sm:$0xff]  }
 0x215   :  { %v2405_v2 = vpop.f32.mrf.mxu0  ;;  %3993 = vmatmul.mubr.bf16.gmra.mxu1 %v7652_v59  ;;  %v6612_v11 = vld [vmem:[%s8068_s5 + $0x28] sm:$0xff]  }
 0x216   :  { %v2518_v48 = vpop.f32.mrf.mxu1  ;;  %v2515_v43 = vadd.f32 %v2514_v3, %v2402_v51  ;;  %4157 = vmatpush2.bf16.msra.mxu1 %v6589_v20  ;;  %v2581_v15 = vmax.f32 %v2513_v28, 0.0  ;;  %v2406_v33 = vadd.f32 %v2405_v2, %v8102_v62  ;;  %v6606_v51 = vld [vmem:[#allocation7 + $0x30c] ss:$16 sps:$4 sm:$0xff]   ;;  %v6604_v2 = vld [vmem:[#allocation7 + $0x308] ss:$16 sps:$4 sm:$0xff]  }
 0x217   :  { %v2407_v8 = vpop.f32.mrf.mxu0  ;;  %4158 = vmatprep.subr.bf16.mxu1 %v6594_v46  ;;  %5908 = vmatpush3.bf16.msra.mxu0 %v6610_v16  ;;  %v6611_v46 = vld [vmem:[%s8068_s5 + $0x68] sm:$0xff]  }
 0x218   :  { %v2520_v19 = vpop.f32.mrf.mxu1  ;;  %v2582_v56 = vmax.f32 %v2515_v43, 0.0  ;;  %v2408_v14 = vadd.f32 %v2407_v8, %v8101_v50  ;;  %v7672_v27 = vpack.c.bf16 %v2581_v15, %v2577_v45  ;;  %v2519_v1 = vadd.f32 %v2518_v48, %v2406_v33  ;;  %5909 = vmatprep.subr.bf16.mxu0 %v6611_v46  ;;  %v6614_v48 = vld [vmem:[%s8068_s5 + $0x20] sm:$0xff]   ;;  %v6617_v43 = vld [vmem:[%s8068_s5 + $0x50] sm:$0xff]   ;;  %v6619_v8 = vld [vmem:[%s8068_s5 + $0x48] sm:$0xff]  }
 0x219   :  { %v2409_v54 = vpop.f32.mrf.mxu0  ;;  %v6626_v50 = vld [vmem:[%s8068_s5 + $0xb0] sm:$0xff]   ;;  %v6628_v45 = vld [vmem:[%s8068_s5 + $0xa8] sm:$0xff]   ;;  %v6630_v33 = vld [vmem:[%s8068_s5 + $0xa0] sm:$0xff]  }
 0x21a   :  { %v2522_v63 = vpop.f32.mrf.mxu1  ;;  %v7667_v44 = vpack.c.bf16 %v2582_v56, %v2578_v49  ;;  %v2410_v4 = vadd.f32 %v2409_v54, %v2297_v55  ;;  %4159 = vmatpush2.bf16.msra.mxu1 %v6592_v12  ;;  %v2521_v0 = vadd.f32 %v2520_v19, %v2408_v14  ;;  %v2585_v3 = vmax.f32 %v2519_v1, 0.0  ;;  %v6618_v12 = vld [vmem:[%s8068_s5 + $0x10] sm:$0xff]   ;;  %v6624_v49 = vld [vmem:[%s8068_s5 + $0xb8] sm:$0xff]  }
 0x21b   :  { %v2411_v41 = vpop.f32.mrf.mxu0  ;;  %4160 = vmatprep.subr.bf16.mxu1 %v6597_v18  ;;  %5910 = vmatpush3.bf16.msra.mxu0 %v6612_v11  ;;  %v6622_v18 = vld [vmem:[%s8068_s5] sm:$0xff]  }
 0x21c   :  { %v2523_v25 = vadd.f32 %v2522_v63, %v2410_v4  ;;  %v2412_v13 = vadd.f32 %v2411_v41, %v2299_v38  ;;  %4002 = vmatprep.mubr.bf16.mxu1 %v7667_v44  ;;  %v2524_v30 = vpop.f32.mrf.mxu1  ;;  %v2586_v20 = vmax.f32 %v2521_v0, 0.0  ;;  %5911 = vmatprep.subr.bf16.mxu0 %v6613_v22  ;;  %v6631_v63 = vld [vmem:[%s8068_s5 + $0xd8] sm:$0xff]   ;;  %v6634_v4 = vld [vmem:[%s8068_s5 + $0x90] sm:$0xff]   ;;  %v6636_v41 = vld [vmem:[%s8068_s5 + $0x88] sm:$0xff]  }
 0x21d   :  { %4003 = vmatmul.mubr.bf16.gmra.mxu1 %v7672_v27  ;;  %v6637_v0 = vld [vmem:[%s8068_s5 + $0xc0] sm:$0xff]  }
 0x21e   :  { %v2525_v47 = vadd.f32 %v2524_v30, %v2412_v13  ;;  %4161 = vmatpush2.bf16.msra.mxu1 %v6595_v58  ;;  %v2589_v5 = vmax.f32 %v2523_v25, 0.0  ;;  %v6638_v25 = vld [vmem:[%s8068_s5 + $0x80] sm:$0xff]  }
 0x21f   :  { %4162 = vmatprep.subr.bf16.mxu1 %v6600_v24  ;;  %5912 = vmatpush3.bf16.msra.mxu0 %v6614_v48  ;;  %v8104_v11 = vld [vmem:[#allocation13_spill] sm:$0xff] }
 0x220   :  { %v2590_v31 = vmax.f32 %v2525_v47, 0.0  ;;  %v7690_v28 = vpack.c.bf16 %v2589_v5, %v2585_v3  ;;  %5913 = vmatprep.subr.bf16.mxu0 %v6615_v32  ;;  %v8106_v22 = vsub.s32 0, %v8104_v11 }
 0x222   :  { %v7685_v29 = vpack.c.bf16 %v2590_v31, %v2586_v20  ;;  %4163 = vmatpush2.bf16.msra.mxu1 %v6598_v60 }
 0x223   :  { %4164 = vmatprep.subr.bf16.mxu1 %v6603_v34  ;;  %5914 = vmatpush3.bf16.msra.mxu0 %v6616_v6 }
 0x224   :  { %4012 = vmatprep.mubr.bf16.mxu1 %v7685_v29  ;;  %5915 = vmatprep.subr.bf16.mxu0 %v6617_v43 }
 0x225   :  { %4013 = vmatmul.mubr.bf16.gmra.mxu1 %v7690_v28 }
 0x226   :  { %4165 = vmatpush2.bf16.msra.mxu1 %v6601_v53  ;;  %4168 = vmatprep.mubr.bf16.mxu1 %v7580_v57 }
 0x227   :  { %4166 = vmatprep.subr.bf16.mxu1 %v6606_v51  ;;  %5916 = vmatpush3.bf16.msra.mxu0 %v6618_v12 }
 0x228   :  { %5917 = vmatprep.subr.bf16.mxu0 %v6619_v8 }
 0x22a   :  { %4167 = vmatpush2.bf16.msra.mxu1 %v6604_v2 }
 0x22d   :  { %v7707_v57 = vpop.f32.mrf.mxu0  ;;  %4169 = vmatmul.mubr.bf16.vlgmr.msra.gmra.mxu1 %v7582_v40  ;;  %v6620_v40 = vld [vmem:[%s8068_s5 + $0x8] sm:$0xff]  }
 0x22e   :  { %4178 = vmatprep.mubr.bf16.mxu1 %v7594_v7  ;;  %5918 = vmatpush3.bf16.msra.mxu0 %v6620_v40  ;;  %v6621_v7 = vld [vmem:[%s8068_s5 + $0x40] sm:$0xff]  }
 0x22f   :  { %v7717_v15 = vpop.f32.mrf.mxu0  ;;  %5919 = vmatprep.subr.bf16.mxu0 %v6621_v7 }
 0x231   :  { %v7725_v19 = vpop.f32.mrf.mxu0 }
 0x232   :  { %5920 = vmatpush3.bf16.msra.mxu0 %v6622_v18 }
 0x233   :  { %v7735_v52 = vpop.f32.mrf.mxu0 }
 0x235   :  { %4179 = vmatmul.mubr.bf16.gmra.mxu1 %v7596_v39  ;;  %v7737_v55 = vpop.f32.mrf.mxu0 }
 0x236   :  { %4188 = vmatprep.mubr.bf16.mxu1 %v7608_v10  ;;  %v6623_v10 = vld [vmem:[%s8068_s5 + $0xf8] sm:$0xff]  }
 0x237   :  { %v7741_v39 = vpop.f32.mrf.mxu0  ;;  %5969 = vmatprep.subr.bf16.mxu1 %v6623_v10 }
 0x238   :  { %5970 = vmatpush3.bf16.msra.mxu1 %v6624_v49 }
 0x239   :  { %v7749_v56 = vpop.f32.mrf.mxu0 }
 0x23d   :  { %4189 = vmatmul.mubr.bf16.gmra.mxu1 %v7610_v37  ;;  %v7753_v37 = vpop.f32.mrf.mxu0 }
 0x23e   :  { %4198 = vmatprep.mubr.bf16.mxu1 %v7622_v23  ;;  %v6625_v23 = vld [vmem:[%s8068_s5 + $0xf0] sm:$0xff]  }
 0x23f   :  { %5971 = vmatprep.subr.bf16.mxu1 %v6625_v23  ;;  %v7761_v14 = vpop.f32.mrf.mxu0 }
 0x240   :  { %5972 = vmatpush3.bf16.msra.mxu1 %v6626_v50 }
 0x245   :  { %4199 = vmatmul.mubr.bf16.gmra.mxu1 %v7624_v9  ;;  %v7765_v9 = vpop.f32.mrf.mxu0 }
 0x246   :  { %4208 = vmatprep.mubr.bf16.mxu1 %v7636_v42  ;;  %v6627_v42 = vld [vmem:[%s8068_s5 + $0xe8] sm:$0xff]  }
 0x247   :  { %5973 = vmatprep.subr.bf16.mxu1 %v6627_v42  ;;  %v7773_v62 = vpop.f32.mrf.mxu0 }
 0x248   :  { %5974 = vmatpush3.bf16.msra.mxu1 %v6628_v45 }
 0x24d   :  { %4209 = vmatmul.mubr.bf16.gmra.mxu1 %v7638_v35  ;;  %v7777_v35 = vpop.f32.mrf.mxu0 }
 0x24e   :  { %4218 = vmatprep.mubr.bf16.mxu1 %v7650_v61  ;;  %v6629_v61 = vld [vmem:[%s8068_s5 + $0xe0] sm:$0xff]  }
 0x24f   :  { %5975 = vmatprep.subr.bf16.mxu1 %v6629_v61  ;;  %v7785_v54 = vpop.f32.mrf.mxu0 }
 0x250   :  { %5976 = vmatpush3.bf16.msra.mxu1 %v6630_v33 }
 0x251   :  { %5977 = vmatprep.subr.bf16.mxu1 %v6631_v63 }
 0x254   :  { %5978 = vmatpush3.bf16.msra.mxu1 %v6632_v36 }
 0x255   :  { %4219 = vmatmul.mubr.bf16.gmra.mxu1 %v7652_v59  ;;  %v7789_v59 = vpop.f32.mrf.mxu0 }
 0x256   :  { %4228 = vmatprep.mubr.bf16.mxu1 %v7667_v44  ;;  %v6633_v44 = vld [vmem:[%s8068_s5 + $0xd0] sm:$0xff]  }
 0x257   :  { %v7797_v21 = vpop.f32.mrf.mxu0  ;;  %5979 = vmatprep.subr.bf16.mxu1 %v6633_v44 }
 0x258   :  { %5980 = vmatpush3.bf16.msra.mxu1 %v6634_v4 }
 0x259   :  { %v7800_v38 = vpop.f32.mrf.mxu0 }
 0x25b   :  { %v7808_v58 = vpop.f32.mrf.mxu0 }
 0x25d   :  { %4229 = vmatmul.mubr.bf16.gmra.mxu1 %v7672_v27  ;;  %v7810_v17 = vpop.f32.mrf.mxu0  ;;  %v6635_v27 = vld [vmem:[%s8068_s5 + $0xc8] sm:$0xff]  }
 0x25e   :  { %4238 = vmatprep.mubr.bf16.mxu1 %v7685_v29  ;;  %5981 = vmatprep.subr.bf16.mxu1 %v6635_v27  ;;  %v7855_v29 = vld [vmem:[%s8067_s4] sm:$0xf] }
 0x25f   :  { %v7818_v24 = vpop.f32.mrf.mxu0  ;;  %5982 = vmatpush3.bf16.msra.mxu1 %v6636_v41  ;;  %v7867_v2 = vrot.slane %v7855_v29, %v8106_v22 }
 0x260   :  { %5983 = vmatprep.subr.bf16.mxu1 %v6637_v0 }
 0x261   :  { %v7826_v13 = vpop.f32.mrf.mxu0  ;;  %v3836_v12 = vadd.f32 %v7725_v19, %v7867_v2  ;;  %v3832_v8 = vadd.f32 %v7707_v57, %v7867_v2  ;;  %v3842_v4 = vadd.f32 %v7737_v55, %v7867_v2 }
 0x263   :  { %5984 = vmatpush3.bf16.msra.mxu1 %v6638_v25  ;;  %v7828_v1 = vpop.f32.mrf.mxu0 }
 0x265   :  { %4239 = vmatmul.mubr.bf16.gmra.mxu1 %v7690_v28  ;;  %v7830_v30 = vpop.f32.mrf.mxu0  ;;  %v8105_v28 = vsub.s32 1, %v8104_v11 }
 0x267   :  { %v7832_v26 = vpop.f32.mrf.mxu0  ;;  %v7862_v51 = vrot.slane %v7855_v29, %v8105_v28 }
 0x269   :  { %v7834_v47 = vpop.f32.mrf.mxu0  ;;  %v3834_v43 = vadd.f32 %v7717_v15, %v7862_v51  ;;  %v3838_v7 = vadd.f32 %v7735_v52, %v7862_v51  ;;  %v3844_v57 = vadd.f32 %v7741_v39, %v7862_v51  ;;  %v3846_v52 = vadd.f32 %v7749_v56, %v7867_v2 }
 0x26a   :  { %v3848_v0 = vadd.f32 %v7753_v37, %v7862_v51  ;;  %v3854_v37 = vadd.f32 %v7765_v9, %v7862_v51 }
 0x26b   :  { %v7836_v60 = vpop.f32.mrf.mxu0 }
 0x26d   :  { %v7838_v16 = vpop.f32.mrf.mxu0 }
 0x26f   :  { %v7840_v5 = vpop.f32.mrf.mxu0 }
 0x271   :  { %v7842_v34 = vpop.f32.mrf.mxu0 }
 0x273   :  { %v7844_v20 = vpop.f32.mrf.mxu0 }
 0x275   :  { %v7846_v31 = vpop.f32.mrf.mxu0 }
 0x277   :  { %v7848_v3 = vpop.f32.mrf.mxu0 }
 0x279   :  { %v7850_v46 = vpop.f32.mrf.mxu0 }
 0x27b   :  { %v7857_v53 = vpop.f32.mrf.mxu0 }
 0x27d   :  { %v7869_v32 = vpop.f32.mrf.mxu0 }
 0x27f   :  { %v7879_v49 = vpop.f32.mrf.mxu0 }
 0x281   :  { %v7881_v63 = vpop.f32.mrf.mxu0 }
 0x283   :  { %v7891_v22 = vpop.f32.mrf.mxu0 }
 0x2ad   :  { %v3944_v48 = vpop.f32.mrf.mxu1 }
 0x2ae   :  { %v3945_v23 = vadd.f32 %v3944_v48, %v3832_v8 }
 0x2af   :  { %v3946_v6 = vpop.f32.mrf.mxu1 }
 0x2b0   :  { %v3947_v18 = vadd.f32 %v3946_v6, %v3834_v43  ;;  %v4249_v19 = vmax.f32 %v3945_v23, 0.0  ;;  %v3852_v23 = vadd.f32 %v7761_v14, %v7867_v2 }
 0x2b1   :  { %v3948_v40 = vpop.f32.mrf.mxu1 }
 0x2b2   :  { %v3949_v10 = vadd.f32 %v3948_v40, %v3836_v12  ;;  %v4250_v15 = vmax.f32 %v3947_v18, 0.0  ;;  %v7893_v40 = vpop.f32.mrf.mxu0  ;;  %v3856_v18 = vadd.f32 %v7773_v62, %v7867_v2 }
 0x2b3   :  { %v3950_v50 = vpop.f32.mrf.mxu1 }
 0x2b4   :  { %v3951_v42 = vadd.f32 %v3950_v50, %v3838_v7  ;;  %v4253_v45 = vmax.f32 %v3949_v10, 0.0 }
 0x2b5   :  { %v3954_v61 = vpop.f32.mrf.mxu1 }
 0x2b6   :  { %v4254_v33 = vmax.f32 %v3951_v42, 0.0  ;;  %v5873_v27 = vpack.c.bf16 %v4253_v45, %v4249_v19  ;;  %v3955_v48 = vadd.f32 %v3954_v61, %v3842_v4  ;;  %v3858_v45 = vadd.f32 %v7777_v35, %v7862_v51 }
 0x2b7   :  { %v3956_v36 = vpop.f32.mrf.mxu1  ;;  %v3864_v35 = vadd.f32 %v7789_v59, %v7862_v51 }
 0x2b8   :  { %v5874_v44 = vpack.c.bf16 %v4254_v33, %v4250_v15  ;;  %v3957_v25 = vadd.f32 %v3956_v36, %v3844_v57  ;;  %v4257_v55 = vmax.f32 %v3955_v48, 0.0  ;;  %v7903_v33 = vpop.f32.mrf.mxu0 }
 0x2b9   :  { %v3958_v41 = vpop.f32.mrf.mxu1 }
 0x2ba   :  { %v3959_v28 = vadd.f32 %v3958_v41, %v3846_v52  ;;  %5024 = vmatprep.mubr.bf16.mxu0 %v5874_v44  ;;  %v4258_v12 = vmax.f32 %v3957_v25, 0.0  ;;  %v7905_v4 = vpop.f32.mrf.mxu0  ;;  %v3866_v41 = vadd.f32 %v7797_v21, %v7867_v2  ;;  %v3862_v25 = vadd.f32 %v7785_v54, %v7867_v2 }
 0x2bb   :  { %v3960_v6 = vpop.f32.mrf.mxu1  ;;  %5025 = vmatmul.mubr.bf16.vlgmr.msra.gmra.mxu0 %v5873_v27 }
 0x2bc   :  { %v3961_v39 = vadd.f32 %v3960_v6, %v3848_v0  ;;  %v4261_v43 = vmax.f32 %v3959_v28, 0.0  ;;  %v3868_v6 = vadd.f32 %v7800_v38, %v7862_v51  ;;  %v3874_v38 = vadd.f32 %v7810_v17, %v7862_v51 }
 0x2bd   :  { %v3964_v56 = vpop.f32.mrf.mxu1 }
 0x2be   :  { %v4262_v8 = vmax.f32 %v3961_v39, 0.0  ;;  %v5877_v50 = vpack.c.bf16 %v4261_v43, %v4257_v55  ;;  %v3965_v19 = vadd.f32 %v3964_v56, %v3852_v23  ;;  %v7915_v56 = vpop.f32.mrf.mxu0  ;;  %v3876_v23 = vadd.f32 %v7818_v24, %v7867_v2 }
 0x2bf   :  { %v3966_v7 = vpop.f32.mrf.mxu1 }
 0x2c0   :  { %v5878_v10 = vpack.c.bf16 %v4262_v8, %v4258_v12  ;;  %v3967_v61 = vadd.f32 %v3966_v7, %v3854_v37  ;;  %v4265_v14 = vmax.f32 %v3965_v19, 0.0 }
 0x2c1   :  { %v3968_v42 = vpop.f32.mrf.mxu1 }
 0x2c2   :  { %v3969_v15 = vadd.f32 %v3968_v42, %v3856_v18  ;;  %5032 = vmatprep.mubr.bf16.mxu0 %v5878_v10  ;;  %v4266_v52 = vmax.f32 %v3967_v61, 0.0  ;;  %v7917_v18 = vpop.f32.mrf.mxu0  ;;  %v3872_v42 = vadd.f32 %v7808_v58, %v7867_v2 }
 0x2c3   :  { %v3970_v36 = vpop.f32.mrf.mxu1  ;;  %5033 = vmatmul.mubr.bf16.gmra.mxu0 %v5877_v50 }
 0x2c4   :  { %v3971_v9 = vadd.f32 %v3970_v36, %v3858_v45  ;;  %v4269_v57 = vmax.f32 %v3969_v15, 0.0  ;;  %v3878_v15 = vadd.f32 %v7826_v13, %v7862_v51  ;;  %v3884_v13 = vadd.f32 %v7830_v30, %v7862_v51 }
 0x2c5   :  { %v3974_v62 = vpop.f32.mrf.mxu1 }
 0x2c6   :  { %v4270_v44 = vmax.f32 %v3971_v9, 0.0  ;;  %v5881_v28 = vpack.c.bf16 %v4269_v57, %v4265_v14  ;;  %v3975_v12 = vadd.f32 %v3974_v62, %v3862_v25  ;;  %v7927_v9 = vpop.f32.mrf.mxu0  ;;  %v3882_v25 = vadd.f32 %v7828_v1, %v7867_v2 }
 0x2c7   :  { %v3976_v27 = vpop.f32.mrf.mxu1 }
 0x2c8   :  { %v5882_v0 = vpack.c.bf16 %v4270_v44, %v4266_v52  ;;  %v3977_v39 = vadd.f32 %v3976_v27, %v3864_v35  ;;  %v4273_v54 = vmax.f32 %v3975_v12, 0.0  ;;  %v7929_v27 = vpop.f32.mrf.mxu0 }
 0x2c9   :  { %v3978_v48 = vpop.f32.mrf.mxu1 }
 0x2ca   :  { %v3979_v43 = vadd.f32 %v3978_v48, %v3866_v41  ;;  %5040 = vmatprep.mubr.bf16.mxu0 %v5882_v0  ;;  %v4274_v7 = vmax.f32 %v3977_v39, 0.0  ;;  %v3886_v41 = vadd.f32 %v7832_v26, %v7867_v2  ;;  %v7939_v12 = vpop.f32.mrf.mxu0 }
 0x2cb   :  { %v3980_v8 = vpop.f32.mrf.mxu1  ;;  %5041 = vmatmul.mubr.bf16.gmra.mxu0 %v5881_v28 }
 0x2cc   :  { %v3981_v59 = vadd.f32 %v3980_v8, %v3868_v6  ;;  %v4277_v55 = vmax.f32 %v3979_v43, 0.0  ;;  %v3888_v6 = vadd.f32 %v7834_v47, %v7862_v51  ;;  %v3894_v47 = vadd.f32 %v7838_v16, %v7862_v51 }
 0x2cd   :  { %v3984_v21 = vpop.f32.mrf.mxu1 }
 0x2ce   :  { %v4278_v37 = vmax.f32 %v3981_v59, 0.0  ;;  %v5885_v45 = vpack.c.bf16 %v4277_v55, %v4273_v54  ;;  %v3985_v57 = vadd.f32 %v3984_v21, %v3872_v42 }
 0x2cf   :  { %v3986_v10 = vpop.f32.mrf.mxu1 }
 0x2d0   :  { %v5886_v50 = vpack.c.bf16 %v4278_v37, %v4274_v7  ;;  %v3987_v19 = vadd.f32 %v3986_v10, %v3874_v38  ;;  %v4281_v58 = vmax.f32 %v3985_v57, 0.0  ;;  %v7941_v37 = vpop.f32.mrf.mxu0  ;;  %v3896_v10 = vadd.f32 %v7840_v5, %v7867_v2 }
 0x2d1   :  { %v3988_v61 = vpop.f32.mrf.mxu1 }
 0x2d2   :  { %v3989_v36 = vadd.f32 %v3988_v61, %v3876_v23  ;;  %5048 = vmatprep.mubr.bf16.mxu0 %v5886_v50  ;;  %v4282_v44 = vmax.f32 %v3987_v19, 0.0  ;;  %v3892_v23 = vadd.f32 %v7836_v60, %v7867_v2  ;;  %v7951_v19 = vpop.f32.mrf.mxu0 }
 0x2d3   :  { %v3990_v62 = vpop.f32.mrf.mxu1  ;;  %5049 = vmatmul.mubr.bf16.gmra.mxu0 %v5885_v45  ;;  %v3898_v45 = vadd.f32 %v7842_v34, %v7862_v51  ;;  %v3904_v34 = vadd.f32 %v7846_v31, %v7862_v51  ;;  %v8107_v31 = vsub.s32 3, %v8104_v11 }
 0x2d4   :  { %v3991_v17 = vadd.f32 %v3990_v62, %v3878_v15  ;;  %v4285_v52 = vmax.f32 %v3989_v36, 0.0 }
 0x2d5   :  { %v3994_v24 = vpop.f32.mrf.mxu1 }
 0x2d6   :  { %v4286_v14 = vmax.f32 %v3991_v17, 0.0  ;;  %v5889_v28 = vpack.c.bf16 %v4285_v52, %v4281_v58  ;;  %v3995_v8 = vadd.f32 %v3994_v24, %v3882_v25  ;;  %v7953_v24 = vpop.f32.mrf.mxu0 }
 0x2d7   :  { %v3996_v35 = vpop.f32.mrf.mxu1 }
 0x2d8   :  { %v5890_v0 = vpack.c.bf16 %v4286_v14, %v4282_v44  ;;  %v3997_v39 = vadd.f32 %v3996_v35, %v3884_v13  ;;  %v4289_v1 = vmax.f32 %v3995_v8, 0.0  ;;  %v3906_v14 = vadd.f32 %v7848_v3, %v7867_v2 }
 0x2d9   :  { %v3998_v48 = vpop.f32.mrf.mxu1  ;;  %v3902_v35 = vadd.f32 %v7844_v20, %v7867_v2  ;;  %v7968_v3 = vrot.slane %v7855_v29, %v8107_v31  ;;  %v8108_v20 = vsub.s32 2, %v8104_v11 }
 0x2da   :  { %v3999_v43 = vadd.f32 %v3998_v48, %v3886_v41  ;;  %5056 = vmatprep.mubr.bf16.mxu0 %v5890_v0  ;;  %v4290_v21 = vmax.f32 %v3997_v39, 0.0  ;;  %v3908_v0 = vadd.f32 %v7850_v46, %v7862_v51  ;;  %v7963_v48 = vpop.f32.mrf.mxu0 }
 0x2db   :  { %v4000_v59 = vpop.f32.mrf.mxu1  ;;  %5057 = vmatmul.mubr.bf16.gmra.mxu0 %v5889_v28  ;;  %v7973_v2 = vrot.slane %v7855_v29, %v8108_v20 }
 0x2dc   :  { %v4001_v30 = vadd.f32 %v4000_v59, %v3888_v6  ;;  %v4293_v55 = vmax.f32 %v3999_v43, 0.0 }
 0x2dd   :  { %v4004_v26 = vpop.f32.mrf.mxu1  ;;  %v4058_v11 = vadd.f32 %v7857_v53, %v7973_v2  ;;  %v4078_v31 = vadd.f32 %v7915_v56, %v7973_v2 }
 0x2de   :  { %v4294_v7 = vmax.f32 %v4001_v30, 0.0  ;;  %v5893_v50 = vpack.c.bf16 %v4293_v55, %v4289_v1  ;;  %v4005_v36 = vadd.f32 %v4004_v26, %v3892_v23  ;;  %v7975_v30 = vpop.f32.mrf.mxu0 }
 0x2df   :  { %v4006_v54 = vpop.f32.mrf.mxu1 }
 0x2e0   :  { %v5894_v38 = vpack.c.bf16 %v4294_v7, %v4290_v21  ;;  %v4007_v61 = vadd.f32 %v4006_v54, %v3894_v47  ;;  %v4297_v60 = vmax.f32 %v4005_v36, 0.0  ;;  %v4060_v21 = vadd.f32 %v7869_v32, %v7968_v3  ;;  %v7985_v23 = vpop.f32.mrf.mxu0 }
 0x2e1   :  { %v4008_v42 = vpop.f32.mrf.mxu1  ;;  %v4062_v7 = vadd.f32 %v7879_v49, %v7973_v2  ;;  %v4064_v47 = vadd.f32 %v7881_v63, %v7968_v3  ;;  %v4070_v63 = vadd.f32 %v7893_v40, %v7968_v3 }
 0x2e2   :  { %v4009_v15 = vadd.f32 %v4008_v42, %v3896_v10  ;;  %5064 = vmatprep.mubr.bf16.mxu0 %v5894_v38  ;;  %v4298_v17 = vmax.f32 %v4007_v61, 0.0  ;;  %v7987_v36 = vpop.f32.mrf.mxu0 }
 0x2e3   :  { %v4010_v57 = vpop.f32.mrf.mxu1  ;;  %5065 = vmatmul.mubr.bf16.gmra.mxu0 %v5893_v50 }
 0x2e4   :  { %v4011_v16 = vadd.f32 %v4010_v57, %v3898_v45  ;;  %v4301_v62 = vmax.f32 %v4009_v15, 0.0 }
 0x2e5   :  { %v4014_v5 = vpop.f32.mrf.mxu1 }
 0x2e6   :  { %v4302_v52 = vmax.f32 %v4011_v16, 0.0  ;;  %v5897_v13 = vpack.c.bf16 %v4301_v62, %v4297_v60  ;;  %v4015_v6 = vadd.f32 %v4014_v5, %v3902_v35  ;;  %v4072_v16 = vadd.f32 %v7903_v33, %v7973_v2 }
 0x2e7   :  { %v4016_v44 = vpop.f32.mrf.mxu1  ;;  %v4068_v5 = vadd.f32 %v7891_v22, %v7973_v2  ;;  %v4074_v60 = vadd.f32 %v7905_v4, %v7968_v3  ;;  %v4080_v4 = vadd.f32 %v7917_v18, %v7968_v3 }
 0x2e8   :  { %v5898_v58 = vpack.c.bf16 %v4302_v52, %v4298_v17  ;;  %v4017_v25 = vadd.f32 %v4016_v44, %v3904_v34  ;;  %v4305_v55 = vmax.f32 %v4015_v6, 0.0  ;;  %v4082_v6 = vadd.f32 %v7927_v9, %v7973_v2 }
 0x2e9   :  { %v4018_v41 = vpop.f32.mrf.mxu1 }
 0x2ea   :  { %v4019_v28 = vadd.f32 %v4018_v41, %v3906_v14  ;;  %5072 = vmatprep.mubr.bf16.mxu0 %v5898_v58  ;;  %v4306_v8 = vmax.f32 %v4017_v25, 0.0  ;;  %v7997_v14 = vpop.f32.mrf.mxu0 }
 0x2eb   :  { %v4020_v39 = vpop.f32.mrf.mxu1  ;;  %5073 = vmatmul.mubr.bf16.gmra.mxu0 %v5897_v13 }
 0x2ec   :  { %v4021_v43 = vadd.f32 %v4020_v39, %v3908_v0  ;;  %v4309_v46 = vmax.f32 %v4019_v28, 0.0  ;;  %v7999_v25 = vpop.f32.mrf.mxu0 }
 0x2ed   :  { %v4170_v51 = vpop.f32.mrf.mxu1 }
 0x2ee   :  { %v4310_v59 = vmax.f32 %v4021_v43, 0.0  ;;  %v5901_v29 = vpack.c.bf16 %v4309_v46, %v4305_v55  ;;  %v4171_v50 = vadd.f32 %v4170_v51, %v4058_v11  ;;  %v4084_v46 = vadd.f32 %v7929_v27, %v7968_v3 }
 0x2ef   :  { %v4172_v26 = vpop.f32.mrf.mxu1  ;;  %v4092_v27 = vadd.f32 %v7951_v19, %v7973_v2 }
 0x2f0   :  { %v5902_v1 = vpack.c.bf16 %v4310_v59, %v4306_v8  ;;  %v4173_v10 = vadd.f32 %v4172_v26, %v4060_v21  ;;  %v4251_v53 = vmax.f32 %v4171_v50, 0.0  ;;  %v4111_v59 = vpop.f32.mrf.mxu0 }
 0x2f1   :  { %v4174_v54 = vpop.f32.mrf.mxu1 }
 0x2f2   :  { %v4175_v38 = vadd.f32 %v4174_v54, %v4062_v7  ;;  %5080 = vmatprep.mubr.bf16.mxu0 %v5902_v1  ;;  %v4252_v61 = vmax.f32 %v4173_v10, 0.0  ;;  %v4113_v11 = vpop.f32.mrf.mxu0  ;;  %v4090_v54 = vadd.f32 %v7941_v37, %v7968_v3  ;;  %v4088_v10 = vadd.f32 %v7939_v12, %v7973_v2 }
 0x2f3   :  { %v4176_v42 = vpop.f32.mrf.mxu1  ;;  %5081 = vmatmul.mubr.bf16.gmra.mxu0 %v5901_v29 }
 0x2f4   :  { %v4177_v32 = vadd.f32 %v4176_v42, %v4064_v47  ;;  %v4255_v45 = vmax.f32 %v4175_v38, 0.0  ;;  %v4094_v42 = vadd.f32 %v7953_v24, %v7968_v3  ;;  %v4102_v24 = vadd.f32 %v7985_v23, %v7973_v2 }
 0x2f5   :  { %v4180_v49 = vpop.f32.mrf.mxu1 }
 0x2f6   :  { %v4256_v15 = vmax.f32 %v4177_v32, 0.0  ;;  %v5875_v17 = vpack.c.bf16 %v4255_v45, %v4251_v53  ;;  %v4181_v58 = vadd.f32 %v4180_v49, %v4068_v5  ;;  %v4117_v49 = vpop.f32.mrf.mxu0  ;;  %v4100_v5 = vadd.f32 %v7975_v30, %v7968_v3 }
 0x2f7   :  { %v4182_v57 = vpop.f32.mrf.mxu1 }
 0x2f8   :  { %v5876_v62 = vpack.c.bf16 %v4256_v15, %v4252_v61  ;;  %v4183_v44 = vadd.f32 %v4182_v57, %v4070_v63  ;;  %v4259_v22 = vmax.f32 %v4181_v58, 0.0 }
 0x2f9   :  { %v4184_v52 = vpop.f32.mrf.mxu1 }
 0x2fa   :  { %v4185_v34 = vadd.f32 %v4184_v52, %v4072_v16  ;;  %5121 = vmatprep.mubr.bf16.mxu1 %v5876_v62  ;;  %v4260_v41 = vmax.f32 %v4183_v44, 0.0  ;;  %v4119_v16 = vpop.f32.mrf.mxu0  ;;  %v4098_v52 = vadd.f32 %v7963_v48, %v7973_v2 }
 0x2fb   :  { %v4186_v35 = vpop.f32.mrf.mxu1  ;;  %5122 = vmatmul.mubr.bf16.vlgmr.msra.gmra.mxu1 %v5875_v17 }
 0x2fc   :  { %v4187_v40 = vadd.f32 %v4186_v35, %v4074_v60  ;;  %v4263_v13 = vmax.f32 %v4185_v34, 0.0  ;;  %v4104_v34 = vadd.f32 %v7987_v36, %v7968_v3  ;;  %v4112_v36 = vadd.f32 %v4111_v59, %v7973_v2 }
 0x2fd   :  { %v4190_v33 = vpop.f32.mrf.mxu1 }
 0x2fe   :  { %v4264_v0 = vmax.f32 %v4187_v40, 0.0  ;;  %v5879_v43 = vpack.c.bf16 %v4263_v13, %v4259_v22  ;;  %v4191_v55 = vadd.f32 %v4190_v33, %v4078_v31  ;;  %v4121_v40 = vpop.f32.mrf.mxu0  ;;  %v4108_v31 = vadd.f32 %v7997_v14, %v7973_v2 }
 0x2ff   :  { %v4192_v28 = vpop.f32.mrf.mxu1  ;;  %v4120_v14 = vadd.f32 %v4119_v16, %v7968_v3 }
 0x300   :  { %v5880_v39 = vpack.c.bf16 %v4264_v0, %v4260_v41  ;;  %v4193_v51 = vadd.f32 %v4192_v28, %v4080_v4  ;;  %v4267_v29 = vmax.f32 %v4191_v55, 0.0  ;;  %v4123_v28 = vpop.f32.mrf.mxu0 }
 0x301   :  { %v4194_v20 = vpop.f32.mrf.mxu1 }
 0x302   :  { %v4195_v8 = vadd.f32 %v4194_v20, %v4082_v6  ;;  %5129 = vmatprep.mubr.bf16.mxu1 %v5880_v39  ;;  %v4268_v9 = vmax.f32 %v4193_v51, 0.0  ;;  %v4110_v6 = vadd.f32 %v7999_v25, %v7968_v3  ;;  %v4127_v55 = vpop.f32.mrf.mxu0 }
 0x303   :  { %v4196_v26 = vpop.f32.mrf.mxu1  ;;  %5130 = vmatmul.mubr.bf16.gmra.mxu1 %v5879_v43 }
 0x304   :  { %v4197_v18 = vadd.f32 %v4196_v26, %v4084_v46  ;;  %v4271_v21 = vmax.f32 %v4195_v8, 0.0  ;;  %v4114_v46 = vadd.f32 %v4113_v11, %v7968_v3 }
 0x305   :  { %v4200_v7 = vpop.f32.mrf.mxu1 }
 0x306   :  { %v4272_v1 = vmax.f32 %v4197_v18, 0.0  ;;  %v5883_v38 = vpack.c.bf16 %v4271_v21, %v4267_v29  ;;  %v4201_v61 = vadd.f32 %v4200_v7, %v4088_v10 }
 0x307   :  { %v4202_v56 = vpop.f32.mrf.mxu1 }
 0x308   :  { %v5884_v47 = vpack.c.bf16 %v4272_v1, %v4268_v9  ;;  %v4203_v32 = vadd.f32 %v4202_v56, %v4090_v54  ;;  %v4275_v62 = vmax.f32 %v4201_v61, 0.0  ;;  %v4129_v1 = vpop.f32.mrf.mxu0  ;;  %v4122_v54 = vadd.f32 %v4121_v40, %v7973_v2 }
 0x309   :  { %v4204_v50 = vpop.f32.mrf.mxu1 }
 0x30a   :  { %v4205_v45 = vadd.f32 %v4204_v50, %v4092_v27  ;;  %5137 = vmatprep.mubr.bf16.mxu1 %v5884_v47  ;;  %v4276_v19 = vmax.f32 %v4203_v32, 0.0  ;;  %v4118_v27 = vadd.f32 %v4117_v49, %v7973_v2  ;;  %v4131_v32 = vpop.f32.mrf.mxu0  ;;  %v4130_v49 = vadd.f32 %v4129_v1, %v7968_v3 }
 0x30b   :  { %v4206_v15 = vpop.f32.mrf.mxu1  ;;  %5138 = vmatmul.mubr.bf16.gmra.mxu1 %v5883_v38  ;;  %v4124_v38 = vadd.f32 %v4123_v28, %v7968_v3 }
 0x30c   :  { %v4207_v37 = vadd.f32 %v4206_v15, %v4094_v42  ;;  %v4279_v53 = vmax.f32 %v4205_v45, 0.0 }
 0x30d   :  { %v4210_v57 = vpop.f32.mrf.mxu1 }
 0x30e   :  { %v4280_v63 = vmax.f32 %v4207_v37, 0.0  ;;  %v5887_v60 = vpack.c.bf16 %v4279_v53, %v4275_v62  ;;  %v4211_v13 = vadd.f32 %v4210_v57, %v4098_v52 }
 0x30f   :  { %v4212_v12 = vpop.f32.mrf.mxu1 }
 0x310   :  { %v5888_v17 = vpack.c.bf16 %v4280_v63, %v4276_v19  ;;  %v4213_v58 = vadd.f32 %v4212_v12, %v4100_v5  ;;  %v4283_v4 = vmax.f32 %v4211_v13, 0.0  ;;  %v4133_v63 = vpop.f32.mrf.mxu0  ;;  %v4132_v12 = vadd.f32 %v4131_v32, %v7973_v2 }
 0x311   :  { %v4214_v44 = vpop.f32.mrf.mxu1 }
 0x312   :  { %v4215_v35 = vadd.f32 %v4214_v44, %v4102_v24  ;;  %5145 = vmatprep.mubr.bf16.mxu1 %v5888_v17  ;;  %v4284_v23 = vmax.f32 %v4213_v58, 0.0  ;;  %v4128_v24 = vadd.f32 %v4127_v55, %v7973_v2 }
 0x313   :  { %v4216_v33 = vpop.f32.mrf.mxu1  ;;  %5146 = vmatmul.mubr.bf16.gmra.mxu1 %v5887_v60  ;;  %v4134_v60 = vadd.f32 %v4133_v63, %v7968_v3 }
 0x314   :  { %v4217_v30 = vadd.f32 %v4216_v33, %v4104_v34  ;;  %v4287_v41 = vmax.f32 %v4215_v35, 0.0 }
 0x315   :  { %v4220_v0 = vpop.f32.mrf.mxu1 }
 0x316   :  { %v4288_v22 = vmax.f32 %v4217_v30, 0.0  ;;  %v5891_v43 = vpack.c.bf16 %v4287_v41, %v4283_v4  ;;  %v4221_v26 = vadd.f32 %v4220_v0, %v4108_v31 }
 0x317   :  { %v4222_v48 = vpop.f32.mrf.mxu1 }
 0x318   :  { %v5892_v39 = vpack.c.bf16 %v4288_v22, %v4284_v23  ;;  %v4223_v51 = vadd.f32 %v4222_v48, %v4110_v6  ;;  %v4291_v29 = vmax.f32 %v4221_v26, 0.0 }
 0x319   :  { %v4224_v20 = vpop.f32.mrf.mxu1 }
 0x31a   :  { %v4225_v8 = vadd.f32 %v4224_v20, %v4112_v36  ;;  %5153 = vmatprep.mubr.bf16.mxu1 %v5892_v39  ;;  %v4292_v9 = vmax.f32 %v4223_v51, 0.0 }
 0x31b   :  { %v4226_v18 = vpop.f32.mrf.mxu1  ;;  %5154 = vmatmul.mubr.bf16.gmra.mxu1 %v5891_v43 }
 0x31c   :  { %v4227_v21 = vadd.f32 %v4226_v18, %v4114_v46  ;;  %v4295_v7 = vmax.f32 %v4225_v8, 0.0 }
 0x31d   :  { %v4230_v25 = vpop.f32.mrf.mxu1 }
 0x31e   :  { %v4296_v59 = vmax.f32 %v4227_v21, 0.0  ;;  %v5895_v47 = vpack.c.bf16 %v4295_v7, %v4291_v29  ;;  %v4231_v45 = vadd.f32 %v4230_v25, %v4118_v27  ;;  %v8042_v21 = vld [vmem:[%s8069_s6] ss:$0 sm:$0xff]  ;;  %s6766_s6 = smov [#allocation9]  }
 0x31f   :  { %v4232_v56 = vpop.f32.mrf.mxu1  ;;  %s5207_s22 = sshll.u32 %s6766_s6, 4  ;;  %s5208_s22 = int_to_ptr.vmem [resolvable:$true] %s5207_s22 }
 0x320   :  { %v5896_v11 = vpack.c.bf16 %v4296_v59, %v4292_v9  ;;  %v4233_v50 = vadd.f32 %v4232_v56, %v4120_v14  ;;  %v4299_v16 = vmax.f32 %v4231_v45, 0.0  ;;  %s6735_s23 = scalar_lea.vmem %s5208_s22, 2048  ;;  %p6740_p11 = scmp.lt.s32.totalorder %s5208_s22, %s5208_s22 }
 0x321   :  { %v4234_v10 = vpop.f32.mrf.mxu1  ;;  %p6736_p10 = scmp.ne.s32.totalorder %s5208_s22, %s6735_s23  ;;  %p6741_p12 = scmp.lt.s32.totalorder %s6735_s23, %s6735_s23 }
 0x322   :  { %v4235_v42 = vadd.f32 %v4234_v10, %v4122_v54  ;;  %5161 = vmatprep.mubr.bf16.mxu1 %v5896_v11  ;;  %v4300_v57 = vmax.f32 %v4233_v50, 0.0 }
 0x323   :  { %v4236_v61 = vpop.f32.mrf.mxu1  ;;  %5162 = vmatmul.mubr.bf16.gmra.mxu1 %v5895_v47  ;;  %p6742_p13 = por %p6741_p12, %p6740_p11 }
 0x324   :  { %v4237_v15 = vadd.f32 %v4236_v61, %v4124_v38  ;;  %v4303_v37 = vmax.f32 %v4235_v42, 0.0 }
 0x325   :  { %v4240_v53 = vpop.f32.mrf.mxu1  ;;  %p6743_p0 = pnand %p6742_p13, %p6736_p10 }
 0x326   :  { %v4304_v19 = vmax.f32 %v4237_v15, 0.0  ;;  %v5899_v17 = vpack.c.bf16 %v4303_v37, %v4299_v16  ;;  %v4241_v58 = vadd.f32 %v4240_v53, %v4128_v24 }
 0x327   :  { %v4242_v62 = vpop.f32.mrf.mxu1 }
 0x328   :  { %v5900_v5 = vpack.c.bf16 %v4304_v19, %v4300_v57  ;;  %v4243_v44 = vadd.f32 %v4242_v62, %v4130_v49  ;;  %v4307_v41 = vmax.f32 %v4241_v58, 0.0 }
 0x329   :  { %v4244_v52 = vpop.f32.mrf.mxu1 }
 0x32a   :  { %v4245_v34 = vadd.f32 %v4244_v52, %v4132_v12  ;;  %5169 = vmatprep.mubr.bf16.mxu1 %v5900_v5  ;;  %v4308_v33 = vmax.f32 %v4243_v44, 0.0 }
 0x32b   :  { %v4246_v35 = vpop.f32.mrf.mxu1  ;;  %5170 = vmatmul.mubr.bf16.gmra.mxu1 %v5899_v17 }
 0x32c   :  { %v4247_v40 = vadd.f32 %v4246_v35, %v4134_v60  ;;  %v4311_v13 = vmax.f32 %v4245_v34, 0.0 }
 0x32e   :  { %v4312_v30 = vmax.f32 %v4247_v40, 0.0  ;;  %v5903_v23 = vpack.c.bf16 %v4311_v13, %v4307_v41 }
 0x330   :  { %v5904_v0 = vpack.c.bf16 %v4312_v30, %v4308_v33 }
 0x332   :  { %5177 = vmatprep.mubr.bf16.mxu1 %v5904_v0 }
 0x333   :  { %5178 = vmatmul.mubr.bf16.gmra.mxu1 %v5903_v23 }
 0x37b   :  { %v5921_v2 = vpop.f32.mrf.mxu0 }
 0x37d   :  { %v5922_v22 = vpop.f32.mrf.mxu0 }
 0x37e   :  { %v5923_v18 = vadd.f32 %v5922_v22, %v5921_v2 }
 0x37f   :  { %v5924_v28 = vpop.f32.mrf.mxu0 }
 0x380   :  { %v5027_v59 = vadd.f32 %v5923_v18, %v8042_v21 }
 0x381   :  { %v5925_v4 = vpop.f32.mrf.mxu0 }
 0x382   :  { %v5926_v1 = vadd.f32 %v5925_v4, %v5924_v28 }
 0x383   :  { %v5927_v3 = vpop.f32.mrf.mxu0 }
 0x384   :  { %v5030_v27 = vadd.f32 %v5926_v1, %v8042_v21 }
 0x385   :  { %v5928_v48 = vpop.f32.mrf.mxu0 }
 0x386   :  { %v5929_v47 = vadd.f32 %v5928_v48, %v5927_v3 }
 0x387   :  { %v5930_v6 = vpop.f32.mrf.mxu0 }
 0x388   :  { %v5035_v45 = vadd.f32 %v5929_v47, %v8042_v21 }
 0x389   :  { %v5931_v36 = vpop.f32.mrf.mxu0 }
 0x38a   :  { %v5932_v61 = vadd.f32 %v5931_v36, %v5930_v6 }
 0x38b   :  { %v5933_v39 = vpop.f32.mrf.mxu0 }
 0x38c   :  { %v5038_v63 = vadd.f32 %v5932_v61, %v8042_v21 }
 0x38d   :  { %v5934_v31 = vpop.f32.mrf.mxu0 }
 0x38e   :  { %v5935_v16 = vadd.f32 %v5934_v31, %v5933_v39 }
 0x38f   :  { %v5936_v43 = vpop.f32.mrf.mxu0 }
 0x390   :  { %v5043_v17 = vadd.f32 %v5935_v16, %v8042_v21 }
 0x391   :  { %v5937_v20 = vpop.f32.mrf.mxu0 }
 0x392   :  { %v5938_v52 = vadd.f32 %v5937_v20, %v5936_v43 }
 0x393   :  { %v5939_v46 = vpop.f32.mrf.mxu0 }
 0x394   :  { %v5046_v40 = vadd.f32 %v5938_v52, %v8042_v21 }
 0x395   :  { %v5940_v51 = vpop.f32.mrf.mxu0 }
 0x396   :  { %v5941_v13 = vadd.f32 %v5940_v51, %v5939_v46 }
 0x397   :  { %v5942_v8 = vpop.f32.mrf.mxu0 }
 0x398   :  { %v5051_v2 = vadd.f32 %v5941_v13, %v8042_v21 }
 0x399   :  { %v5943_v55 = vpop.f32.mrf.mxu0 }
 0x39a   :  { %v5944_v22 = vadd.f32 %v5943_v55, %v5942_v8 }
 0x39b   :  { %v5945_v26 = vpop.f32.mrf.mxu0 }
 0x39c   :  { %v5054_v36 = vadd.f32 %v5944_v22, %v8042_v21 }
 0x39d   :  { %v5946_v7 = vpop.f32.mrf.mxu0 }
 0x39e   :  { %v5947_v39 = vadd.f32 %v5946_v7, %v5945_v26 }
 0x39f   :  { %v5948_v56 = vpop.f32.mrf.mxu0 }
 0x3a0   :  { %v5059_v18 = vadd.f32 %v5947_v39, %v8042_v21 }
 0x3a1   :  { %v5949_v38 = vpop.f32.mrf.mxu0 }
 0x3a3   :  { %v5951_v37 = vpop.f32.mrf.mxu0 }
 0x3a5   :  { %v5952_v49 = vpop.f32.mrf.mxu0 }
 0x3a7   :  { %v5954_v44 = vpop.f32.mrf.mxu0 }
 0x3a9   :  { %v5955_v30 = vpop.f32.mrf.mxu0 }
 0x3ab   :  { %v5957_v4 = vpop.f32.mrf.mxu0 }
 0x3ad   :  { %v5958_v43 = vpop.f32.mrf.mxu0 }
 0x3ae   :  { %v5959_v61 = vadd.f32 %v5958_v43, %v5957_v4 }
 0x3af   :  { %v5960_v55 = vpop.f32.mrf.mxu0 }
 0x3b1   :  { %v5961_v7 = vpop.f32.mrf.mxu0 }
 0x3b2   :  { %v5962_v16 = vadd.f32 %v5961_v7, %v5960_v55 }
 0x3bb   :  { %v5985_v25 = vpop.f32.mrf.mxu1 }
 0x3bd   :  { %v5986_v9 = vpop.f32.mrf.mxu1 }
 0x3be   :  { %v5987_v29 = vadd.f32 %v5986_v9, %v5985_v25  ;;  %v5950_v25 = vadd.f32 %v5949_v38, %v5948_v56  ;;  %v5963_v38 = vpop.f32.mrf.mxu0 }
 0x3bf   :  { %v5988_v14 = vpop.f32.mrf.mxu1 }
 0x3c0   :  { %v5124_v54 = vadd.f32 %v5987_v29, %v5027_v59  ;;  %v5062_v29 = vadd.f32 %v5950_v25, %v8042_v21 }
 0x3c1   :  { %v5989_v11 = vpop.f32.mrf.mxu1 }
 0x3c2   :  { %5186 = vst [vmem:[#allocation9] sm:$0xff] %v5124_v54  ;;  %v5990_v10 = vadd.f32 %v5989_v11, %v5988_v14  ;;  %v5953_v14 = vadd.f32 %v5952_v49, %v5951_v37  ;;  %v5964_v37 = vpop.f32.mrf.mxu0 }
 0x3c3   :  { %v5991_v50 = vpop.f32.mrf.mxu1  ;;  %v5965_v52 = vadd.f32 %v5964_v37, %v5963_v38 }
 0x3c4   :  { %v5127_v42 = vadd.f32 %v5990_v10, %v5030_v27  ;;  %v5067_v47 = vadd.f32 %v5953_v14, %v8042_v21  ;;  %v5956_v10 = vadd.f32 %v5955_v30, %v5954_v44  ;;  %v5966_v49 = vpop.f32.mrf.mxu0 }
 0x3c5   :  { %v5992_v32 = vpop.f32.mrf.mxu1 }
 0x3c6   :  { %5187 = vst [vmem:[#allocation9 + $0x8] sm:$0xff] %v5127_v42  ;;  %v5993_v15 = vadd.f32 %v5992_v32, %v5991_v50  ;;  %v5967_v44 = vpop.f32.mrf.mxu0 }
 0x3c7   :  { %v5994_v53 = vpop.f32.mrf.mxu1  ;;  %v5968_v13 = vadd.f32 %v5967_v44, %v5966_v49 }
 0x3c8   :  { %v5132_v57 = vadd.f32 %v5993_v15, %v5035_v45  ;;  %v5070_v45 = vadd.f32 %v5956_v10, %v8042_v21 }
 0x3c9   :  { %v5995_v19 = vpop.f32.mrf.mxu1 }
 0x3ca   :  { %5188 = vst [vmem:[#allocation9 + $0x10] sm:$0xff] %v5132_v57  ;;  %v5996_v62 = vadd.f32 %v5995_v19, %v5994_v53 }
 0x3cb   :  { %v5997_v12 = vpop.f32.mrf.mxu1 }
 0x3cc   :  { %v5135_v5 = vadd.f32 %v5996_v62, %v5038_v63  ;;  %v5075_v63 = vadd.f32 %v5959_v61, %v8042_v21 }
 0x3cd   :  { %v5998_v24 = vpop.f32.mrf.mxu1 }
 0x3ce   :  { %5189 = vst [vmem:[#allocation9 + $0x18] sm:$0xff] %v5135_v5  ;;  %v5999_v60 = vadd.f32 %v5998_v24, %v5997_v12 }
 0x3cf   :  { %v6000_v34 = vpop.f32.mrf.mxu1 }
 0x3d0   :  { %v5140_v58 = vadd.f32 %v5999_v60, %v5043_v17  ;;  %v5078_v17 = vadd.f32 %v5962_v16, %v8042_v21 }
 0x3d1   :  { %v6001_v35 = vpop.f32.mrf.mxu1 }
 0x3d2   :  { %5190 = vst [vmem:[#allocation9 + $0x20] sm:$0xff] %v5140_v58  ;;  %v6002_v33 = vadd.f32 %v6001_v35, %v6000_v34 }
 0x3d3   :  { %v6003_v41 = vpop.f32.mrf.mxu1 }
 0x3d4   :  { %v5143_v0 = vadd.f32 %v6002_v33, %v5046_v40  ;;  %v5083_v40 = vadd.f32 %v5965_v52, %v8042_v21 }
 0x3d5   :  { %v6004_v23 = vpop.f32.mrf.mxu1 }
 0x3d6   :  { %5191 = vst [vmem:[#allocation9 + $0x28] sm:$0xff] %v5143_v0  ;;  %v6005_v28 = vadd.f32 %v6004_v23, %v6003_v41  ;;  %v5086_v23 = vadd.f32 %v5968_v13, %v8042_v21 }
 0x3d7   :  { %v6006_v3 = vpop.f32.mrf.mxu1 }
 0x3d8   :  { %v5148_v48 = vadd.f32 %v6005_v28, %v5051_v2 }
 0x3d9   :  { %v6007_v6 = vpop.f32.mrf.mxu1 }
 0x3da   :  { %5192 = vst [vmem:[#allocation9 + $0x30] sm:$0xff] %v5148_v48  ;;  %v6008_v31 = vadd.f32 %v6007_v6, %v6006_v3 }
 0x3db   :  { %v6009_v20 = vpop.f32.mrf.mxu1 }
 0x3dc   :  { %v5151_v46 = vadd.f32 %v6008_v31, %v5054_v36 }
 0x3dd   :  { %v6010_v51 = vpop.f32.mrf.mxu1 }
 0x3de   :  { %5193 = vst [vmem:[#allocation9 + $0x38] sm:$0xff] %v5151_v46  ;;  %v6011_v8 = vadd.f32 %v6010_v51, %v6009_v20 }
 0x3df   :  { %v6012_v9 = vpop.f32.mrf.mxu1 }
 0x3e0   :  { %v5156_v59 = vadd.f32 %v6011_v8, %v5059_v18 }
 0x3e1   :  { %v6013_v1 = vpop.f32.mrf.mxu1 }
 0x3e2   :  { %5194 = vst [vmem:[#allocation9 + $0x40] sm:$0xff] %v5156_v59  ;;  %v6014_v26 = vadd.f32 %v6013_v1, %v6012_v9 }
 0x3e3   :  { %v6015_v54 = vpop.f32.mrf.mxu1 }
 0x3e4   :  { %v5159_v11 = vadd.f32 %v6014_v26, %v5062_v29 }
 0x3e5   :  { %v6016_v27 = vpop.f32.mrf.mxu1 }
 0x3e6   :  { %5195 = vst [vmem:[#allocation9 + $0x48] sm:$0xff] %v5159_v11  ;;  %v6017_v56 = vadd.f32 %v6016_v27, %v6015_v54 }
 0x3e7   :  { %v6018_v50 = vpop.f32.mrf.mxu1 }
 0x3e8   :  { %v5164_v42 = vadd.f32 %v6017_v56, %v5067_v47 }
 0x3e9   :  { %v6019_v32 = vpop.f32.mrf.mxu1 }
 0x3ea   :  { %5196 = vst [vmem:[#allocation9 + $0x50] sm:$0xff] %v5164_v42  ;;  %v6020_v15 = vadd.f32 %v6019_v32, %v6018_v50 }
 0x3eb   :  { %v6021_v53 = vpop.f32.mrf.mxu1 }
 0x3ec   :  { %v5167_v57 = vadd.f32 %v6020_v15, %v5070_v45 }
 0x3ed   :  { %v6022_v19 = vpop.f32.mrf.mxu1 }
 0x3ee   :  { %5197 = vst [vmem:[#allocation9 + $0x58] sm:$0xff] %v5167_v57  ;;  %v6023_v62 = vadd.f32 %v6022_v19, %v6021_v53 }
 0x3ef   :  { %v6024_v12 = vpop.f32.mrf.mxu1 }
 0x3f0   :  { %v5172_v5 = vadd.f32 %v6023_v62, %v5075_v63 }
 0x3f1   :  { %v6025_v24 = vpop.f32.mrf.mxu1 }
 0x3f2   :  { %5198 = vst [vmem:[#allocation9 + $0x60] sm:$0xff] %v5172_v5  ;;  %v6026_v60 = vadd.f32 %v6025_v24, %v6024_v12 }
 0x3f3   :  { %v6027_v34 = vpop.f32.mrf.mxu1 }
 0x3f4   :  { %v5175_v58 = vadd.f32 %v6026_v60, %v5078_v17 }
 0x3f5   :  { %v6028_v35 = vpop.f32.mrf.mxu1 }
 0x3f6   :  { %5199 = vst [vmem:[#allocation9 + $0x68] sm:$0xff] %v5175_v58  ;;  %v6029_v33 = vadd.f32 %v6028_v35, %v6027_v34 }
 0x3f7   :  { %v6030_v30 = vpop.f32.mrf.mxu1 }
 0x3f8   :  { %v5180_v41 = vadd.f32 %v6029_v33, %v5083_v40 }
 0x3f9   :  { %v6031_v0 = vpop.f32.mrf.mxu1 }
 0x3fa   :  { %5200 = vst [vmem:[#allocation9 + $0x70] sm:$0xff] %v5180_v41  ;;  %v6032_v2 = vadd.f32 %v6031_v0, %v6030_v30 }
 0x3fc   :  { %v5183_v22 = vadd.f32 %v6032_v2, %v5086_v23 }
 0x3fe   :  { %5201 = vst [vmem:[#allocation9 + $0x78] sm:$0xff] %v5183_v22 }
 0x3ff   :  { %6746 = shalt.err (!%p6743_p0)
}
 0x400   :  { %s6767_s24 = smov 128   ;;  %s6768_s25 = smov 8  }
 0x401   :  { %5213 = dma.vmem_to_hbm [thread:$0]  %s5208_s22, 2048, %s8070_s7, [#allocation6], %s6767_s24, %s6767_s24, %s6768_s25  }
 0x402   :  { %6759 = dma.done.wait [#allocation6], 2048  }
 0x403   :  { %6760 = vsyncadd [#allocation6], 4294965248 }
 0x404   :  { %5217 = vsyncpa [#allocation5], 1 }
 0x405   :  { %5218 = vsyncpa [#allocation8], 1 }
 0x406   :  { %5219 = vsyncpa [#allocation6], 1 }

</bundles_post_ra>
